<compile_context>
chip_gen: v7x
topology: tpu7x:2x2x1
jax: 0.10.0
libtpu: 0.0.40
codegen_flags: <defaults>
</compile_context>

<pallas_src>
import functools

import jax
import jax.numpy as jnp
from jax import lax
from jax.experimental import pallas as pl
from jax.experimental.pallas import tpu as pltpu

KERNEL_SIZE = 7
PADDING = 3  # padding = 3 if kernel_size == 7 else 1

# Interior placement inside the padded conv scratch: just the 3-wide zero ring.
# (Lane alignment of the interior buys nothing: the conv loads at COL0-3+j are
# lane-unaligned anyway, so the old 128-lane dead band was pure waste.)
_ROW0 = PADDING
_COL0 = PADDING

# Per-step input tile budget (Pallas double-buffers it).  2 MiB is near the
# HBM-roofline knee on 128 MiB-VMEM parts (v5e/v6e) and small enough to leave
# large headroom on v7x's 64 MiB VMEM.
_C_TILE_BUDGET_BYTES = 2 * 1024 * 1024
_COL_CHUNK = 1024  # lanes per register-carried partial reduction


def _round_up(x, m):
    return (x + m - 1) // m * m


def _spatial_attention_kernel(x_ref, w_ref, o_ref, sum_ref, max_ref, pad_ref, *,
                              C, c_t, num_chunks, R0, H, W, HP, WP):
    # x_ref:   (1, c_t, H*W)   one batch element, one channel chunk (lane-dense)
    # w_ref:   (98,) f32 SMEM  conv weight, flattened (ch*49 + i*7 + j); avg
    #                          channel pre-scaled by 1/C in the wrapper
    # o_ref:   (1, 1, H, W)
    # sum_ref: (R0, H*W) f32   running per-row channel sums
    # max_ref: (R0, H*W) f32   running per-row channel maxes
    # pad_ref: (2, HP, WP) f32 zero-ring padded avg/max maps for the conv
    K, P = KERNEL_SIZE, PADDING
    HW = H * W
    c_idx = pl.program_id(1)
    neg_inf = jnp.float32(-jnp.inf)

    # Static sub-chunk schedule within one channel chunk.
    #   (s_off, overlap): rows [0, overlap) of this sub-chunk duplicate rows
    #   already accumulated by the previous sub-chunk (clamped ragged tail)
    #   and are masked out of both sum and max.
    subs = []
    s = 0
    while s < c_t:
        if s + R0 <= c_t:
            subs.append((s, 0))
            s += R0
        else:
            s_cl = c_t - R0
            subs.append((s_cl, s - s_cl))
            s = c_t

    # ---- streaming channel reduction: vreg-carried partials, one accumulator
    # ---- read-modify-write per column chunk per grid step ----
    for col0 in range(0, HW, _COL_CHUNK):
        cc = min(_COL_CHUNK, HW - col0)
        col = pl.ds(col0, cc)

        part_sum = None
        part_max = None
        for (s_off, overlap) in subs:
            blk = x_ref[0, pl.ds(s_off, R0), col].astype(jnp.float32)  # (R0, cc)
            # Channel overhang of the ragged LAST chunk (grid is cdiv(C, c_t));
            # only emitted for sub-chunks that can statically overhang.
            need_c_mask = (num_chunks * c_t > C
                           and (num_chunks - 1) * c_t + s_off + R0 > C)
            if overlap or need_c_mask:
                ridx = lax.broadcasted_iota(jnp.int32, (R0, 1), 0)
                valid = None
                if overlap:
                    valid = ridx >= overlap
                if need_c_mask:
                    in_range = (c_idx * c_t + s_off) + ridx < C
                    valid = in_range if valid is None else jnp.logical_and(valid, in_range)
                blk_s = jnp.where(valid, blk, 0.0)
                blk_m = jnp.where(valid, blk, neg_inf)
            else:
                blk_s = blk
                blk_m = blk
            if part_sum is None:
                part_sum, part_max = blk_s, blk_m
            else:
                part_sum = part_sum + blk_s
                part_max = jnp.maximum(part_max, blk_m)

        if num_chunks == 1:
            sum_ref[:, col] = part_sum
            max_ref[:, col] = part_max
        else:
            @pl.when(c_idx == 0)
            def _init(part_sum=part_sum, part_max=part_max, col=col):
                sum_ref[:, col] = part_sum
                max_ref[:, col] = part_max

            @pl.when(c_idx != 0)
            def _acc(part_sum=part_sum, part_max=part_max, col=col):
                sum_ref[:, col] = sum_ref[:, col] + part_sum
                max_ref[:, col] = jnp.maximum(max_ref[:, col], part_max)

    # ---- epilogue: 7x7 conv (2->1, zero padding) + sigmoid, once per batch ----
    def _epilogue():
        # final R0 -> 1 cross-sublane reduce (1/C is folded into the weights)
        avg_row = jnp.sum(sum_ref[...], axis=0, keepdims=True)   # (1, HW)
        max_row = jnp.max(max_ref[...], axis=0, keepdims=True)   # (1, HW)

        # zero only the conv padding ring; the interior is fully overwritten
        for ch in range(2):
            pad_ref[ch, 0:_ROW0, :] = jnp.zeros((_ROW0, WP), jnp.float32)
            pad_ref[ch, _ROW0 + H:HP, :] = jnp.zeros((HP - _ROW0 - H, WP), jnp.float32)
            pad_ref[ch, _ROW0:_ROW0 + H, 0:_COL0] = jnp.zeros((H, _COL0), jnp.float32)
            pad_ref[ch, _ROW0:_ROW0 + H, _COL0 + W:_COL0 + W + P] = (
                jnp.zeros((H, P), jnp.float32))

        # un-flatten the (1, H*W) maps into the (H, W) interior, row by row
        # TODO(synk): for large H replace with a single lane->sublane relayout
        # (or pack 128/W rows per lane group) to avoid O(H) narrow stores.
        for y in range(H):
            pad_ref[0, pl.ds(_ROW0 + y, 1), pl.ds(_COL0, W)] = avg_row[:, y * W:(y + 1) * W]
            pad_ref[1, pl.ds(_ROW0 + y, 1), pl.ds(_COL0, W)] = max_row[:, y * W:(y + 1) * W]

        # 7x7 conv: column shifts hoisted (2*K lane-offset loads total); the
        # inner loop only varies the row offset (cheap sublane slice of a value)
        acc = jnp.zeros((H, W), jnp.float32)
        for j in range(K):
            a_col = pad_ref[0, pl.ds(_ROW0 - P, H + K - 1), pl.ds(_COL0 - P + j, W)]
            m_col = pad_ref[1, pl.ds(_ROW0 - P, H + K - 1), pl.ds(_COL0 - P + j, W)]
            for i in range(K):
                acc = acc + w_ref[i * K + j] * a_col[i:i + H, :]
                acc = acc + w_ref[K * K + i * K + j] * m_col[i:i + H, :]

        o_ref[0, 0] = jax.nn.sigmoid(acc)

    if num_chunks == 1:
        _epilogue()
    else:
        pl.when(c_idx == num_chunks - 1)(_epilogue)


@jax.jit
def spatial_attention(x, conv_weight):
    """x: (N, C, H, W) float32/bfloat16; conv_weight: (1, 2, 7, 7) float32."""
    N, C, H, W = x.shape
    HW = H * W
    K, P = KERNEL_SIZE, PADDING

    # bf16 inputs: step channels by 16 so sublane slices stay packed-tile aligned
    rstep = 16 if x.dtype == jnp.bfloat16 else 8

    # Channel tile: full C if it fits the budget, else a multiple of rstep.
    # The ragged last chunk (C % c_t != 0) is masked in-kernel -- no wrapper pad.
    per_ch_bytes = HW * x.dtype.itemsize
    if C * per_ch_bytes <= _C_TILE_BUDGET_BYTES:
        c_t = C
    else:
        c_t = max(rstep, (_C_TILE_BUDGET_BYTES // per_ch_bytes) // rstep * rstep)
        if c_t >= C:
            c_t = C
    num_chunks = -(-C // c_t)
    R0 = min(rstep, c_t)

    # lane-dense layout for the reduction stage (free metadata reshape in XLA)
    x_flat = x.reshape(N, C, HW)

    # flat conv weight -> SMEM scalars; fold the channel-mean's 1/C into the
    # avg-map (first) conv input channel so the kernel works on raw sums.
    w = conv_weight.astype(jnp.float32)
    w_flat = jnp.concatenate([w[:, 0:1] * (1.0 / C), w[:, 1:2]], axis=1).reshape(2 * K * K)

    HP = _round_up(_ROW0 + H + P, 8)
    WP = _round_up(_COL0 + W + P, 128)

    kernel = functools.partial(_spatial_attention_kernel, C=C, c_t=c_t,
                               num_chunks=num_chunks, R0=R0, H=H, W=W, HP=HP, WP=WP)

    # TODO(synk): for N == 1 on multi-TensorCore chips (v7x), add a parallel
    # spatial split (column-split of HW for the reduction; the 7x7 conv then
    # needs a 3-wide halo or a tiny second pass) so both cores are used.
    return pl.pallas_call(
        kernel,
        out_shape=jax.ShapeDtypeStruct((N, 1, H, W), jnp.float32),
        grid_spec=pltpu.PrefetchScalarGridSpec(
            num_scalar_prefetch=0,
            grid=(N, num_chunks),
            in_specs=[
                # one (batch, channel-chunk) tile per grid step, lane-dense
                pl.BlockSpec((1, c_t, HW), lambda b, c: (b, c, 0)),
                # conv weight lives untiled in SMEM
                pl.BlockSpec(memory_space=pltpu.MemorySpace.SMEM),
            ],
            out_specs=pl.BlockSpec((1, 1, H, W), lambda b, c: (b, 0, 0, 0)),
            scratch_shapes=[
                pltpu.VMEM((R0, HW), jnp.float32),        # running channel sums
                pltpu.VMEM((R0, HW), jnp.float32),        # running channel maxes
                pltpu.VMEM((2, HP, WP), jnp.float32),     # zero-ring padded maps
            ],
        ),
        compiler_params=pltpu.CompilerParams(
            dimension_semantics=("parallel", "arbitrary"),
            vmem_limit_bytes=48 * 1024 * 1024,
        ),
    )(x_flat, w_flat)


def _reference(x, conv_weight):
    # Plain-JAX reference (mirrors the torch forward) for a sanity check.
    avg_out = jnp.mean(x, axis=1, keepdims=True)
    max_out = jnp.max(x, axis=1, keepdims=True)
    cat = jnp.concatenate([avg_out, max_out], axis=1)          # (N, 2, H, W)
    out = lax.conv_general_dilated(
        cat, conv_weight,
        window_strides=(1, 1),
        padding=((PADDING, PADDING), (PADDING, PADDING)),
        dimension_numbers=("NCHW", "OIHW", "NCHW"))
    return jax.nn.sigmoid(out)


if __name__ == "__main__":
    key = jax.random.PRNGKey(0)
    k_x, k_w = jax.random.split(key)

    # Small shapes consistent with the module: N=2, C=4, H=W=16.
    N, C, H, W = 2, 4, 16, 16
    x = jax.random.normal(k_x, (N, C, H, W), dtype=jnp.float32)

    # Deterministic conv weight init (PyTorch kaiming-uniform-like bound).
    fan_in = 2 * KERNEL_SIZE * KERNEL_SIZE
    bound = 1.0 / (fan_in ** 0.5)
    conv_weight = jax.random.uniform(
        k_w, (1, 2, KERNEL_SIZE, KERNEL_SIZE),
        minval=-bound, maxval=bound, dtype=jnp.float32)

    out = spatial_attention(x, conv_weight)
    out = jax.block_until_ready(out)

    ref = _reference(x, conv_weight)
    assert out.shape == (N, 1, H, W)
    assert jnp.allclose(out, ref, atol=2e-5, rtol=1e-5), "mismatch vs reference"

    print("KERNEL_OK")
</pallas_src>

<mosaic_0001>
module attributes {stable_mosaic.version = 11 : i64} {
  func.func @_spatial_attention_kernel(%arg0: i32, %arg1: i32, %arg2: memref<1x4x256xf32, #tpu.memory_space<vmem>>, %arg3: memref<98xf32, #tpu.memory_space<smem>>, %arg4: memref<1x1x16x16xf32, #tpu.memory_space<vmem>>, %arg5: memref<4x256xf32, #tpu.memory_space<vmem>>, %arg6: memref<4x256xf32, #tpu.memory_space<vmem>>, %arg7: memref<2x24x128xf32, #tpu.memory_space<vmem>>) attributes {dimension_semantics = [#tpu.dimension_semantics<parallel>, #tpu.dimension_semantics<arbitrary>], iteration_bounds = array<i64: 2, 1>, scalar_prefetch = 0 : i64, scratch_operands = 3 : i64, tpu.core_type = #tpu.core_type<tc>, window_params = [{transform_indices = @transform_0, window_bounds = array<i64: 1, 4, 256>}, {transform_indices = @transform_1, window_bounds = array<i64: 98>}, {transform_indices = @transform_2, window_bounds = array<i64: 1, 1, 16, 16>}]} {
    %c0 = arith.constant 0 : index
    %c0_0 = arith.constant 0 : index
    %c0_1 = arith.constant 0 : index
    %0 = vector.load %arg2[%c0, %c0_0, %c0_1] : memref<1x4x256xf32, #tpu.memory_space<vmem>>, vector<1x4x256xf32>
    %1 = vector.shape_cast %0 : vector<1x4x256xf32> to vector<4x256xf32>
    %c0_2 = arith.constant 0 : index
    %c0_3 = arith.constant 0 : index
    %2 = vector.load %arg5[%c0_2, %c0_3] : memref<4x256xf32, #tpu.memory_space<vmem>>, vector<4x256xf32>
    tpu.vector_store %arg5[%c0_2, %c0_3], %1 {strides = array<i32>} : memref<4x256xf32, #tpu.memory_space<vmem>>, vector<4x256xf32>,
    %c0_4 = arith.constant 0 : index
    %c0_5 = arith.constant 0 : index
    %3 = vector.load %arg6[%c0_4, %c0_5] : memref<4x256xf32, #tpu.memory_space<vmem>>, vector<4x256xf32>
    tpu.vector_store %arg6[%c0_4, %c0_5], %1 {strides = array<i32>} : memref<4x256xf32, #tpu.memory_space<vmem>>, vector<4x256xf32>,
    %c0_6 = arith.constant 0 : index
    %c0_7 = arith.constant 0 : index
    %4 = vector.load %arg5[%c0_6, %c0_7] : memref<4x256xf32, #tpu.memory_space<vmem>>, vector<4x256xf32>
    %cst = arith.constant dense<0.000000e+00> : vector<256xf32>
    %5 = vector.multi_reduction <add>, %4, %cst [0] : vector<4x256xf32> to vector<256xf32>
    %6 = vector.shape_cast %5 : vector<256xf32> to vector<1x256xf32>
    %c0_8 = arith.constant 0 : index
    %c0_9 = arith.constant 0 : index
    %7 = vector.load %arg6[%c0_8, %c0_9] : memref<4x256xf32, #tpu.memory_space<vmem>>, vector<4x256xf32>
    %cst_10 = arith.constant dense<0xFF800000> : vector<256xf32>
    %8 = vector.multi_reduction <maximumf>, %7, %cst_10 [0] : vector<4x256xf32> to vector<256xf32>
    %9 = vector.shape_cast %8 : vector<256xf32> to vector<1x256xf32>
    %cst_11 = arith.constant 0.000000e+00 : f32
    %10 = vector.broadcast %cst_11 : f32 to vector<3x128xf32>
    %c0_12 = arith.constant 0 : index
    %c0_13 = arith.constant 0 : index
    %c0_14 = arith.constant 0 : index
    %11 = vector.load %arg7[%c0_12, %c0_13, %c0_14] : memref<2x24x128xf32, #tpu.memory_space<vmem>>, vector<1x3x128xf32>
    %12 = vector.shape_cast %11 : vector<1x3x128xf32> to vector<3x128xf32>
    %13 = vector.shape_cast %10 : vector<3x128xf32> to vector<1x3x128xf32>
    tpu.vector_store %arg7[%c0_12, %c0_13, %c0_14], %13 {strides = array<i32>} : memref<2x24x128xf32, #tpu.memory_space<vmem>>, vector<1x3x128xf32>,
    %cst_15 = arith.constant 0.000000e+00 : f32
    %14 = vector.broadcast %cst_15 : f32 to vector<5x128xf32>
    %c0_16 = arith.constant 0 : index
    %c19 = arith.constant 19 : index
    %c0_17 = arith.constant 0 : index
    %15 = vector.load %arg7[%c0_16, %c19, %c0_17] : memref<2x24x128xf32, #tpu.memory_space<vmem>>, vector<1x5x128xf32>
    %16 = vector.shape_cast %15 : vector<1x5x128xf32> to vector<5x128xf32>
    %17 = vector.shape_cast %14 : vector<5x128xf32> to vector<1x5x128xf32>
    tpu.vector_store %arg7[%c0_16, %c19, %c0_17], %17 {strides = array<i32>} : memref<2x24x128xf32, #tpu.memory_space<vmem>>, vector<1x5x128xf32>,
    %cst_18 = arith.constant 0.000000e+00 : f32
    %18 = vector.broadcast %cst_18 : f32 to vector<16x3xf32>
    %c0_19 = arith.constant 0 : index
    %c3 = arith.constant 3 : index
    %c0_20 = arith.constant 0 : index
    %19 = vector.load %arg7[%c0_19, %c3, %c0_20] : memref<2x24x128xf32, #tpu.memory_space<vmem>>, vector<1x16x3xf32>
    %20 = vector.shape_cast %19 : vector<1x16x3xf32> to vector<16x3xf32>
    %21 = vector.shape_cast %18 : vector<16x3xf32> to vector<1x16x3xf32>
    tpu.vector_store %arg7[%c0_19, %c3, %c0_20], %21 {strides = array<i32>} : memref<2x24x128xf32, #tpu.memory_space<vmem>>, vector<1x16x3xf32>,
    %cst_21 = arith.constant 0.000000e+00 : f32
    %22 = vector.broadcast %cst_21 : f32 to vector<16x3xf32>
    %c0_22 = arith.constant 0 : index
    %c3_23 = arith.constant 3 : index
    %c19_24 = arith.constant 19 : index
    %23 = vector.load %arg7[%c0_22, %c3_23, %c19_24] : memref<2x24x128xf32, #tpu.memory_space<vmem>>, vector<1x16x3xf32>
    %24 = vector.shape_cast %23 : vector<1x16x3xf32> to vector<16x3xf32>
    %25 = vector.shape_cast %22 : vector<16x3xf32> to vector<1x16x3xf32>
    tpu.vector_store %arg7[%c0_22, %c3_23, %c19_24], %25 {strides = array<i32>} : memref<2x24x128xf32, #tpu.memory_space<vmem>>, vector<1x16x3xf32>,
    %cst_25 = arith.constant 0.000000e+00 : f32
    %26 = vector.broadcast %cst_25 : f32 to vector<3x128xf32>
    %c1 = arith.constant 1 : index
    %c0_26 = arith.constant 0 : index
    %c0_27 = arith.constant 0 : index
    %27 = vector.load %arg7[%c1, %c0_26, %c0_27] : memref<2x24x128xf32, #tpu.memory_space<vmem>>, vector<1x3x128xf32>
    %28 = vector.shape_cast %27 : vector<1x3x128xf32> to vector<3x128xf32>
    %29 = vector.shape_cast %26 : vector<3x128xf32> to vector<1x3x128xf32>
    tpu.vector_store %arg7[%c1, %c0_26, %c0_27], %29 {strides = array<i32>} : memref<2x24x128xf32, #tpu.memory_space<vmem>>, vector<1x3x128xf32>,
    %cst_28 = arith.constant 0.000000e+00 : f32
    %30 = vector.broadcast %cst_28 : f32 to vector<5x128xf32>
    %c1_29 = arith.constant 1 : index
    %c19_30 = arith.constant 19 : index
    %c0_31 = arith.constant 0 : index
    %31 = vector.load %arg7[%c1_29, %c19_30, %c0_31] : memref<2x24x128xf32, #tpu.memory_space<vmem>>, vector<1x5x128xf32>
    %32 = vector.shape_cast %31 : vector<1x5x128xf32> to vector<5x128xf32>
    %33 = vector.shape_cast %30 : vector<5x128xf32> to vector<1x5x128xf32>
    tpu.vector_store %arg7[%c1_29, %c19_30, %c0_31], %33 {strides = array<i32>} : memref<2x24x128xf32, #tpu.memory_space<vmem>>, vector<1x5x128xf32>,
    %cst_32 = arith.constant 0.000000e+00 : f32
    %34 = vector.broadcast %cst_32 : f32 to vector<16x3xf32>
    %c1_33 = arith.constant 1 : index
    %c3_34 = arith.constant 3 : index
    %c0_35 = arith.constant 0 : index
    %35 = vector.load %arg7[%c1_33, %c3_34, %c0_35] : memref<2x24x128xf32, #tpu.memory_space<vmem>>, vector<1x16x3xf32>
    %36 = vector.shape_cast %35 : vector<1x16x3xf32> to vector<16x3xf32>
    %37 = vector.shape_cast %34 : vector<16x3xf32> to vector<1x16x3xf32>
    tpu.vector_store %arg7[%c1_33, %c3_34, %c0_35], %37 {strides = array<i32>} : memref<2x24x128xf32, #tpu.memory_space<vmem>>, vector<1x16x3xf32>,
    %cst_36 = arith.constant 0.000000e+00 : f32
    %38 = vector.broadcast %cst_36 : f32 to vector<16x3xf32>
    %c1_37 = arith.constant 1 : index
    %c3_38 = arith.constant 3 : index
    %c19_39 = arith.constant 19 : index
    %39 = vector.load %arg7[%c1_37, %c3_38, %c19_39] : memref<2x24x128xf32, #tpu.memory_space<vmem>>, vector<1x16x3xf32>
    %40 = vector.shape_cast %39 : vector<1x16x3xf32> to vector<16x3xf32>
    %41 = vector.shape_cast %38 : vector<16x3xf32> to vector<1x16x3xf32>
    tpu.vector_store %arg7[%c1_37, %c3_38, %c19_39], %41 {strides = array<i32>} : memref<2x24x128xf32, #tpu.memory_space<vmem>>, vector<1x16x3xf32>,
    %42 = vector.extract_strided_slice %6 {offsets = [0, 0], sizes = [1, 16], strides = [1, 1]} : vector<1x256xf32> to vector<1x16xf32>
    %c0_40 = arith.constant 0 : index
    %c3_41 = arith.constant 3 : index
    %c3_42 = arith.constant 3 : index
    %43 = vector.load %arg7[%c0_40, %c3_41, %c3_42] : memref<2x24x128xf32, #tpu.memory_space<vmem>>, vector<1x1x16xf32>
    %44 = vector.shape_cast %43 : vector<1x1x16xf32> to vector<1x16xf32>
    %45 = vector.shape_cast %42 : vector<1x16xf32> to vector<1x1x16xf32>
    tpu.vector_store %arg7[%c0_40, %c3_41, %c3_42], %45 {strides = array<i32>} : memref<2x24x128xf32, #tpu.memory_space<vmem>>, vector<1x1x16xf32>,
    %46 = vector.extract_strided_slice %9 {offsets = [0, 0], sizes = [1, 16], strides = [1, 1]} : vector<1x256xf32> to vector<1x16xf32>
    %c1_43 = arith.constant 1 : index
    %c3_44 = arith.constant 3 : index
    %c3_45 = arith.constant 3 : index
    %47 = vector.load %arg7[%c1_43, %c3_44, %c3_45] : memref<2x24x128xf32, #tpu.memory_space<vmem>>, vector<1x1x16xf32>
    %48 = vector.shape_cast %47 : vector<1x1x16xf32> to vector<1x16xf32>
    %49 = vector.shape_cast %46 : vector<1x16xf32> to vector<1x1x16xf32>
    tpu.vector_store %arg7[%c1_43, %c3_44, %c3_45], %49 {strides = array<i32>} : memref<2x24x128xf32, #tpu.memory_space<vmem>>, vector<1x1x16xf32>,
    %50 = vector.extract_strided_slice %6 {offsets = [0, 16], sizes = [1, 16], strides = [1, 1]} : vector<1x256xf32> to vector<1x16xf32>
    %c0_46 = arith.constant 0 : index
    %c4 = arith.constant 4 : index
    %c3_47 = arith.constant 3 : index
    %51 = vector.load %arg7[%c0_46, %c4, %c3_47] : memref<2x24x128xf32, #tpu.memory_space<vmem>>, vector<1x1x16xf32>
    %52 = vector.shape_cast %51 : vector<1x1x16xf32> to vector<1x16xf32>
    %53 = vector.shape_cast %50 : vector<1x16xf32> to vector<1x1x16xf32>
    tpu.vector_store %arg7[%c0_46, %c4, %c3_47], %53 {strides = array<i32>} : memref<2x24x128xf32, #tpu.memory_space<vmem>>, vector<1x1x16xf32>,
    %54 = vector.extract_strided_slice %9 {offsets = [0, 16], sizes = [1, 16], strides = [1, 1]} : vector<1x256xf32> to vector<1x16xf32>
    %c1_48 = arith.constant 1 : index
    %c4_49 = arith.constant 4 : index
    %c3_50 = arith.constant 3 : index
    %55 = vector.load %arg7[%c1_48, %c4_49, %c3_50] : memref<2x24x128xf32, #tpu.memory_space<vmem>>, vector<1x1x16xf32>
    %56 = vector.shape_cast %55 : vector<1x1x16xf32> to vector<1x16xf32>
    %57 = vector.shape_cast %54 : vector<1x16xf32> to vector<1x1x16xf32>
    tpu.vector_store %arg7[%c1_48, %c4_49, %c3_50], %57 {strides = array<i32>} : memref<2x24x128xf32, #tpu.memory_space<vmem>>, vector<1x1x16xf32>,
    %58 = vector.extract_strided_slice %6 {offsets = [0, 32], sizes = [1, 16], strides = [1, 1]} : vector<1x256xf32> to vector<1x16xf32>
    %c0_51 = arith.constant 0 : index
    %c5 = arith.constant 5 : index
    %c3_52 = arith.constant 3 : index
    %59 = vector.load %arg7[%c0_51, %c5, %c3_52] : memref<2x24x128xf32, #tpu.memory_space<vmem>>, vector<1x1x16xf32>
    %60 = vector.shape_cast %59 : vector<1x1x16xf32> to vector<1x16xf32>
    %61 = vector.shape_cast %58 : vector<1x16xf32> to vector<1x1x16xf32>
    tpu.vector_store %arg7[%c0_51, %c5, %c3_52], %61 {strides = array<i32>} : memref<2x24x128xf32, #tpu.memory_space<vmem>>, vector<1x1x16xf32>,
    %62 = vector.extract_strided_slice %9 {offsets = [0, 32], sizes = [1, 16], strides = [1, 1]} : vector<1x256xf32> to vector<1x16xf32>
    %c1_53 = arith.constant 1 : index
    %c5_54 = arith.constant 5 : index
    %c3_55 = arith.constant 3 : index
    %63 = vector.load %arg7[%c1_53, %c5_54, %c3_55] : memref<2x24x128xf32, #tpu.memory_space<vmem>>, vector<1x1x16xf32>
    %64 = vector.shape_cast %63 : vector<1x1x16xf32> to vector<1x16xf32>
    %65 = vector.shape_cast %62 : vector<1x16xf32> to vector<1x1x16xf32>
    tpu.vector_store %arg7[%c1_53, %c5_54, %c3_55], %65 {strides = array<i32>} : memref<2x24x128xf32, #tpu.memory_space<vmem>>, vector<1x1x16xf32>,
    %66 = vector.extract_strided_slice %6 {offsets = [0, 48], sizes = [1, 16], strides = [1, 1]} : vector<1x256xf32> to vector<1x16xf32>
    %c0_56 = arith.constant 0 : index
    %c6 = arith.constant 6 : index
    %c3_57 = arith.constant 3 : index
    %67 = vector.load %arg7[%c0_56, %c6, %c3_57] : memref<2x24x128xf32, #tpu.memory_space<vmem>>, vector<1x1x16xf32>
    %68 = vector.shape_cast %67 : vector<1x1x16xf32> to vector<1x16xf32>
    %69 = vector.shape_cast %66 : vector<1x16xf32> to vector<1x1x16xf32>
    tpu.vector_store %arg7[%c0_56, %c6, %c3_57], %69 {strides = array<i32>} : memref<2x24x128xf32, #tpu.memory_space<vmem>>, vector<1x1x16xf32>,
    %70 = vector.extract_strided_slice %9 {offsets = [0, 48], sizes = [1, 16], strides = [1, 1]} : vector<1x256xf32> to vector<1x16xf32>
    %c1_58 = arith.constant 1 : index
    %c6_59 = arith.constant 6 : index
    %c3_60 = arith.constant 3 : index
    %71 = vector.load %arg7[%c1_58, %c6_59, %c3_60] : memref<2x24x128xf32, #tpu.memory_space<vmem>>, vector<1x1x16xf32>
    %72 = vector.shape_cast %71 : vector<1x1x16xf32> to vector<1x16xf32>
    %73 = vector.shape_cast %70 : vector<1x16xf32> to vector<1x1x16xf32>
    tpu.vector_store %arg7[%c1_58, %c6_59, %c3_60], %73 {strides = array<i32>} : memref<2x24x128xf32, #tpu.memory_space<vmem>>, vector<1x1x16xf32>,
    %74 = vector.extract_strided_slice %6 {offsets = [0, 64], sizes = [1, 16], strides = [1, 1]} : vector<1x256xf32> to vector<1x16xf32>
    %c0_61 = arith.constant 0 : index
    %c7 = arith.constant 7 : index
    %c3_62 = arith.constant 3 : index
    %75 = vector.load %arg7[%c0_61, %c7, %c3_62] : memref<2x24x128xf32, #tpu.memory_space<vmem>>, vector<1x1x16xf32>
    %76 = vector.shape_cast %75 : vector<1x1x16xf32> to vector<1x16xf32>
    %77 = vector.shape_cast %74 : vector<1x16xf32> to vector<1x1x16xf32>
    tpu.vector_store %arg7[%c0_61, %c7, %c3_62], %77 {strides = array<i32>} : memref<2x24x128xf32, #tpu.memory_space<vmem>>, vector<1x1x16xf32>,
    %78 = vector.extract_strided_slice %9 {offsets = [0, 64], sizes = [1, 16], strides = [1, 1]} : vector<1x256xf32> to vector<1x16xf32>
    %c1_63 = arith.constant 1 : index
    %c7_64 = arith.constant 7 : index
    %c3_65 = arith.constant 3 : index
    %79 = vector.load %arg7[%c1_63, %c7_64, %c3_65] : memref<2x24x128xf32, #tpu.memory_space<vmem>>, vector<1x1x16xf32>
    %80 = vector.shape_cast %79 : vector<1x1x16xf32> to vector<1x16xf32>
    %81 = vector.shape_cast %78 : vector<1x16xf32> to vector<1x1x16xf32>
    tpu.vector_store %arg7[%c1_63, %c7_64, %c3_65], %81 {strides = array<i32>} : memref<2x24x128xf32, #tpu.memory_space<vmem>>, vector<1x1x16xf32>,
    %82 = vector.extract_strided_slice %6 {offsets = [0, 80], sizes = [1, 16], strides = [1, 1]} : vector<1x256xf32> to vector<1x16xf32>
    %c0_66 = arith.constant 0 : index
    %c8 = arith.constant 8 : index
    %c3_67 = arith.constant 3 : index
    %83 = vector.load %arg7[%c0_66, %c8, %c3_67] : memref<2x24x128xf32, #tpu.memory_space<vmem>>, vector<1x1x16xf32>
    %84 = vector.shape_cast %83 : vector<1x1x16xf32> to vector<1x16xf32>
    %85 = vector.shape_cast %82 : vector<1x16xf32> to vector<1x1x16xf32>
    tpu.vector_store %arg7[%c0_66, %c8, %c3_67], %85 {strides = array<i32>} : memref<2x24x128xf32, #tpu.memory_space<vmem>>, vector<1x1x16xf32>,
    %86 = vector.extract_strided_slice %9 {offsets = [0, 80], sizes = [1, 16], strides = [1, 1]} : vector<1x256xf32> to vector<1x16xf32>
    %c1_68 = arith.constant 1 : index
    %c8_69 = arith.constant 8 : index
    %c3_70 = arith.constant 3 : index
    %87 = vector.load %arg7[%c1_68, %c8_69, %c3_70] : memref<2x24x128xf32, #tpu.memory_space<vmem>>, vector<1x1x16xf32>
    %88 = vector.shape_cast %87 : vector<1x1x16xf32> to vector<1x16xf32>
    %89 = vector.shape_cast %86 : vector<1x16xf32> to vector<1x1x16xf32>
    tpu.vector_store %arg7[%c1_68, %c8_69, %c3_70], %89 {strides = array<i32>} : memref<2x24x128xf32, #tpu.memory_space<vmem>>, vector<1x1x16xf32>,
    %90 = vector.extract_strided_slice %6 {offsets = [0, 96], sizes = [1, 16], strides = [1, 1]} : vector<1x256xf32> to vector<1x16xf32>
    %c0_71 = arith.constant 0 : index
    %c9 = arith.constant 9 : index
    %c3_72 = arith.constant 3 : index
    %91 = vector.load %arg7[%c0_71, %c9, %c3_72] : memref<2x24x128xf32, #tpu.memory_space<vmem>>, vector<1x1x16xf32>
    %92 = vector.shape_cast %91 : vector<1x1x16xf32> to vector<1x16xf32>
    %93 = vector.shape_cast %90 : vector<1x16xf32> to vector<1x1x16xf32>
    tpu.vector_store %arg7[%c0_71, %c9, %c3_72], %93 {strides = array<i32>} : memref<2x24x128xf32, #tpu.memory_space<vmem>>, vector<1x1x16xf32>,
    %94 = vector.extract_strided_slice %9 {offsets = [0, 96], sizes = [1, 16], strides = [1, 1]} : vector<1x256xf32> to vector<1x16xf32>
    %c1_73 = arith.constant 1 : index
    %c9_74 = arith.constant 9 : index
    %c3_75 = arith.constant 3 : index
    %95 = vector.load %arg7[%c1_73, %c9_74, %c3_75] : memref<2x24x128xf32, #tpu.memory_space<vmem>>, vector<1x1x16xf32>
    %96 = vector.shape_cast %95 : vector<1x1x16xf32> to vector<1x16xf32>
    %97 = vector.shape_cast %94 : vector<1x16xf32> to vector<1x1x16xf32>
    tpu.vector_store %arg7[%c1_73, %c9_74, %c3_75], %97 {strides = array<i32>} : memref<2x24x128xf32, #tpu.memory_space<vmem>>, vector<1x1x16xf32>,
    %98 = vector.extract_strided_slice %6 {offsets = [0, 112], sizes = [1, 16], strides = [1, 1]} : vector<1x256xf32> to vector<1x16xf32>
    %c0_76 = arith.constant 0 : index
    %c10 = arith.constant 10 : index
    %c3_77 = arith.constant 3 : index
    %99 = vector.load %arg7[%c0_76, %c10, %c3_77] : memref<2x24x128xf32, #tpu.memory_space<vmem>>, vector<1x1x16xf32>
    %100 = vector.shape_cast %99 : vector<1x1x16xf32> to vector<1x16xf32>
    %101 = vector.shape_cast %98 : vector<1x16xf32> to vector<1x1x16xf32>
    tpu.vector_store %arg7[%c0_76, %c10, %c3_77], %101 {strides = array<i32>} : memref<2x24x128xf32, #tpu.memory_space<vmem>>, vector<1x1x16xf32>,
    %102 = vector.extract_strided_slice %9 {offsets = [0, 112], sizes = [1, 16], strides = [1, 1]} : vector<1x256xf32> to vector<1x16xf32>
    %c1_78 = arith.constant 1 : index
    %c10_79 = arith.constant 10 : index
    %c3_80 = arith.constant 3 : index
    %103 = vector.load %arg7[%c1_78, %c10_79, %c3_80] : memref<2x24x128xf32, #tpu.memory_space<vmem>>, vector<1x1x16xf32>
    %104 = vector.shape_cast %103 : vector<1x1x16xf32> to vector<1x16xf32>
    %105 = vector.shape_cast %102 : vector<1x16xf32> to vector<1x1x16xf32>
    tpu.vector_store %arg7[%c1_78, %c10_79, %c3_80], %105 {strides = array<i32>} : memref<2x24x128xf32, #tpu.memory_space<vmem>>, vector<1x1x16xf32>,
    %106 = vector.extract_strided_slice %6 {offsets = [0, 128], sizes = [1, 16], strides = [1, 1]} : vector<1x256xf32> to vector<1x16xf32>
    %c0_81 = arith.constant 0 : index
    %c11 = arith.constant 11 : index
    %c3_82 = arith.constant 3 : index
    %107 = vector.load %arg7[%c0_81, %c11, %c3_82] : memref<2x24x128xf32, #tpu.memory_space<vmem>>, vector<1x1x16xf32>
    %108 = vector.shape_cast %107 : vector<1x1x16xf32> to vector<1x16xf32>
    %109 = vector.shape_cast %106 : vector<1x16xf32> to vector<1x1x16xf32>
    tpu.vector_store %arg7[%c0_81, %c11, %c3_82], %109 {strides = array<i32>} : memref<2x24x128xf32, #tpu.memory_space<vmem>>, vector<1x1x16xf32>,
    %110 = vector.extract_strided_slice %9 {offsets = [0, 128], sizes = [1, 16], strides = [1, 1]} : vector<1x256xf32> to vector<1x16xf32>
    %c1_83 = arith.constant 1 : index
    %c11_84 = arith.constant 11 : index
    %c3_85 = arith.constant 3 : index
    %111 = vector.load %arg7[%c1_83, %c11_84, %c3_85] : memref<2x24x128xf32, #tpu.memory_space<vmem>>, vector<1x1x16xf32>
    %112 = vector.shape_cast %111 : vector<1x1x16xf32> to vector<1x16xf32>
    %113 = vector.shape_cast %110 : vector<1x16xf32> to vector<1x1x16xf32>
    tpu.vector_store %arg7[%c1_83, %c11_84, %c3_85], %113 {strides = array<i32>} : memref<2x24x128xf32, #tpu.memory_space<vmem>>, vector<1x1x16xf32>,
    %114 = vector.extract_strided_slice %6 {offsets = [0, 144], sizes = [1, 16], strides = [1, 1]} : vector<1x256xf32> to vector<1x16xf32>
    %c0_86 = arith.constant 0 : index
    %c12 = arith.constant 12 : index
    %c3_87 = arith.constant 3 : index
    %115 = vector.load %arg7[%c0_86, %c12, %c3_87] : memref<2x24x128xf32, #tpu.memory_space<vmem>>, vector<1x1x16xf32>
    %116 = vector.shape_cast %115 : vector<1x1x16xf32> to vector<1x16xf32>
    %117 = vector.shape_cast %114 : vector<1x16xf32> to vector<1x1x16xf32>
    tpu.vector_store %arg7[%c0_86, %c12, %c3_87], %117 {strides = array<i32>} : memref<2x24x128xf32, #tpu.memory_space<vmem>>, vector<1x1x16xf32>,
    %118 = vector.extract_strided_slice %9 {offsets = [0, 144], sizes = [1, 16], strides = [1, 1]} : vector<1x256xf32> to vector<1x16xf32>
    %c1_88 = arith.constant 1 : index
    %c12_89 = arith.constant 12 : index
    %c3_90 = arith.constant 3 : index
    %119 = vector.load %arg7[%c1_88, %c12_89, %c3_90] : memref<2x24x128xf32, #tpu.memory_space<vmem>>, vector<1x1x16xf32>
    %120 = vector.shape_cast %119 : vector<1x1x16xf32> to vector<1x16xf32>
    %121 = vector.shape_cast %118 : vector<1x16xf32> to vector<1x1x16xf32>
    tpu.vector_store %arg7[%c1_88, %c12_89, %c3_90], %121 {strides = array<i32>} : memref<2x24x128xf32, #tpu.memory_space<vmem>>, vector<1x1x16xf32>,
    %122 = vector.extract_strided_slice %6 {offsets = [0, 160], sizes = [1, 16], strides = [1, 1]} : vector<1x256xf32> to vector<1x16xf32>
    %c0_91 = arith.constant 0 : index
    %c13 = arith.constant 13 : index
    %c3_92 = arith.constant 3 : index
    %123 = vector.load %arg7[%c0_91, %c13, %c3_92] : memref<2x24x128xf32, #tpu.memory_space<vmem>>, vector<1x1x16xf32>
    %124 = vector.shape_cast %123 : vector<1x1x16xf32> to vector<1x16xf32>
    %125 = vector.shape_cast %122 : vector<1x16xf32> to vector<1x1x16xf32>
    tpu.vector_store %arg7[%c0_91, %c13, %c3_92], %125 {strides = array<i32>} : memref<2x24x128xf32, #tpu.memory_space<vmem>>, vector<1x1x16xf32>,
    %126 = vector.extract_strided_slice %9 {offsets = [0, 160], sizes = [1, 16], strides = [1, 1]} : vector<1x256xf32> to vector<1x16xf32>
    %c1_93 = arith.constant 1 : index
    %c13_94 = arith.constant 13 : index
    %c3_95 = arith.constant 3 : index
    %127 = vector.load %arg7[%c1_93, %c13_94, %c3_95] : memref<2x24x128xf32, #tpu.memory_space<vmem>>, vector<1x1x16xf32>
    %128 = vector.shape_cast %127 : vector<1x1x16xf32> to vector<1x16xf32>
    %129 = vector.shape_cast %126 : vector<1x16xf32> to vector<1x1x16xf32>
    tpu.vector_store %arg7[%c1_93, %c13_94, %c3_95], %129 {strides = array<i32>} : memref<2x24x128xf32, #tpu.memory_space<vmem>>, vector<1x1x16xf32>,
    %130 = vector.extract_strided_slice %6 {offsets = [0, 176], sizes = [1, 16], strides = [1, 1]} : vector<1x256xf32> to vector<1x16xf32>
    %c0_96 = arith.constant 0 : index
    %c14 = arith.constant 14 : index
    %c3_97 = arith.constant 3 : index
    %131 = vector.load %arg7[%c0_96, %c14, %c3_97] : memref<2x24x128xf32, #tpu.memory_space<vmem>>, vector<1x1x16xf32>
    %132 = vector.shape_cast %131 : vector<1x1x16xf32> to vector<1x16xf32>
    %133 = vector.shape_cast %130 : vector<1x16xf32> to vector<1x1x16xf32>
    tpu.vector_store %arg7[%c0_96, %c14, %c3_97], %133 {strides = array<i32>} : memref<2x24x128xf32, #tpu.memory_space<vmem>>, vector<1x1x16xf32>,
    %134 = vector.extract_strided_slice %9 {offsets = [0, 176], sizes = [1, 16], strides = [1, 1]} : vector<1x256xf32> to vector<1x16xf32>
    %c1_98 = arith.constant 1 : index
    %c14_99 = arith.constant 14 : index
    %c3_100 = arith.constant 3 : index
    %135 = vector.load %arg7[%c1_98, %c14_99, %c3_100] : memref<2x24x128xf32, #tpu.memory_space<vmem>>, vector<1x1x16xf32>
    %136 = vector.shape_cast %135 : vector<1x1x16xf32> to vector<1x16xf32>
    %137 = vector.shape_cast %134 : vector<1x16xf32> to vector<1x1x16xf32>
    tpu.vector_store %arg7[%c1_98, %c14_99, %c3_100], %137 {strides = array<i32>} : memref<2x24x128xf32, #tpu.memory_space<vmem>>, vector<1x1x16xf32>,
    %138 = vector.extract_strided_slice %6 {offsets = [0, 192], sizes = [1, 16], strides = [1, 1]} : vector<1x256xf32> to vector<1x16xf32>
    %c0_101 = arith.constant 0 : index
    %c15 = arith.constant 15 : index
    %c3_102 = arith.constant 3 : index
    %139 = vector.load %arg7[%c0_101, %c15, %c3_102] : memref<2x24x128xf32, #tpu.memory_space<vmem>>, vector<1x1x16xf32>
    %140 = vector.shape_cast %139 : vector<1x1x16xf32> to vector<1x16xf32>
    %141 = vector.shape_cast %138 : vector<1x16xf32> to vector<1x1x16xf32>
    tpu.vector_store %arg7[%c0_101, %c15, %c3_102], %141 {strides = array<i32>} : memref<2x24x128xf32, #tpu.memory_space<vmem>>, vector<1x1x16xf32>,
    %142 = vector.extract_strided_slice %9 {offsets = [0, 192], sizes = [1, 16], strides = [1, 1]} : vector<1x256xf32> to vector<1x16xf32>
    %c1_103 = arith.constant 1 : index
    %c15_104 = arith.constant 15 : index
    %c3_105 = arith.constant 3 : index
    %143 = vector.load %arg7[%c1_103, %c15_104, %c3_105] : memref<2x24x128xf32, #tpu.memory_space<vmem>>, vector<1x1x16xf32>
    %144 = vector.shape_cast %143 : vector<1x1x16xf32> to vector<1x16xf32>
    %145 = vector.shape_cast %142 : vector<1x16xf32> to vector<1x1x16xf32>
    tpu.vector_store %arg7[%c1_103, %c15_104, %c3_105], %145 {strides = array<i32>} : memref<2x24x128xf32, #tpu.memory_space<vmem>>, vector<1x1x16xf32>,
    %146 = vector.extract_strided_slice %6 {offsets = [0, 208], sizes = [1, 16], strides = [1, 1]} : vector<1x256xf32> to vector<1x16xf32>
    %c0_106 = arith.constant 0 : index
    %c16 = arith.constant 16 : index
    %c3_107 = arith.constant 3 : index
    %147 = vector.load %arg7[%c0_106, %c16, %c3_107] : memref<2x24x128xf32, #tpu.memory_space<vmem>>, vector<1x1x16xf32>
    %148 = vector.shape_cast %147 : vector<1x1x16xf32> to vector<1x16xf32>
    %149 = vector.shape_cast %146 : vector<1x16xf32> to vector<1x1x16xf32>
    tpu.vector_store %arg7[%c0_106, %c16, %c3_107], %149 {strides = array<i32>} : memref<2x24x128xf32, #tpu.memory_space<vmem>>, vector<1x1x16xf32>,
    %150 = vector.extract_strided_slice %9 {offsets = [0, 208], sizes = [1, 16], strides = [1, 1]} : vector<1x256xf32> to vector<1x16xf32>
    %c1_108 = arith.constant 1 : index
    %c16_109 = arith.constant 16 : index
    %c3_110 = arith.constant 3 : index
    %151 = vector.load %arg7[%c1_108, %c16_109, %c3_110] : memref<2x24x128xf32, #tpu.memory_space<vmem>>, vector<1x1x16xf32>
    %152 = vector.shape_cast %151 : vector<1x1x16xf32> to vector<1x16xf32>
    %153 = vector.shape_cast %150 : vector<1x16xf32> to vector<1x1x16xf32>
    tpu.vector_store %arg7[%c1_108, %c16_109, %c3_110], %153 {strides = array<i32>} : memref<2x24x128xf32, #tpu.memory_space<vmem>>, vector<1x1x16xf32>,
    %154 = vector.extract_strided_slice %6 {offsets = [0, 224], sizes = [1, 16], strides = [1, 1]} : vector<1x256xf32> to vector<1x16xf32>
    %c0_111 = arith.constant 0 : index
    %c17 = arith.constant 17 : index
    %c3_112 = arith.constant 3 : index
    %155 = vector.load %arg7[%c0_111, %c17, %c3_112] : memref<2x24x128xf32, #tpu.memory_space<vmem>>, vector<1x1x16xf32>
    %156 = vector.shape_cast %155 : vector<1x1x16xf32> to vector<1x16xf32>
    %157 = vector.shape_cast %154 : vector<1x16xf32> to vector<1x1x16xf32>
    tpu.vector_store %arg7[%c0_111, %c17, %c3_112], %157 {strides = array<i32>} : memref<2x24x128xf32, #tpu.memory_space<vmem>>, vector<1x1x16xf32>,
    %158 = vector.extract_strided_slice %9 {offsets = [0, 224], sizes = [1, 16], strides = [1, 1]} : vector<1x256xf32> to vector<1x16xf32>
    %c1_113 = arith.constant 1 : index
    %c17_114 = arith.constant 17 : index
    %c3_115 = arith.constant 3 : index
    %159 = vector.load %arg7[%c1_113, %c17_114, %c3_115] : memref<2x24x128xf32, #tpu.memory_space<vmem>>, vector<1x1x16xf32>
    %160 = vector.shape_cast %159 : vector<1x1x16xf32> to vector<1x16xf32>
    %161 = vector.shape_cast %158 : vector<1x16xf32> to vector<1x1x16xf32>
    tpu.vector_store %arg7[%c1_113, %c17_114, %c3_115], %161 {strides = array<i32>} : memref<2x24x128xf32, #tpu.memory_space<vmem>>, vector<1x1x16xf32>,
    %162 = vector.extract_strided_slice %6 {offsets = [0, 240], sizes = [1, 16], strides = [1, 1]} : vector<1x256xf32> to vector<1x16xf32>
    %c0_116 = arith.constant 0 : index
    %c18 = arith.constant 18 : index
    %c3_117 = arith.constant 3 : index
    %163 = vector.load %arg7[%c0_116, %c18, %c3_117] : memref<2x24x128xf32, #tpu.memory_space<vmem>>, vector<1x1x16xf32>
    %164 = vector.shape_cast %163 : vector<1x1x16xf32> to vector<1x16xf32>
    %165 = vector.shape_cast %162 : vector<1x16xf32> to vector<1x1x16xf32>
    tpu.vector_store %arg7[%c0_116, %c18, %c3_117], %165 {strides = array<i32>} : memref<2x24x128xf32, #tpu.memory_space<vmem>>, vector<1x1x16xf32>,
    %166 = vector.extract_strided_slice %9 {offsets = [0, 240], sizes = [1, 16], strides = [1, 1]} : vector<1x256xf32> to vector<1x16xf32>
    %c1_118 = arith.constant 1 : index
    %c18_119 = arith.constant 18 : index
    %c3_120 = arith.constant 3 : index
    %167 = vector.load %arg7[%c1_118, %c18_119, %c3_120] : memref<2x24x128xf32, #tpu.memory_space<vmem>>, vector<1x1x16xf32>
    %168 = vector.shape_cast %167 : vector<1x1x16xf32> to vector<1x16xf32>
    %169 = vector.shape_cast %166 : vector<1x16xf32> to vector<1x1x16xf32>
    tpu.vector_store %arg7[%c1_118, %c18_119, %c3_120], %169 {strides = array<i32>} : memref<2x24x128xf32, #tpu.memory_space<vmem>>, vector<1x1x16xf32>,
    %cst_121 = arith.constant 0.000000e+00 : f32
    %170 = vector.broadcast %cst_121 : f32 to vector<16x16xf32>
    %c0_122 = arith.constant 0 : index
    %c0_123 = arith.constant 0 : index
    %c0_124 = arith.constant 0 : index
    %171 = vector.load %arg7[%c0_122, %c0_123, %c0_124] : memref<2x24x128xf32, #tpu.memory_space<vmem>>, vector<1x22x16xf32>
    %172 = vector.shape_cast %171 : vector<1x22x16xf32> to vector<22x16xf32>
    %c1_125 = arith.constant 1 : index
    %c0_126 = arith.constant 0 : index
    %c0_127 = arith.constant 0 : index
    %173 = vector.load %arg7[%c1_125, %c0_126, %c0_127] : memref<2x24x128xf32, #tpu.memory_space<vmem>>, vector<1x22x16xf32>
    %174 = vector.shape_cast %173 : vector<1x22x16xf32> to vector<22x16xf32>
    %c0_128 = arith.constant 0 : index
    %175 = memref.load %arg3[%c0_128] : memref<98xf32, #tpu.memory_space<smem>>
    %176 = vector.extract_strided_slice %172 {offsets = [0, 0], sizes = [16, 16], strides = [1, 1]} : vector<22x16xf32> to vector<16x16xf32>
    %177 = vector.broadcast %175 : f32 to vector<16x16xf32>
    %178 = arith.mulf %177, %176 : vector<16x16xf32>
    %179 = arith.addf %170, %178 : vector<16x16xf32>
    %c49 = arith.constant 49 : index
    %180 = memref.load %arg3[%c49] : memref<98xf32, #tpu.memory_space<smem>>
    %181 = vector.extract_strided_slice %174 {offsets = [0, 0], sizes = [16, 16], strides = [1, 1]} : vector<22x16xf32> to vector<16x16xf32>
    %182 = vector.broadcast %180 : f32 to vector<16x16xf32>
    %183 = arith.mulf %182, %181 : vector<16x16xf32>
    %184 = arith.addf %179, %183 : vector<16x16xf32>
    %c7_129 = arith.constant 7 : index
    %185 = memref.load %arg3[%c7_129] : memref<98xf32, #tpu.memory_space<smem>>
    %186 = vector.extract_strided_slice %172 {offsets = [1, 0], sizes = [16, 16], strides = [1, 1]} : vector<22x16xf32> to vector<16x16xf32>
    %187 = vector.broadcast %185 : f32 to vector<16x16xf32>
    %188 = arith.mulf %187, %186 : vector<16x16xf32>
    %189 = arith.addf %184, %188 : vector<16x16xf32>
    %c56 = arith.constant 56 : index
    %190 = memref.load %arg3[%c56] : memref<98xf32, #tpu.memory_space<smem>>
    %191 = vector.extract_strided_slice %174 {offsets = [1, 0], sizes = [16, 16], strides = [1, 1]} : vector<22x16xf32> to vector<16x16xf32>
    %192 = vector.broadcast %190 : f32 to vector<16x16xf32>
    %193 = arith.mulf %192, %191 : vector<16x16xf32>
    %194 = arith.addf %189, %193 : vector<16x16xf32>
    %c14_130 = arith.constant 14 : index
    %195 = memref.load %arg3[%c14_130] : memref<98xf32, #tpu.memory_space<smem>>
    %196 = vector.extract_strided_slice %172 {offsets = [2, 0], sizes = [16, 16], strides = [1, 1]} : vector<22x16xf32> to vector<16x16xf32>
    %197 = vector.broadcast %195 : f32 to vector<16x16xf32>
    %198 = arith.mulf %197, %196 : vector<16x16xf32>
    %199 = arith.addf %194, %198 : vector<16x16xf32>
    %c63 = arith.constant 63 : index
    %200 = memref.load %arg3[%c63] : memref<98xf32, #tpu.memory_space<smem>>
    %201 = vector.extract_strided_slice %174 {offsets = [2, 0], sizes = [16, 16], strides = [1, 1]} : vector<22x16xf32> to vector<16x16xf32>
    %202 = vector.broadcast %200 : f32 to vector<16x16xf32>
    %203 = arith.mulf %202, %201 : vector<16x16xf32>
    %204 = arith.addf %199, %203 : vector<16x16xf32>
    %c21 = arith.constant 21 : index
    %205 = memref.load %arg3[%c21] : memref<98xf32, #tpu.memory_space<smem>>
    %206 = vector.extract_strided_slice %172 {offsets = [3, 0], sizes = [16, 16], strides = [1, 1]} : vector<22x16xf32> to vector<16x16xf32>
    %207 = vector.broadcast %205 : f32 to vector<16x16xf32>
    %208 = arith.mulf %207, %206 : vector<16x16xf32>
    %209 = arith.addf %204, %208 : vector<16x16xf32>
    %c70 = arith.constant 70 : index
    %210 = memref.load %arg3[%c70] : memref<98xf32, #tpu.memory_space<smem>>
    %211 = vector.extract_strided_slice %174 {offsets = [3, 0], sizes = [16, 16], strides = [1, 1]} : vector<22x16xf32> to vector<16x16xf32>
    %212 = vector.broadcast %210 : f32 to vector<16x16xf32>
    %213 = arith.mulf %212, %211 : vector<16x16xf32>
    %214 = arith.addf %209, %213 : vector<16x16xf32>
    %c28 = arith.constant 28 : index
    %215 = memref.load %arg3[%c28] : memref<98xf32, #tpu.memory_space<smem>>
    %216 = vector.extract_strided_slice %172 {offsets = [4, 0], sizes = [16, 16], strides = [1, 1]} : vector<22x16xf32> to vector<16x16xf32>
    %217 = vector.broadcast %215 : f32 to vector<16x16xf32>
    %218 = arith.mulf %217, %216 : vector<16x16xf32>
    %219 = arith.addf %214, %218 : vector<16x16xf32>
    %c77 = arith.constant 77 : index
    %220 = memref.load %arg3[%c77] : memref<98xf32, #tpu.memory_space<smem>>
    %221 = vector.extract_strided_slice %174 {offsets = [4, 0], sizes = [16, 16], strides = [1, 1]} : vector<22x16xf32> to vector<16x16xf32>
    %222 = vector.broadcast %220 : f32 to vector<16x16xf32>
    %223 = arith.mulf %222, %221 : vector<16x16xf32>
    %224 = arith.addf %219, %223 : vector<16x16xf32>
    %c35 = arith.constant 35 : index
    %225 = memref.load %arg3[%c35] : memref<98xf32, #tpu.memory_space<smem>>
    %226 = vector.extract_strided_slice %172 {offsets = [5, 0], sizes = [16, 16], strides = [1, 1]} : vector<22x16xf32> to vector<16x16xf32>
    %227 = vector.broadcast %225 : f32 to vector<16x16xf32>
    %228 = arith.mulf %227, %226 : vector<16x16xf32>
    %229 = arith.addf %224, %228 : vector<16x16xf32>
    %c84 = arith.constant 84 : index
    %230 = memref.load %arg3[%c84] : memref<98xf32, #tpu.memory_space<smem>>
    %231 = vector.extract_strided_slice %174 {offsets = [5, 0], sizes = [16, 16], strides = [1, 1]} : vector<22x16xf32> to vector<16x16xf32>
    %232 = vector.broadcast %230 : f32 to vector<16x16xf32>
    %233 = arith.mulf %232, %231 : vector<16x16xf32>
    %234 = arith.addf %229, %233 : vector<16x16xf32>
    %c42 = arith.constant 42 : index
    %235 = memref.load %arg3[%c42] : memref<98xf32, #tpu.memory_space<smem>>
    %236 = vector.extract_strided_slice %172 {offsets = [6, 0], sizes = [16, 16], strides = [1, 1]} : vector<22x16xf32> to vector<16x16xf32>
    %237 = vector.broadcast %235 : f32 to vector<16x16xf32>
    %238 = arith.mulf %237, %236 : vector<16x16xf32>
    %239 = arith.addf %234, %238 : vector<16x16xf32>
    %c91 = arith.constant 91 : index
    %240 = memref.load %arg3[%c91] : memref<98xf32, #tpu.memory_space<smem>>
    %241 = vector.extract_strided_slice %174 {offsets = [6, 0], sizes = [16, 16], strides = [1, 1]} : vector<22x16xf32> to vector<16x16xf32>
    %242 = vector.broadcast %240 : f32 to vector<16x16xf32>
    %243 = arith.mulf %242, %241 : vector<16x16xf32>
    %244 = arith.addf %239, %243 : vector<16x16xf32>
    %c0_131 = arith.constant 0 : index
    %c0_132 = arith.constant 0 : index
    %c1_133 = arith.constant 1 : index
    %245 = vector.load %arg7[%c0_131, %c0_132, %c1_133] : memref<2x24x128xf32, #tpu.memory_space<vmem>>, vector<1x22x16xf32>
    %246 = vector.shape_cast %245 : vector<1x22x16xf32> to vector<22x16xf32>
    %c1_134 = arith.constant 1 : index
    %c0_135 = arith.constant 0 : index
    %c1_136 = arith.constant 1 : index
    %247 = vector.load %arg7[%c1_134, %c0_135, %c1_136] : memref<2x24x128xf32, #tpu.memory_space<vmem>>, vector<1x22x16xf32>
    %248 = vector.shape_cast %247 : vector<1x22x16xf32> to vector<22x16xf32>
    %c1_137 = arith.constant 1 : index
    %249 = memref.load %arg3[%c1_137] : memref<98xf32, #tpu.memory_space<smem>>
    %250 = vector.extract_strided_slice %246 {offsets = [0, 0], sizes = [16, 16], strides = [1, 1]} : vector<22x16xf32> to vector<16x16xf32>
    %251 = vector.broadcast %249 : f32 to vector<16x16xf32>
    %252 = arith.mulf %251, %250 : vector<16x16xf32>
    %253 = arith.addf %244, %252 : vector<16x16xf32>
    %c50 = arith.constant 50 : index
    %254 = memref.load %arg3[%c50] : memref<98xf32, #tpu.memory_space<smem>>
    %255 = vector.extract_strided_slice %248 {offsets = [0, 0], sizes = [16, 16], strides = [1, 1]} : vector<22x16xf32> to vector<16x16xf32>
    %256 = vector.broadcast %254 : f32 to vector<16x16xf32>
    %257 = arith.mulf %256, %255 : vector<16x16xf32>
    %258 = arith.addf %253, %257 : vector<16x16xf32>
    %c8_138 = arith.constant 8 : index
    %259 = memref.load %arg3[%c8_138] : memref<98xf32, #tpu.memory_space<smem>>
    %260 = vector.extract_strided_slice %246 {offsets = [1, 0], sizes = [16, 16], strides = [1, 1]} : vector<22x16xf32> to vector<16x16xf32>
    %261 = vector.broadcast %259 : f32 to vector<16x16xf32>
    %262 = arith.mulf %261, %260 : vector<16x16xf32>
    %263 = arith.addf %258, %262 : vector<16x16xf32>
    %c57 = arith.constant 57 : index
    %264 = memref.load %arg3[%c57] : memref<98xf32, #tpu.memory_space<smem>>
    %265 = vector.extract_strided_slice %248 {offsets = [1, 0], sizes = [16, 16], strides = [1, 1]} : vector<22x16xf32> to vector<16x16xf32>
    %266 = vector.broadcast %264 : f32 to vector<16x16xf32>
    %267 = arith.mulf %266, %265 : vector<16x16xf32>
    %268 = arith.addf %263, %267 : vector<16x16xf32>
    %c15_139 = arith.constant 15 : index
    %269 = memref.load %arg3[%c15_139] : memref<98xf32, #tpu.memory_space<smem>>
    %270 = vector.extract_strided_slice %246 {offsets = [2, 0], sizes = [16, 16], strides = [1, 1]} : vector<22x16xf32> to vector<16x16xf32>
    %271 = vector.broadcast %269 : f32 to vector<16x16xf32>
    %272 = arith.mulf %271, %270 : vector<16x16xf32>
    %273 = arith.addf %268, %272 : vector<16x16xf32>
    %c64 = arith.constant 64 : index
    %274 = memref.load %arg3[%c64] : memref<98xf32, #tpu.memory_space<smem>>
    %275 = vector.extract_strided_slice %248 {offsets = [2, 0], sizes = [16, 16], strides = [1, 1]} : vector<22x16xf32> to vector<16x16xf32>
    %276 = vector.broadcast %274 : f32 to vector<16x16xf32>
    %277 = arith.mulf %276, %275 : vector<16x16xf32>
    %278 = arith.addf %273, %277 : vector<16x16xf32>
    %c22 = arith.constant 22 : index
    %279 = memref.load %arg3[%c22] : memref<98xf32, #tpu.memory_space<smem>>
    %280 = vector.extract_strided_slice %246 {offsets = [3, 0], sizes = [16, 16], strides = [1, 1]} : vector<22x16xf32> to vector<16x16xf32>
    %281 = vector.broadcast %279 : f32 to vector<16x16xf32>
    %282 = arith.mulf %281, %280 : vector<16x16xf32>
    %283 = arith.addf %278, %282 : vector<16x16xf32>
    %c71 = arith.constant 71 : index
    %284 = memref.load %arg3[%c71] : memref<98xf32, #tpu.memory_space<smem>>
    %285 = vector.extract_strided_slice %248 {offsets = [3, 0], sizes = [16, 16], strides = [1, 1]} : vector<22x16xf32> to vector<16x16xf32>
    %286 = vector.broadcast %284 : f32 to vector<16x16xf32>
    %287 = arith.mulf %286, %285 : vector<16x16xf32>
    %288 = arith.addf %283, %287 : vector<16x16xf32>
    %c29 = arith.constant 29 : index
    %289 = memref.load %arg3[%c29] : memref<98xf32, #tpu.memory_space<smem>>
    %290 = vector.extract_strided_slice %246 {offsets = [4, 0], sizes = [16, 16], strides = [1, 1]} : vector<22x16xf32> to vector<16x16xf32>
    %291 = vector.broadcast %289 : f32 to vector<16x16xf32>
    %292 = arith.mulf %291, %290 : vector<16x16xf32>
    %293 = arith.addf %288, %292 : vector<16x16xf32>
    %c78 = arith.constant 78 : index
    %294 = memref.load %arg3[%c78] : memref<98xf32, #tpu.memory_space<smem>>
    %295 = vector.extract_strided_slice %248 {offsets = [4, 0], sizes = [16, 16], strides = [1, 1]} : vector<22x16xf32> to vector<16x16xf32>
    %296 = vector.broadcast %294 : f32 to vector<16x16xf32>
    %297 = arith.mulf %296, %295 : vector<16x16xf32>
    %298 = arith.addf %293, %297 : vector<16x16xf32>
    %c36 = arith.constant 36 : index
    %299 = memref.load %arg3[%c36] : memref<98xf32, #tpu.memory_space<smem>>
    %300 = vector.extract_strided_slice %246 {offsets = [5, 0], sizes = [16, 16], strides = [1, 1]} : vector<22x16xf32> to vector<16x16xf32>
    %301 = vector.broadcast %299 : f32 to vector<16x16xf32>
    %302 = arith.mulf %301, %300 : vector<16x16xf32>
    %303 = arith.addf %298, %302 : vector<16x16xf32>
    %c85 = arith.constant 85 : index
    %304 = memref.load %arg3[%c85] : memref<98xf32, #tpu.memory_space<smem>>
    %305 = vector.extract_strided_slice %248 {offsets = [5, 0], sizes = [16, 16], strides = [1, 1]} : vector<22x16xf32> to vector<16x16xf32>
    %306 = vector.broadcast %304 : f32 to vector<16x16xf32>
    %307 = arith.mulf %306, %305 : vector<16x16xf32>
    %308 = arith.addf %303, %307 : vector<16x16xf32>
    %c43 = arith.constant 43 : index
    %309 = memref.load %arg3[%c43] : memref<98xf32, #tpu.memory_space<smem>>
    %310 = vector.extract_strided_slice %246 {offsets = [6, 0], sizes = [16, 16], strides = [1, 1]} : vector<22x16xf32> to vector<16x16xf32>
    %311 = vector.broadcast %309 : f32 to vector<16x16xf32>
    %312 = arith.mulf %311, %310 : vector<16x16xf32>
    %313 = arith.addf %308, %312 : vector<16x16xf32>
    %c92 = arith.constant 92 : index
    %314 = memref.load %arg3[%c92] : memref<98xf32, #tpu.memory_space<smem>>
    %315 = vector.extract_strided_slice %248 {offsets = [6, 0], sizes = [16, 16], strides = [1, 1]} : vector<22x16xf32> to vector<16x16xf32>
    %316 = vector.broadcast %314 : f32 to vector<16x16xf32>
    %317 = arith.mulf %316, %315 : vector<16x16xf32>
    %318 = arith.addf %313, %317 : vector<16x16xf32>
    %c0_140 = arith.constant 0 : index
    %c0_141 = arith.constant 0 : index
    %c2 = arith.constant 2 : index
    %319 = vector.load %arg7[%c0_140, %c0_141, %c2] : memref<2x24x128xf32, #tpu.memory_space<vmem>>, vector<1x22x16xf32>
    %320 = vector.shape_cast %319 : vector<1x22x16xf32> to vector<22x16xf32>
    %c1_142 = arith.constant 1 : index
    %c0_143 = arith.constant 0 : index
    %c2_144 = arith.constant 2 : index
    %321 = vector.load %arg7[%c1_142, %c0_143, %c2_144] : memref<2x24x128xf32, #tpu.memory_space<vmem>>, vector<1x22x16xf32>
    %322 = vector.shape_cast %321 : vector<1x22x16xf32> to vector<22x16xf32>
    %c2_145 = arith.constant 2 : index
    %323 = memref.load %arg3[%c2_145] : memref<98xf32, #tpu.memory_space<smem>>
    %324 = vector.extract_strided_slice %320 {offsets = [0, 0], sizes = [16, 16], strides = [1, 1]} : vector<22x16xf32> to vector<16x16xf32>
    %325 = vector.broadcast %323 : f32 to vector<16x16xf32>
    %326 = arith.mulf %325, %324 : vector<16x16xf32>
    %327 = arith.addf %318, %326 : vector<16x16xf32>
    %c51 = arith.constant 51 : index
    %328 = memref.load %arg3[%c51] : memref<98xf32, #tpu.memory_space<smem>>
    %329 = vector.extract_strided_slice %322 {offsets = [0, 0], sizes = [16, 16], strides = [1, 1]} : vector<22x16xf32> to vector<16x16xf32>
    %330 = vector.broadcast %328 : f32 to vector<16x16xf32>
    %331 = arith.mulf %330, %329 : vector<16x16xf32>
    %332 = arith.addf %327, %331 : vector<16x16xf32>
    %c9_146 = arith.constant 9 : index
    %333 = memref.load %arg3[%c9_146] : memref<98xf32, #tpu.memory_space<smem>>
    %334 = vector.extract_strided_slice %320 {offsets = [1, 0], sizes = [16, 16], strides = [1, 1]} : vector<22x16xf32> to vector<16x16xf32>
    %335 = vector.broadcast %333 : f32 to vector<16x16xf32>
    %336 = arith.mulf %335, %334 : vector<16x16xf32>
    %337 = arith.addf %332, %336 : vector<16x16xf32>
    %c58 = arith.constant 58 : index
    %338 = memref.load %arg3[%c58] : memref<98xf32, #tpu.memory_space<smem>>
    %339 = vector.extract_strided_slice %322 {offsets = [1, 0], sizes = [16, 16], strides = [1, 1]} : vector<22x16xf32> to vector<16x16xf32>
    %340 = vector.broadcast %338 : f32 to vector<16x16xf32>
    %341 = arith.mulf %340, %339 : vector<16x16xf32>
    %342 = arith.addf %337, %341 : vector<16x16xf32>
    %c16_147 = arith.constant 16 : index
    %343 = memref.load %arg3[%c16_147] : memref<98xf32, #tpu.memory_space<smem>>
    %344 = vector.extract_strided_slice %320 {offsets = [2, 0], sizes = [16, 16], strides = [1, 1]} : vector<22x16xf32> to vector<16x16xf32>
    %345 = vector.broadcast %343 : f32 to vector<16x16xf32>
    %346 = arith.mulf %345, %344 : vector<16x16xf32>
    %347 = arith.addf %342, %346 : vector<16x16xf32>
    %c65 = arith.constant 65 : index
    %348 = memref.load %arg3[%c65] : memref<98xf32, #tpu.memory_space<smem>>
    %349 = vector.extract_strided_slice %322 {offsets = [2, 0], sizes = [16, 16], strides = [1, 1]} : vector<22x16xf32> to vector<16x16xf32>
    %350 = vector.broadcast %348 : f32 to vector<16x16xf32>
    %351 = arith.mulf %350, %349 : vector<16x16xf32>
    %352 = arith.addf %347, %351 : vector<16x16xf32>
    %c23 = arith.constant 23 : index
    %353 = memref.load %arg3[%c23] : memref<98xf32, #tpu.memory_space<smem>>
    %354 = vector.extract_strided_slice %320 {offsets = [3, 0], sizes = [16, 16], strides = [1, 1]} : vector<22x16xf32> to vector<16x16xf32>
    %355 = vector.broadcast %353 : f32 to vector<16x16xf32>
    %356 = arith.mulf %355, %354 : vector<16x16xf32>
    %357 = arith.addf %352, %356 : vector<16x16xf32>
    %c72 = arith.constant 72 : index
    %358 = memref.load %arg3[%c72] : memref<98xf32, #tpu.memory_space<smem>>
    %359 = vector.extract_strided_slice %322 {offsets = [3, 0], sizes = [16, 16], strides = [1, 1]} : vector<22x16xf32> to vector<16x16xf32>
    %360 = vector.broadcast %358 : f32 to vector<16x16xf32>
    %361 = arith.mulf %360, %359 : vector<16x16xf32>
    %362 = arith.addf %357, %361 : vector<16x16xf32>
    %c30 = arith.constant 30 : index
    %363 = memref.load %arg3[%c30] : memref<98xf32, #tpu.memory_space<smem>>
    %364 = vector.extract_strided_slice %320 {offsets = [4, 0], sizes = [16, 16], strides = [1, 1]} : vector<22x16xf32> to vector<16x16xf32>
    %365 = vector.broadcast %363 : f32 to vector<16x16xf32>
    %366 = arith.mulf %365, %364 : vector<16x16xf32>
    %367 = arith.addf %362, %366 : vector<16x16xf32>
    %c79 = arith.constant 79 : index
    %368 = memref.load %arg3[%c79] : memref<98xf32, #tpu.memory_space<smem>>
    %369 = vector.extract_strided_slice %322 {offsets = [4, 0], sizes = [16, 16], strides = [1, 1]} : vector<22x16xf32> to vector<16x16xf32>
    %370 = vector.broadcast %368 : f32 to vector<16x16xf32>
    %371 = arith.mulf %370, %369 : vector<16x16xf32>
    %372 = arith.addf %367, %371 : vector<16x16xf32>
    %c37 = arith.constant 37 : index
    %373 = memref.load %arg3[%c37] : memref<98xf32, #tpu.memory_space<smem>>
    %374 = vector.extract_strided_slice %320 {offsets = [5, 0], sizes = [16, 16], strides = [1, 1]} : vector<22x16xf32> to vector<16x16xf32>
    %375 = vector.broadcast %373 : f32 to vector<16x16xf32>
    %376 = arith.mulf %375, %374 : vector<16x16xf32>
    %377 = arith.addf %372, %376 : vector<16x16xf32>
    %c86 = arith.constant 86 : index
    %378 = memref.load %arg3[%c86] : memref<98xf32, #tpu.memory_space<smem>>
    %379 = vector.extract_strided_slice %322 {offsets = [5, 0], sizes = [16, 16], strides = [1, 1]} : vector<22x16xf32> to vector<16x16xf32>
    %380 = vector.broadcast %378 : f32 to vector<16x16xf32>
    %381 = arith.mulf %380, %379 : vector<16x16xf32>
    %382 = arith.addf %377, %381 : vector<16x16xf32>
    %c44 = arith.constant 44 : index
    %383 = memref.load %arg3[%c44] : memref<98xf32, #tpu.memory_space<smem>>
    %384 = vector.extract_strided_slice %320 {offsets = [6, 0], sizes = [16, 16], strides = [1, 1]} : vector<22x16xf32> to vector<16x16xf32>
    %385 = vector.broadcast %383 : f32 to vector<16x16xf32>
    %386 = arith.mulf %385, %384 : vector<16x16xf32>
    %387 = arith.addf %382, %386 : vector<16x16xf32>
    %c93 = arith.constant 93 : index
    %388 = memref.load %arg3[%c93] : memref<98xf32, #tpu.memory_space<smem>>
    %389 = vector.extract_strided_slice %322 {offsets = [6, 0], sizes = [16, 16], strides = [1, 1]} : vector<22x16xf32> to vector<16x16xf32>
    %390 = vector.broadcast %388 : f32 to vector<16x16xf32>
    %391 = arith.mulf %390, %389 : vector<16x16xf32>
    %392 = arith.addf %387, %391 : vector<16x16xf32>
    %c0_148 = arith.constant 0 : index
    %c0_149 = arith.constant 0 : index
    %c3_150 = arith.constant 3 : index
    %393 = vector.load %arg7[%c0_148, %c0_149, %c3_150] : memref<2x24x128xf32, #tpu.memory_space<vmem>>, vector<1x22x16xf32>
    %394 = vector.shape_cast %393 : vector<1x22x16xf32> to vector<22x16xf32>
    %c1_151 = arith.constant 1 : index
    %c0_152 = arith.constant 0 : index
    %c3_153 = arith.constant 3 : index
    %395 = vector.load %arg7[%c1_151, %c0_152, %c3_153] : memref<2x24x128xf32, #tpu.memory_space<vmem>>, vector<1x22x16xf32>
    %396 = vector.shape_cast %395 : vector<1x22x16xf32> to vector<22x16xf32>
    %c3_154 = arith.constant 3 : index
    %397 = memref.load %arg3[%c3_154] : memref<98xf32, #tpu.memory_space<smem>>
    %398 = vector.extract_strided_slice %394 {offsets = [0, 0], sizes = [16, 16], strides = [1, 1]} : vector<22x16xf32> to vector<16x16xf32>
    %399 = vector.broadcast %397 : f32 to vector<16x16xf32>
    %400 = arith.mulf %399, %398 : vector<16x16xf32>
    %401 = arith.addf %392, %400 : vector<16x16xf32>
    %c52 = arith.constant 52 : index
    %402 = memref.load %arg3[%c52] : memref<98xf32, #tpu.memory_space<smem>>
    %403 = vector.extract_strided_slice %396 {offsets = [0, 0], sizes = [16, 16], strides = [1, 1]} : vector<22x16xf32> to vector<16x16xf32>
    %404 = vector.broadcast %402 : f32 to vector<16x16xf32>
    %405 = arith.mulf %404, %403 : vector<16x16xf32>
    %406 = arith.addf %401, %405 : vector<16x16xf32>
    %c10_155 = arith.constant 10 : index
    %407 = memref.load %arg3[%c10_155] : memref<98xf32, #tpu.memory_space<smem>>
    %408 = vector.extract_strided_slice %394 {offsets = [1, 0], sizes = [16, 16], strides = [1, 1]} : vector<22x16xf32> to vector<16x16xf32>
    %409 = vector.broadcast %407 : f32 to vector<16x16xf32>
    %410 = arith.mulf %409, %408 : vector<16x16xf32>
    %411 = arith.addf %406, %410 : vector<16x16xf32>
    %c59 = arith.constant 59 : index
    %412 = memref.load %arg3[%c59] : memref<98xf32, #tpu.memory_space<smem>>
    %413 = vector.extract_strided_slice %396 {offsets = [1, 0], sizes = [16, 16], strides = [1, 1]} : vector<22x16xf32> to vector<16x16xf32>
    %414 = vector.broadcast %412 : f32 to vector<16x16xf32>
    %415 = arith.mulf %414, %413 : vector<16x16xf32>
    %416 = arith.addf %411, %415 : vector<16x16xf32>
    %c17_156 = arith.constant 17 : index
    %417 = memref.load %arg3[%c17_156] : memref<98xf32, #tpu.memory_space<smem>>
    %418 = vector.extract_strided_slice %394 {offsets = [2, 0], sizes = [16, 16], strides = [1, 1]} : vector<22x16xf32> to vector<16x16xf32>
    %419 = vector.broadcast %417 : f32 to vector<16x16xf32>
    %420 = arith.mulf %419, %418 : vector<16x16xf32>
    %421 = arith.addf %416, %420 : vector<16x16xf32>
    %c66 = arith.constant 66 : index
    %422 = memref.load %arg3[%c66] : memref<98xf32, #tpu.memory_space<smem>>
    %423 = vector.extract_strided_slice %396 {offsets = [2, 0], sizes = [16, 16], strides = [1, 1]} : vector<22x16xf32> to vector<16x16xf32>
    %424 = vector.broadcast %422 : f32 to vector<16x16xf32>
    %425 = arith.mulf %424, %423 : vector<16x16xf32>
    %426 = arith.addf %421, %425 : vector<16x16xf32>
    %c24 = arith.constant 24 : index
    %427 = memref.load %arg3[%c24] : memref<98xf32, #tpu.memory_space<smem>>
    %428 = vector.extract_strided_slice %394 {offsets = [3, 0], sizes = [16, 16], strides = [1, 1]} : vector<22x16xf32> to vector<16x16xf32>
    %429 = vector.broadcast %427 : f32 to vector<16x16xf32>
    %430 = arith.mulf %429, %428 : vector<16x16xf32>
    %431 = arith.addf %426, %430 : vector<16x16xf32>
    %c73 = arith.constant 73 : index
    %432 = memref.load %arg3[%c73] : memref<98xf32, #tpu.memory_space<smem>>
    %433 = vector.extract_strided_slice %396 {offsets = [3, 0], sizes = [16, 16], strides = [1, 1]} : vector<22x16xf32> to vector<16x16xf32>
    %434 = vector.broadcast %432 : f32 to vector<16x16xf32>
    %435 = arith.mulf %434, %433 : vector<16x16xf32>
    %436 = arith.addf %431, %435 : vector<16x16xf32>
    %c31 = arith.constant 31 : index
    %437 = memref.load %arg3[%c31] : memref<98xf32, #tpu.memory_space<smem>>
    %438 = vector.extract_strided_slice %394 {offsets = [4, 0], sizes = [16, 16], strides = [1, 1]} : vector<22x16xf32> to vector<16x16xf32>
    %439 = vector.broadcast %437 : f32 to vector<16x16xf32>
    %440 = arith.mulf %439, %438 : vector<16x16xf32>
    %441 = arith.addf %436, %440 : vector<16x16xf32>
    %c80 = arith.constant 80 : index
    %442 = memref.load %arg3[%c80] : memref<98xf32, #tpu.memory_space<smem>>
    %443 = vector.extract_strided_slice %396 {offsets = [4, 0], sizes = [16, 16], strides = [1, 1]} : vector<22x16xf32> to vector<16x16xf32>
    %444 = vector.broadcast %442 : f32 to vector<16x16xf32>
    %445 = arith.mulf %444, %443 : vector<16x16xf32>
    %446 = arith.addf %441, %445 : vector<16x16xf32>
    %c38 = arith.constant 38 : index
    %447 = memref.load %arg3[%c38] : memref<98xf32, #tpu.memory_space<smem>>
    %448 = vector.extract_strided_slice %394 {offsets = [5, 0], sizes = [16, 16], strides = [1, 1]} : vector<22x16xf32> to vector<16x16xf32>
    %449 = vector.broadcast %447 : f32 to vector<16x16xf32>
    %450 = arith.mulf %449, %448 : vector<16x16xf32>
    %451 = arith.addf %446, %450 : vector<16x16xf32>
    %c87 = arith.constant 87 : index
    %452 = memref.load %arg3[%c87] : memref<98xf32, #tpu.memory_space<smem>>
    %453 = vector.extract_strided_slice %396 {offsets = [5, 0], sizes = [16, 16], strides = [1, 1]} : vector<22x16xf32> to vector<16x16xf32>
    %454 = vector.broadcast %452 : f32 to vector<16x16xf32>
    %455 = arith.mulf %454, %453 : vector<16x16xf32>
    %456 = arith.addf %451, %455 : vector<16x16xf32>
    %c45 = arith.constant 45 : index
    %457 = memref.load %arg3[%c45] : memref<98xf32, #tpu.memory_space<smem>>
    %458 = vector.extract_strided_slice %394 {offsets = [6, 0], sizes = [16, 16], strides = [1, 1]} : vector<22x16xf32> to vector<16x16xf32>
    %459 = vector.broadcast %457 : f32 to vector<16x16xf32>
    %460 = arith.mulf %459, %458 : vector<16x16xf32>
    %461 = arith.addf %456, %460 : vector<16x16xf32>
    %c94 = arith.constant 94 : index
    %462 = memref.load %arg3[%c94] : memref<98xf32, #tpu.memory_space<smem>>
    %463 = vector.extract_strided_slice %396 {offsets = [6, 0], sizes = [16, 16], strides = [1, 1]} : vector<22x16xf32> to vector<16x16xf32>
    %464 = vector.broadcast %462 : f32 to vector<16x16xf32>
    %465 = arith.mulf %464, %463 : vector<16x16xf32>
    %466 = arith.addf %461, %465 : vector<16x16xf32>
    %c0_157 = arith.constant 0 : index
    %c0_158 = arith.constant 0 : index
    %c4_159 = arith.constant 4 : index
    %467 = vector.load %arg7[%c0_157, %c0_158, %c4_159] : memref<2x24x128xf32, #tpu.memory_space<vmem>>, vector<1x22x16xf32>
    %468 = vector.shape_cast %467 : vector<1x22x16xf32> to vector<22x16xf32>
    %c1_160 = arith.constant 1 : index
    %c0_161 = arith.constant 0 : index
    %c4_162 = arith.constant 4 : index
    %469 = vector.load %arg7[%c1_160, %c0_161, %c4_162] : memref<2x24x128xf32, #tpu.memory_space<vmem>>, vector<1x22x16xf32>
    %470 = vector.shape_cast %469 : vector<1x22x16xf32> to vector<22x16xf32>
    %c4_163 = arith.constant 4 : index
    %471 = memref.load %arg3[%c4_163] : memref<98xf32, #tpu.memory_space<smem>>
    %472 = vector.extract_strided_slice %468 {offsets = [0, 0], sizes = [16, 16], strides = [1, 1]} : vector<22x16xf32> to vector<16x16xf32>
    %473 = vector.broadcast %471 : f32 to vector<16x16xf32>
    %474 = arith.mulf %473, %472 : vector<16x16xf32>
    %475 = arith.addf %466, %474 : vector<16x16xf32>
    %c53 = arith.constant 53 : index
    %476 = memref.load %arg3[%c53] : memref<98xf32, #tpu.memory_space<smem>>
    %477 = vector.extract_strided_slice %470 {offsets = [0, 0], sizes = [16, 16], strides = [1, 1]} : vector<22x16xf32> to vector<16x16xf32>
    %478 = vector.broadcast %476 : f32 to vector<16x16xf32>
    %479 = arith.mulf %478, %477 : vector<16x16xf32>
    %480 = arith.addf %475, %479 : vector<16x16xf32>
    %c11_164 = arith.constant 11 : index
    %481 = memref.load %arg3[%c11_164] : memref<98xf32, #tpu.memory_space<smem>>
    %482 = vector.extract_strided_slice %468 {offsets = [1, 0], sizes = [16, 16], strides = [1, 1]} : vector<22x16xf32> to vector<16x16xf32>
    %483 = vector.broadcast %481 : f32 to vector<16x16xf32>
    %484 = arith.mulf %483, %482 : vector<16x16xf32>
    %485 = arith.addf %480, %484 : vector<16x16xf32>
    %c60 = arith.constant 60 : index
    %486 = memref.load %arg3[%c60] : memref<98xf32, #tpu.memory_space<smem>>
    %487 = vector.extract_strided_slice %470 {offsets = [1, 0], sizes = [16, 16], strides = [1, 1]} : vector<22x16xf32> to vector<16x16xf32>
    %488 = vector.broadcast %486 : f32 to vector<16x16xf32>
    %489 = arith.mulf %488, %487 : vector<16x16xf32>
    %490 = arith.addf %485, %489 : vector<16x16xf32>
    %c18_165 = arith.constant 18 : index
    %491 = memref.load %arg3[%c18_165] : memref<98xf32, #tpu.memory_space<smem>>
    %492 = vector.extract_strided_slice %468 {offsets = [2, 0], sizes = [16, 16], strides = [1, 1]} : vector<22x16xf32> to vector<16x16xf32>
    %493 = vector.broadcast %491 : f32 to vector<16x16xf32>
    %494 = arith.mulf %493, %492 : vector<16x16xf32>
    %495 = arith.addf %490, %494 : vector<16x16xf32>
    %c67 = arith.constant 67 : index
    %496 = memref.load %arg3[%c67] : memref<98xf32, #tpu.memory_space<smem>>
    %497 = vector.extract_strided_slice %470 {offsets = [2, 0], sizes = [16, 16], strides = [1, 1]} : vector<22x16xf32> to vector<16x16xf32>
    %498 = vector.broadcast %496 : f32 to vector<16x16xf32>
    %499 = arith.mulf %498, %497 : vector<16x16xf32>
    %500 = arith.addf %495, %499 : vector<16x16xf32>
    %c25 = arith.constant 25 : index
    %501 = memref.load %arg3[%c25] : memref<98xf32, #tpu.memory_space<smem>>
    %502 = vector.extract_strided_slice %468 {offsets = [3, 0], sizes = [16, 16], strides = [1, 1]} : vector<22x16xf32> to vector<16x16xf32>
    %503 = vector.broadcast %501 : f32 to vector<16x16xf32>
    %504 = arith.mulf %503, %502 : vector<16x16xf32>
    %505 = arith.addf %500, %504 : vector<16x16xf32>
    %c74 = arith.constant 74 : index
    %506 = memref.load %arg3[%c74] : memref<98xf32, #tpu.memory_space<smem>>
    %507 = vector.extract_strided_slice %470 {offsets = [3, 0], sizes = [16, 16], strides = [1, 1]} : vector<22x16xf32> to vector<16x16xf32>
    %508 = vector.broadcast %506 : f32 to vector<16x16xf32>
    %509 = arith.mulf %508, %507 : vector<16x16xf32>
    %510 = arith.addf %505, %509 : vector<16x16xf32>
    %c32 = arith.constant 32 : index
    %511 = memref.load %arg3[%c32] : memref<98xf32, #tpu.memory_space<smem>>
    %512 = vector.extract_strided_slice %468 {offsets = [4, 0], sizes = [16, 16], strides = [1, 1]} : vector<22x16xf32> to vector<16x16xf32>
    %513 = vector.broadcast %511 : f32 to vector<16x16xf32>
    %514 = arith.mulf %513, %512 : vector<16x16xf32>
    %515 = arith.addf %510, %514 : vector<16x16xf32>
    %c81 = arith.constant 81 : index
    %516 = memref.load %arg3[%c81] : memref<98xf32, #tpu.memory_space<smem>>
    %517 = vector.extract_strided_slice %470 {offsets = [4, 0], sizes = [16, 16], strides = [1, 1]} : vector<22x16xf32> to vector<16x16xf32>
    %518 = vector.broadcast %516 : f32 to vector<16x16xf32>
    %519 = arith.mulf %518, %517 : vector<16x16xf32>
    %520 = arith.addf %515, %519 : vector<16x16xf32>
    %c39 = arith.constant 39 : index
    %521 = memref.load %arg3[%c39] : memref<98xf32, #tpu.memory_space<smem>>
    %522 = vector.extract_strided_slice %468 {offsets = [5, 0], sizes = [16, 16], strides = [1, 1]} : vector<22x16xf32> to vector<16x16xf32>
    %523 = vector.broadcast %521 : f32 to vector<16x16xf32>
    %524 = arith.mulf %523, %522 : vector<16x16xf32>
    %525 = arith.addf %520, %524 : vector<16x16xf32>
    %c88 = arith.constant 88 : index
    %526 = memref.load %arg3[%c88] : memref<98xf32, #tpu.memory_space<smem>>
    %527 = vector.extract_strided_slice %470 {offsets = [5, 0], sizes = [16, 16], strides = [1, 1]} : vector<22x16xf32> to vector<16x16xf32>
    %528 = vector.broadcast %526 : f32 to vector<16x16xf32>
    %529 = arith.mulf %528, %527 : vector<16x16xf32>
    %530 = arith.addf %525, %529 : vector<16x16xf32>
    %c46 = arith.constant 46 : index
    %531 = memref.load %arg3[%c46] : memref<98xf32, #tpu.memory_space<smem>>
    %532 = vector.extract_strided_slice %468 {offsets = [6, 0], sizes = [16, 16], strides = [1, 1]} : vector<22x16xf32> to vector<16x16xf32>
    %533 = vector.broadcast %531 : f32 to vector<16x16xf32>
    %534 = arith.mulf %533, %532 : vector<16x16xf32>
    %535 = arith.addf %530, %534 : vector<16x16xf32>
    %c95 = arith.constant 95 : index
    %536 = memref.load %arg3[%c95] : memref<98xf32, #tpu.memory_space<smem>>
    %537 = vector.extract_strided_slice %470 {offsets = [6, 0], sizes = [16, 16], strides = [1, 1]} : vector<22x16xf32> to vector<16x16xf32>
    %538 = vector.broadcast %536 : f32 to vector<16x16xf32>
    %539 = arith.mulf %538, %537 : vector<16x16xf32>
    %540 = arith.addf %535, %539 : vector<16x16xf32>
    %c0_166 = arith.constant 0 : index
    %c0_167 = arith.constant 0 : index
    %c5_168 = arith.constant 5 : index
    %541 = vector.load %arg7[%c0_166, %c0_167, %c5_168] : memref<2x24x128xf32, #tpu.memory_space<vmem>>, vector<1x22x16xf32>
    %542 = vector.shape_cast %541 : vector<1x22x16xf32> to vector<22x16xf32>
    %c1_169 = arith.constant 1 : index
    %c0_170 = arith.constant 0 : index
    %c5_171 = arith.constant 5 : index
    %543 = vector.load %arg7[%c1_169, %c0_170, %c5_171] : memref<2x24x128xf32, #tpu.memory_space<vmem>>, vector<1x22x16xf32>
    %544 = vector.shape_cast %543 : vector<1x22x16xf32> to vector<22x16xf32>
    %c5_172 = arith.constant 5 : index
    %545 = memref.load %arg3[%c5_172] : memref<98xf32, #tpu.memory_space<smem>>
    %546 = vector.extract_strided_slice %542 {offsets = [0, 0], sizes = [16, 16], strides = [1, 1]} : vector<22x16xf32> to vector<16x16xf32>
    %547 = vector.broadcast %545 : f32 to vector<16x16xf32>
    %548 = arith.mulf %547, %546 : vector<16x16xf32>
    %549 = arith.addf %540, %548 : vector<16x16xf32>
    %c54 = arith.constant 54 : index
    %550 = memref.load %arg3[%c54] : memref<98xf32, #tpu.memory_space<smem>>
    %551 = vector.extract_strided_slice %544 {offsets = [0, 0], sizes = [16, 16], strides = [1, 1]} : vector<22x16xf32> to vector<16x16xf32>
    %552 = vector.broadcast %550 : f32 to vector<16x16xf32>
    %553 = arith.mulf %552, %551 : vector<16x16xf32>
    %554 = arith.addf %549, %553 : vector<16x16xf32>
    %c12_173 = arith.constant 12 : index
    %555 = memref.load %arg3[%c12_173] : memref<98xf32, #tpu.memory_space<smem>>
    %556 = vector.extract_strided_slice %542 {offsets = [1, 0], sizes = [16, 16], strides = [1, 1]} : vector<22x16xf32> to vector<16x16xf32>
    %557 = vector.broadcast %555 : f32 to vector<16x16xf32>
    %558 = arith.mulf %557, %556 : vector<16x16xf32>
    %559 = arith.addf %554, %558 : vector<16x16xf32>
    %c61 = arith.constant 61 : index
    %560 = memref.load %arg3[%c61] : memref<98xf32, #tpu.memory_space<smem>>
    %561 = vector.extract_strided_slice %544 {offsets = [1, 0], sizes = [16, 16], strides = [1, 1]} : vector<22x16xf32> to vector<16x16xf32>
    %562 = vector.broadcast %560 : f32 to vector<16x16xf32>
    %563 = arith.mulf %562, %561 : vector<16x16xf32>
    %564 = arith.addf %559, %563 : vector<16x16xf32>
    %c19_174 = arith.constant 19 : index
    %565 = memref.load %arg3[%c19_174] : memref<98xf32, #tpu.memory_space<smem>>
    %566 = vector.extract_strided_slice %542 {offsets = [2, 0], sizes = [16, 16], strides = [1, 1]} : vector<22x16xf32> to vector<16x16xf32>
    %567 = vector.broadcast %565 : f32 to vector<16x16xf32>
    %568 = arith.mulf %567, %566 : vector<16x16xf32>
    %569 = arith.addf %564, %568 : vector<16x16xf32>
    %c68 = arith.constant 68 : index
    %570 = memref.load %arg3[%c68] : memref<98xf32, #tpu.memory_space<smem>>
    %571 = vector.extract_strided_slice %544 {offsets = [2, 0], sizes = [16, 16], strides = [1, 1]} : vector<22x16xf32> to vector<16x16xf32>
    %572 = vector.broadcast %570 : f32 to vector<16x16xf32>
    %573 = arith.mulf %572, %571 : vector<16x16xf32>
    %574 = arith.addf %569, %573 : vector<16x16xf32>
    %c26 = arith.constant 26 : index
    %575 = memref.load %arg3[%c26] : memref<98xf32, #tpu.memory_space<smem>>
    %576 = vector.extract_strided_slice %542 {offsets = [3, 0], sizes = [16, 16], strides = [1, 1]} : vector<22x16xf32> to vector<16x16xf32>
    %577 = vector.broadcast %575 : f32 to vector<16x16xf32>
    %578 = arith.mulf %577, %576 : vector<16x16xf32>
    %579 = arith.addf %574, %578 : vector<16x16xf32>
    %c75 = arith.constant 75 : index
    %580 = memref.load %arg3[%c75] : memref<98xf32, #tpu.memory_space<smem>>
    %581 = vector.extract_strided_slice %544 {offsets = [3, 0], sizes = [16, 16], strides = [1, 1]} : vector<22x16xf32> to vector<16x16xf32>
    %582 = vector.broadcast %580 : f32 to vector<16x16xf32>
    %583 = arith.mulf %582, %581 : vector<16x16xf32>
    %584 = arith.addf %579, %583 : vector<16x16xf32>
    %c33 = arith.constant 33 : index
    %585 = memref.load %arg3[%c33] : memref<98xf32, #tpu.memory_space<smem>>
    %586 = vector.extract_strided_slice %542 {offsets = [4, 0], sizes = [16, 16], strides = [1, 1]} : vector<22x16xf32> to vector<16x16xf32>
    %587 = vector.broadcast %585 : f32 to vector<16x16xf32>
    %588 = arith.mulf %587, %586 : vector<16x16xf32>
    %589 = arith.addf %584, %588 : vector<16x16xf32>
    %c82 = arith.constant 82 : index
    %590 = memref.load %arg3[%c82] : memref<98xf32, #tpu.memory_space<smem>>
    %591 = vector.extract_strided_slice %544 {offsets = [4, 0], sizes = [16, 16], strides = [1, 1]} : vector<22x16xf32> to vector<16x16xf32>
    %592 = vector.broadcast %590 : f32 to vector<16x16xf32>
    %593 = arith.mulf %592, %591 : vector<16x16xf32>
    %594 = arith.addf %589, %593 : vector<16x16xf32>
    %c40 = arith.constant 40 : index
    %595 = memref.load %arg3[%c40] : memref<98xf32, #tpu.memory_space<smem>>
    %596 = vector.extract_strided_slice %542 {offsets = [5, 0], sizes = [16, 16], strides = [1, 1]} : vector<22x16xf32> to vector<16x16xf32>
    %597 = vector.broadcast %595 : f32 to vector<16x16xf32>
    %598 = arith.mulf %597, %596 : vector<16x16xf32>
    %599 = arith.addf %594, %598 : vector<16x16xf32>
    %c89 = arith.constant 89 : index
    %600 = memref.load %arg3[%c89] : memref<98xf32, #tpu.memory_space<smem>>
    %601 = vector.extract_strided_slice %544 {offsets = [5, 0], sizes = [16, 16], strides = [1, 1]} : vector<22x16xf32> to vector<16x16xf32>
    %602 = vector.broadcast %600 : f32 to vector<16x16xf32>
    %603 = arith.mulf %602, %601 : vector<16x16xf32>
    %604 = arith.addf %599, %603 : vector<16x16xf32>
    %c47 = arith.constant 47 : index
    %605 = memref.load %arg3[%c47] : memref<98xf32, #tpu.memory_space<smem>>
    %606 = vector.extract_strided_slice %542 {offsets = [6, 0], sizes = [16, 16], strides = [1, 1]} : vector<22x16xf32> to vector<16x16xf32>
    %607 = vector.broadcast %605 : f32 to vector<16x16xf32>
    %608 = arith.mulf %607, %606 : vector<16x16xf32>
    %609 = arith.addf %604, %608 : vector<16x16xf32>
    %c96 = arith.constant 96 : index
    %610 = memref.load %arg3[%c96] : memref<98xf32, #tpu.memory_space<smem>>
    %611 = vector.extract_strided_slice %544 {offsets = [6, 0], sizes = [16, 16], strides = [1, 1]} : vector<22x16xf32> to vector<16x16xf32>
    %612 = vector.broadcast %610 : f32 to vector<16x16xf32>
    %613 = arith.mulf %612, %611 : vector<16x16xf32>
    %614 = arith.addf %609, %613 : vector<16x16xf32>
    %c0_175 = arith.constant 0 : index
    %c0_176 = arith.constant 0 : index
    %c6_177 = arith.constant 6 : index
    %615 = vector.load %arg7[%c0_175, %c0_176, %c6_177] : memref<2x24x128xf32, #tpu.memory_space<vmem>>, vector<1x22x16xf32>
    %616 = vector.shape_cast %615 : vector<1x22x16xf32> to vector<22x16xf32>
    %c1_178 = arith.constant 1 : index
    %c0_179 = arith.constant 0 : index
    %c6_180 = arith.constant 6 : index
    %617 = vector.load %arg7[%c1_178, %c0_179, %c6_180] : memref<2x24x128xf32, #tpu.memory_space<vmem>>, vector<1x22x16xf32>
    %618 = vector.shape_cast %617 : vector<1x22x16xf32> to vector<22x16xf32>
    %c6_181 = arith.constant 6 : index
    %619 = memref.load %arg3[%c6_181] : memref<98xf32, #tpu.memory_space<smem>>
    %620 = vector.extract_strided_slice %616 {offsets = [0, 0], sizes = [16, 16], strides = [1, 1]} : vector<22x16xf32> to vector<16x16xf32>
    %621 = vector.broadcast %619 : f32 to vector<16x16xf32>
    %622 = arith.mulf %621, %620 : vector<16x16xf32>
    %623 = arith.addf %614, %622 : vector<16x16xf32>
    %c55 = arith.constant 55 : index
    %624 = memref.load %arg3[%c55] : memref<98xf32, #tpu.memory_space<smem>>
    %625 = vector.extract_strided_slice %618 {offsets = [0, 0], sizes = [16, 16], strides = [1, 1]} : vector<22x16xf32> to vector<16x16xf32>
    %626 = vector.broadcast %624 : f32 to vector<16x16xf32>
    %627 = arith.mulf %626, %625 : vector<16x16xf32>
    %628 = arith.addf %623, %627 : vector<16x16xf32>
    %c13_182 = arith.constant 13 : index
    %629 = memref.load %arg3[%c13_182] : memref<98xf32, #tpu.memory_space<smem>>
    %630 = vector.extract_strided_slice %616 {offsets = [1, 0], sizes = [16, 16], strides = [1, 1]} : vector<22x16xf32> to vector<16x16xf32>
    %631 = vector.broadcast %629 : f32 to vector<16x16xf32>
    %632 = arith.mulf %631, %630 : vector<16x16xf32>
    %633 = arith.addf %628, %632 : vector<16x16xf32>
    %c62 = arith.constant 62 : index
    %634 = memref.load %arg3[%c62] : memref<98xf32, #tpu.memory_space<smem>>
    %635 = vector.extract_strided_slice %618 {offsets = [1, 0], sizes = [16, 16], strides = [1, 1]} : vector<22x16xf32> to vector<16x16xf32>
    %636 = vector.broadcast %634 : f32 to vector<16x16xf32>
    %637 = arith.mulf %636, %635 : vector<16x16xf32>
    %638 = arith.addf %633, %637 : vector<16x16xf32>
    %c20 = arith.constant 20 : index
    %639 = memref.load %arg3[%c20] : memref<98xf32, #tpu.memory_space<smem>>
    %640 = vector.extract_strided_slice %616 {offsets = [2, 0], sizes = [16, 16], strides = [1, 1]} : vector<22x16xf32> to vector<16x16xf32>
    %641 = vector.broadcast %639 : f32 to vector<16x16xf32>
    %642 = arith.mulf %641, %640 : vector<16x16xf32>
    %643 = arith.addf %638, %642 : vector<16x16xf32>
    %c69 = arith.constant 69 : index
    %644 = memref.load %arg3[%c69] : memref<98xf32, #tpu.memory_space<smem>>
    %645 = vector.extract_strided_slice %618 {offsets = [2, 0], sizes = [16, 16], strides = [1, 1]} : vector<22x16xf32> to vector<16x16xf32>
    %646 = vector.broadcast %644 : f32 to vector<16x16xf32>
    %647 = arith.mulf %646, %645 : vector<16x16xf32>
    %648 = arith.addf %643, %647 : vector<16x16xf32>
    %c27 = arith.constant 27 : index
    %649 = memref.load %arg3[%c27] : memref<98xf32, #tpu.memory_space<smem>>
    %650 = vector.extract_strided_slice %616 {offsets = [3, 0], sizes = [16, 16], strides = [1, 1]} : vector<22x16xf32> to vector<16x16xf32>
    %651 = vector.broadcast %649 : f32 to vector<16x16xf32>
    %652 = arith.mulf %651, %650 : vector<16x16xf32>
    %653 = arith.addf %648, %652 : vector<16x16xf32>
    %c76 = arith.constant 76 : index
    %654 = memref.load %arg3[%c76] : memref<98xf32, #tpu.memory_space<smem>>
    %655 = vector.extract_strided_slice %618 {offsets = [3, 0], sizes = [16, 16], strides = [1, 1]} : vector<22x16xf32> to vector<16x16xf32>
    %656 = vector.broadcast %654 : f32 to vector<16x16xf32>
    %657 = arith.mulf %656, %655 : vector<16x16xf32>
    %658 = arith.addf %653, %657 : vector<16x16xf32>
    %c34 = arith.constant 34 : index
    %659 = memref.load %arg3[%c34] : memref<98xf32, #tpu.memory_space<smem>>
    %660 = vector.extract_strided_slice %616 {offsets = [4, 0], sizes = [16, 16], strides = [1, 1]} : vector<22x16xf32> to vector<16x16xf32>
    %661 = vector.broadcast %659 : f32 to vector<16x16xf32>
    %662 = arith.mulf %661, %660 : vector<16x16xf32>
    %663 = arith.addf %658, %662 : vector<16x16xf32>
    %c83 = arith.constant 83 : index
    %664 = memref.load %arg3[%c83] : memref<98xf32, #tpu.memory_space<smem>>
    %665 = vector.extract_strided_slice %618 {offsets = [4, 0], sizes = [16, 16], strides = [1, 1]} : vector<22x16xf32> to vector<16x16xf32>
    %666 = vector.broadcast %664 : f32 to vector<16x16xf32>
    %667 = arith.mulf %666, %665 : vector<16x16xf32>
    %668 = arith.addf %663, %667 : vector<16x16xf32>
    %c41 = arith.constant 41 : index
    %669 = memref.load %arg3[%c41] : memref<98xf32, #tpu.memory_space<smem>>
    %670 = vector.extract_strided_slice %616 {offsets = [5, 0], sizes = [16, 16], strides = [1, 1]} : vector<22x16xf32> to vector<16x16xf32>
    %671 = vector.broadcast %669 : f32 to vector<16x16xf32>
    %672 = arith.mulf %671, %670 : vector<16x16xf32>
    %673 = arith.addf %668, %672 : vector<16x16xf32>
    %c90 = arith.constant 90 : index
    %674 = memref.load %arg3[%c90] : memref<98xf32, #tpu.memory_space<smem>>
    %675 = vector.extract_strided_slice %618 {offsets = [5, 0], sizes = [16, 16], strides = [1, 1]} : vector<22x16xf32> to vector<16x16xf32>
    %676 = vector.broadcast %674 : f32 to vector<16x16xf32>
    %677 = arith.mulf %676, %675 : vector<16x16xf32>
    %678 = arith.addf %673, %677 : vector<16x16xf32>
    %c48 = arith.constant 48 : index
    %679 = memref.load %arg3[%c48] : memref<98xf32, #tpu.memory_space<smem>>
    %680 = vector.extract_strided_slice %616 {offsets = [6, 0], sizes = [16, 16], strides = [1, 1]} : vector<22x16xf32> to vector<16x16xf32>
    %681 = vector.broadcast %679 : f32 to vector<16x16xf32>
    %682 = arith.mulf %681, %680 : vector<16x16xf32>
    %683 = arith.addf %678, %682 : vector<16x16xf32>
    %c97 = arith.constant 97 : index
    %684 = memref.load %arg3[%c97] : memref<98xf32, #tpu.memory_space<smem>>
    %685 = vector.extract_strided_slice %618 {offsets = [6, 0], sizes = [16, 16], strides = [1, 1]} : vector<22x16xf32> to vector<16x16xf32>
    %686 = vector.broadcast %684 : f32 to vector<16x16xf32>
    %687 = arith.mulf %686, %685 : vector<16x16xf32>
    %688 = arith.addf %683, %687 : vector<16x16xf32>
    %689 = arith.negf %688 : vector<16x16xf32>
    %690 = math.exp %689 : vector<16x16xf32>
    %cst_183 = arith.constant 1.000000e+00 : f32
    %691 = vector.broadcast %cst_183 : f32 to vector<16x16xf32>
    %692 = arith.addf %691, %690 : vector<16x16xf32>
    %693 = arith.divf %691, %692 : vector<16x16xf32>
    %c0_184 = arith.constant 0 : index
    %c0_185 = arith.constant 0 : index
    %c0_186 = arith.constant 0 : index
    %c0_187 = arith.constant 0 : index
    %694 = vector.load %arg4[%c0_184, %c0_185, %c0_186, %c0_187] : memref<1x1x16x16xf32, #tpu.memory_space<vmem>>, vector<1x1x16x16xf32>
    %695 = vector.shape_cast %694 : vector<1x1x16x16xf32> to vector<16x16xf32>
    %696 = vector.shape_cast %693 : vector<16x16xf32> to vector<1x1x16x16xf32>
    tpu.vector_store %arg4[%c0_184, %c0_185, %c0_186, %c0_187], %696 {strides = array<i32>} : memref<1x1x16x16xf32, #tpu.memory_space<vmem>>, vector<1x1x16x16xf32>,
    return
  }
  func.func @transform_0(%arg0: i32, %arg1: i32) -> (i32, i32, i32) {
    %c0_i32 = arith.constant 0 : i32
    %c0_i32_0 = arith.constant 0 : i32
    return %arg0, %arg1, %c0_i32 : i32, i32, i32
  }
  func.func @transform_1(%arg0: i32, %arg1: i32) -> i32 {
    %c0_i32 = arith.constant 0 : i32
    %c0_i32_0 = arith.constant 0 : i32
    return %c0_i32 : i32
  }
  func.func @transform_2(%arg0: i32, %arg1: i32) -> (i32, i32, i32, i32) {
    %c0_i32 = arith.constant 0 : i32
    %c0_i32_0 = arith.constant 0 : i32
    %c0_i32_1 = arith.constant 0 : i32
    %c0_i32_2 = arith.constant 0 : i32
    return %arg0, %c0_i32, %c0_i32_0, %c0_i32_1 : i32, i32, i32, i32
  }
}

</mosaic_0001>

<bundles_post_ra>
// kernel: spatial_attention.1
= control target key start
LH: loop header
LB: loop body
LE: loop exit
PB: predicated region body
PF: predicated region fallthrough
CT: control target
= control target key end

     0   :  { %s4700_s0 = inlined_call_operand.vmem [shape: f32[2,4,256], index: 0, kind: input, shape index: {}]   ;;  %s4701_s1 = inlined_call_operand.vmem [shape: f32[98], index: 1, kind: input, shape index: {}]   ;;  %s4702_s2 = inlined_call_operand.hbm [shape: f32[2,1,16,16], index: 2, kind: output, shape index: {}]  }
   0x1   :  { %4720 = sst [smem:[#allocation25_spill]] %s4700_s0 }
   0x2   :  { %4721 = sst [smem:[#allocation26_spill]] %s4701_s1 }
   0x3   :  { %7 = vsyncpa [#allocation7], 0 }
   0x4   :  { %8 = vsyncpa [#allocation6], 0 }
   0x5   :  { %10 = vsyncpa [#allocation6 + $0x1], 0  ;;  %s2750_s9 = smov 0   ;;  %s2752_s10 = smov 0  }
   0x6   :  { %s2754_s11 = smov 0   ;;  %s2756_s12 = smov 0  }
   0x7   :  { %s2758_s13 = smov 0   ;;  %s2760_s14 = smov 0  }
   0x8 LB: > { %4722 = sst [smem:[#allocation11_spill]] %s2694_s9  ;;  %s2397_s15 = sadd.s32 4294967295, %s2714_s14   ;;  %s2714_s14 = sphi %s2760_s14, %s16_s14   ;;  %s2710_s13 = sphi %s2758_s13, %s4795_s13   ;;  %s2706_s12 = sphi %s2756_s12, %s4794_s12   ;;  %s2702_s11 = sphi %s2754_s11, %s4793_s11   ;;  %s2698_s10 = sphi %s2752_s10, %s4797_s10   ;;  %s2694_s9 = sphi %s2750_s9, %s4796_s9  }
   0x9   : > { %4723 = sst [smem:[#allocation12_spill]] %s2702_s11  ;;  %s2398_s16 = sadd.s32 4294967294, %s2714_s14  }
   0xa   : > { %4724 = sst [smem:[#allocation13_spill]] %s2710_s13  ;;  %s28_s17 = sadd.s32 1, %s2710_s13 }
   0xb   : > { %s84_s18 = sadd.s32 1, %s2702_s11  ;;  %p30_p0 = scmp.ge.s32.totalorder %s28_s17, 2 }
   0xc   : > { %p94_p1 = scmp.ne.s32.totalorder %s2702_s11, %s2698_s10  ;;  %p95_p2 = scmp.eq.s32.totalorder %s2397_s15, 1 }
   0xd   : > { %p100_p3 = scmp.ne.s32.totalorder %s2698_s10, %s2694_s9  ;;  %s4799_s17 = smov (%p30_p0, %s28_s17), 0 }
   0xe   : > { %4725 = sst [smem:[#allocation14_spill]] %s4799_s17  ;;  %p2790_p4 = por %p95_p2, %p94_p1 }
   0xf   : > { %p101_p5 = scmp.eq.s32.totalorder %s2398_s16, 1  ;;  %s81_s20 = ssub.s32 %s2710_s13, %s4799_s17 }
  0x10   : > { %p2399_p6 = scmp.ge.s32.totalorder %s2714_s14, 1  ;;  %p82_p7 = scmp.eq.s32.totalorder %s81_s20, 0 }
  0x11   : > { %p2797_p8 = por %p101_p5, %p100_p3  ;;  %p108_p9 = scmp.lt.s32.totalorder %s2714_s14, 3 }
  0x12   : > { %s2803_s22 = scalar_select %p82_p7, %s2702_s11, %s84_s18  }
  0x13   : > { %s4727_s21 = scalar_select %p2797_p8, 1, 0 }
  0x14   : > { %4729 = sst [smem:[#allocation16_spill]] %s2803_s22  ;;  %p2805_p10 = pnand %p2399_p6, %p108_p9 }
  0x15   : > { %4728 = sst [smem:[#allocation15_spill]] %s4727_s21  ;;  %p2809_p11 = scmp.eq.s32.totalorder %s2397_s15, 0 }
  0x16   : > { %s4732_s1 = sld [smem:[#allocation26_spill]]  ;;  %p2519_p12 = pneg %p2805_p10 }
  0x18   : > { %p2520_p13 = pnand %p2809_p11, %p2519_p12 }
  0x1a   : > { %p2619_p1 = pneg %p2520_p13 }
  0x1c   : > { %s121_s27 = sshll.u32 %s4732_s1, 4  ;;  %s122_s27 = int_to_ptr.vmem [resolvable:$true] %s121_s27 }
  0x1d   : > { %s2617_s28 = scalar_lea.vmem %s122_s27, 16  ;;  %p2625_p5 = scmp.lt.s32.totalorder %s122_s27, %s122_s27 }
  0x1e   : > { %p2618_p0 = scmp.ne.s32.totalorder %s122_s27, %s2617_s28  ;;  %p2626_p6 = scmp.lt.s32.totalorder %s2617_s28, %s2617_s28 }
  0x20   : > { %p2620_p2 = pnand %p2619_p1, %p2618_p0  ;;  %p2627_p7 = por %p2626_p6, %p2625_p5 }
  0x22   : > { %p2621_p3 = pneg %p2620_p2 }
  0x24   : > { %p2628_p9 = pnand %p2627_p7, %p2621_p3 }
  0x26   : > { %2631 = shalt.err (!%p2628_p9)
}
  0x27   : > { %s2716_s29 = smov [#allocation5]   ;;  %146 = sbr.rel (%p2805_p10) target bundleno = 736 (0x2e0), region = 28 }
  0x28   : > { %2522 = dma.vmem_to_smem (!%p2520_p13), %s122_s27, 16, %s2716_s29, [#allocation7]  }
  0x2e   : > { %2685 = dma.done.wait (%p2809_p11), [#allocation7], 16  }
  0x2f   : > { %2687 = vsyncadd (%p2809_p11), [#allocation7], 4294967280 }
  0x30   : > { %152 = sfence }
  0x31   : > { %p173_p12 = scmp.lt.s32.totalorder %s2706_s12, 1  ;;  %vm224_vm0 = vcmask 23552   ;;  %vm227_vm1 = vcmask 179352   ;;  %v2717_v0 = vmov 0.0   ;;  %vm189_vm2 = vcmask 1043456   ;;  %s4733_s0 = sld [smem:[#allocation25_spill]] }
  0x32   : > { %225 = vst.msk [vmem:[#allocation4 + $0x3] sm:$0xff] %vm224_vm0, %v2717_v0  ;;  %222 = vst [vmem:[#allocation4] sm:$0x7] %v2717_v0  ;;  %s2718_s7 = smov 115   ;;  %s2719_s8 = smov 3   ;;  %vm241_vm3 = vcmask 147480  }
  0x33   : > { %223 = vst [vmem:[#allocation4 + $0x13] sm:$0x1f] %v2717_v0  ;;  %226 = vst.msk [vmem:[#allocation4 + $0xb] sm:$0xff] %vm224_vm0, %v2717_v0  ;;  %s174_s30 = scalar_select %p173_p12, %s2706_s12, 1  ;;  %vm396_vm4 = vcmask 1046528   ;;  %vm431_vm5 = vcmask 1045504  }
  0x34   : > { %231 = vst [vmem:[#allocation4 + $0x18] sm:$0x7] %v2717_v0  ;;  %232 = vst [vmem:[#allocation4 + $0x2b] sm:$0x1f] %v2717_v0  ;;  %s2720_s15 = smov 99   ;;  %s2721_s16 = smov 83  }
  0x35   : > { %233 = vst.msk [vmem:[#allocation4 + $0x1b] sm:$0xff] %vm224_vm0, %v2717_v0  ;;  %234 = vst.msk [vmem:[#allocation4 + $0x23] sm:$0xff] %vm224_vm0, %v2717_v0  ;;  %s2511_s3 = sshll.u32 %s174_s30, 3  ;;  %s2722_s18 = smov 67   ;;  %vm466_vm6 = vcmask 1044480   ;;  %vm535_vm7 = vcmask 1042432  }
  0x36   : > { %228 = vst.msk [vmem:[#allocation4 + $0x3] sm:$0xff] %vm227_vm1, %v2717_v0  ;;  %229 = vst.msk [vmem:[#allocation4 + $0xb] sm:$0xff] %vm227_vm1, %v2717_v0  ;;  %s2723_s20 = smov 51   ;;  %s2724_s23 = smov 35   ;;  %vm570_vm8 = vcmask 1041408   ;;  %vm2289_vm9 = vcmask 130048  }
  0x37   : > { %235 = vst.msk [vmem:[#allocation4 + $0x1b] sm:$0xff] %vm227_vm1, %v2717_v0  ;;  %236 = vst.msk [vmem:[#allocation4 + $0x23] sm:$0xff] %vm227_vm1, %v2717_v0  ;;  %s181_s6 = scalar_lea.vmem %s4733_s0, %s2511_s3  ;;  %s2725_s24 = smov 19  }
  0x38   : > { %v182_v1 = vld [vmem:[%s181_s6] sm:$0xff]  ;;  %s2859_s25 = sld [smem:[#allocation5 + $0x1]]  ;;  %s2863_s26 = sld [smem:[#allocation5 + $0x32]] }
  0x39   : > { %v190_v2 = vsel %vm189_vm2, %v182_v1, 0.0  ;;  %v208_v3 = vsel %vm189_vm2, %v182_v1, -inf  ;;  %v187_v16 = vcombine.high %v182_v1, %v182_v1  ;;  %s2868_s27 = sld [smem:[#allocation5 + $0x2]]  ;;  %s2880_s28 = sld [smem:[#allocation5 + $0x33]] }
  0x3a   : > { %v191_v4 = vrot.slane %v190_v2, 4  ;;  %v209_v5 = vrot.slane %v208_v3, 4  ;;  %s2726_s29 = smov 127   ;;  %s4703_s30 = smov 126  }
  0x3b   : > { %v215_v17 = vsel %vm189_vm2, %v187_v16, -inf  ;;  %v197_v18 = vsel %vm189_vm2, %v187_v16, 0.0  ;;  %s2422_s3 = sld [smem:[#allocation5 + $0x8]]  ;;  %s2423_s4 = sld [smem:[#allocation5 + $0x39]] }
  0x3c   : > { %v192_v6 = vadd.f32 %v191_v4, %v190_v2  ;;  %v210_v7 = vmax.f32 %v208_v3, %v209_v5  ;;  %v216_v19 = vrot.slane %v215_v17, 4  ;;  %v198_v20 = vrot.slane %v197_v18, 4  ;;  %s2424_s5 = sld [smem:[#allocation5 + $0xf]]  ;;  %s2425_s6 = sld [smem:[#allocation5 + $0x40]] }
  0x3d   : > { %s4734_s0 = smov 126   ;;  %s3213_s1 = sld [smem:[#allocation5 + $0x11]] }
  0x3e   : > { %v193_v8 = vrot.slane %v192_v6, 2  ;;  %v211_v9 = vrot.slane %v210_v7, 2  ;;  %v217_v21 = vmax.f32 %v215_v17, %v216_v19  ;;  %v199_v22 = vadd.f32 %v198_v20, %v197_v18  ;;  %s3216_s17 = sld [smem:[#allocation5 + $0x42]]  ;;  %s3224_s13 = sld [smem:[#allocation5 + $0x18]] }
  0x3f   : > { %v598_v43 = vstv %s2859_s25  ;;  %v612_v49 = vstv %s2863_s26  ;;  %v878_v53 = vstv %s2868_s27  ;;  %v892_v57 = vstv %s2880_s28  ;;  %s2436_s25 = sld [smem:[#allocation5 + $0x9]]  ;;  %s2437_s26 = sld [smem:[#allocation5 + $0x3a]] }
  0x40   : > { %v194_v10 = vadd.f32 %v193_v8, %v192_v6  ;;  %v212_v11 = vmax.f32 %v210_v7, %v211_v9  ;;  %v218_v23 = vrot.slane %v217_v21, 2  ;;  %v200_v24 = vrot.slane %v199_v22, 2  ;;  %s2438_s27 = sld [smem:[#allocation5 + $0x10]]  ;;  %s2439_s28 = sld [smem:[#allocation5 + $0x41]] }
  0x41   : > { %v626_v5 = vstv %s2422_s3  ;;  %s2440_s3 = sld [smem:[#allocation5 + $0x17]]  ;;  %s3226_s22 = sld [smem:[#allocation5 + $0x49]] }
  0x42   : > { %v195_v12 = vrot.slane %v194_v10, 1  ;;  %v213_v13 = vrot.slane %v212_v11, 1  ;;  %v219_v25 = vmax.f32 %v217_v21, %v218_v23  ;;  %v201_v26 = vadd.f32 %v200_v24, %v199_v22  ;;  %s3235_s11 = sld [smem:[#allocation5 + $0x1f]]  ;;  %s3245_s21 = sld [smem:[#allocation5 + $0x50]] }
  0x43   : > { %v668_v20 = vstv %s2424_s5  ;;  %s2442_s5 = sld [smem:[#allocation5 + $0x1e]] }
  0x44   : > { %v196_v14 = vadd.f32 %v195_v12, %v194_v10  ;;  %v214_v15 = vmax.f32 %v212_v11, %v213_v13  ;;  %v220_v27 = vrot.slane %v219_v25, 1  ;;  %v202_v28 = vrot.slane %v201_v26, 1  ;;  %s3247_s9 = sld [smem:[#allocation5 + $0x26]] }
  0x45   : > { %v647_v11 = vstv %s2423_s4  ;;  %s2441_s4 = sld [smem:[#allocation5 + $0x48]] }
  0x46   : > { %248 = vrot.lane.b32.xlu1 %v196_v14, %s2718_s7  ;;  %238 = vrot.lane.b32.xlu0 %v196_v14, %s2719_s8  ;;  %v221_v29 = vmax.f32 %v219_v25, %v220_v27  ;;  %v203_v30 = vadd.f32 %v202_v28, %v201_v26  ;;  %v689_v27 = vstv %s2425_s6  ;;  %s2443_s6 = sld [smem:[#allocation5 + $0x4f]] }
  0x4a   : > { %252 = vrot.lane.b32.xlu1 %v214_v15, %s2718_s7  ;;  %244 = vrot.lane.b32.xlu0 %v214_v15, %s2719_s8 }
  0x4e   : > { %260 = vrot.lane.b32.xlu1 %v214_v15, %s2720_s15  ;;  %256 = vrot.lane.b32.xlu0 %v196_v14, %s2720_s15 }
  0x52   : > { %268 = vrot.lane.b32.xlu1 %v214_v15, %s2721_s16  ;;  %264 = vrot.lane.b32.xlu0 %v196_v14, %s2721_s16 }
  0x56   : > { %276 = vrot.lane.b32.xlu1 %v214_v15, %s2722_s18  ;;  %272 = vrot.lane.b32.xlu0 %v196_v14, %s2722_s18 }
  0x5a   : > { %284 = vrot.lane.b32.xlu1 %v214_v15, %s2723_s20  ;;  %280 = vrot.lane.b32.xlu0 %v196_v14, %s2723_s20 }
  0x5e   : > { %292 = vrot.lane.b32.xlu1 %v214_v15, %s2724_s23  ;;  %288 = vrot.lane.b32.xlu0 %v196_v14, %s2724_s23 }
  0x62   : > { %300 = vrot.lane.b32.xlu1 %v214_v15, %s2725_s24  ;;  %296 = vrot.lane.b32.xlu0 %v196_v14, %s2725_s24 }
  0x66   : > { %310 = vrot.lane.b32.xlu1 %v221_v29, %s2719_s8  ;;  %305 = vrot.lane.b32.xlu0 %v203_v30, %s2719_s8  ;;  %s2427_s8 = sld [smem:[#allocation5 + $0x47]] }
  0x6a   : > { %318 = vrot.lane.b32.xlu1 %v221_v29, %s2718_s7  ;;  %314 = vrot.lane.b32.xlu0 %v203_v30, %s2718_s7  ;;  %s2426_s7 = sld [smem:[#allocation5 + $0x16]] }
  0x6e   : > { %326 = vrot.lane.b32.xlu1 %v221_v29, %s2720_s15  ;;  %322 = vrot.lane.b32.xlu0 %v203_v30, %s2720_s15  ;;  %s2428_s15 = sld [smem:[#allocation5 + $0x1d]] }
  0x72   : > { %334 = vrot.lane.b32.xlu1 %v221_v29, %s2721_s16  ;;  %330 = vrot.lane.b32.xlu0 %v203_v30, %s2721_s16  ;;  %s2429_s16 = sld [smem:[#allocation5 + $0x4e]] }
  0x76   : > { %342 = vrot.lane.b32.xlu1 %v221_v29, %s2722_s18  ;;  %338 = vrot.lane.b32.xlu0 %v203_v30, %s2722_s18  ;;  %s2430_s18 = sld [smem:[#allocation5 + $0x24]] }
  0x7a   : > { %350 = vrot.lane.b32.xlu1 %v221_v29, %s2723_s20  ;;  %346 = vrot.lane.b32.xlu0 %v203_v30, %s2723_s20  ;;  %s2431_s20 = sld [smem:[#allocation5 + $0x55]] }
  0x7e   : > { %358 = vrot.lane.b32.xlu1 %v221_v29, %s2724_s23  ;;  %354 = vrot.lane.b32.xlu0 %v203_v30, %s2724_s23  ;;  %s2432_s23 = sld [smem:[#allocation5 + $0x2b]] }
  0x82   : > { %366 = vrot.lane.b32.xlu1 %v221_v29, %s2725_s24  ;;  %362 = vrot.lane.b32.xlu0 %v203_v30, %s2725_s24  ;;  %s2433_s24 = sld [smem:[#allocation5 + $0x5c]] }
  0xb8   : > { %v249_v31 = vpop.permute.xlu1 %248  ;;  %v239_v32 = vpop.permute.xlu0 %238 }
  0xb9   : > { %251 = vst.msk [vmem:[#allocation4 + $0x4] sm:$0x1] %vm241_vm3, %v249_v31  ;;  %242 = vst.msk [vmem:[#allocation4 + $0x3] sm:$0x1] %vm241_vm3, %v239_v32 }
  0xbc   : > { %v253_v33 = vpop.permute.xlu1 %252  ;;  %v245_v34 = vpop.permute.xlu0 %244 }
  0xbd   : > { %255 = vst.msk [vmem:[#allocation4 + $0x1c] sm:$0x1] %vm241_vm3, %v253_v33  ;;  %247 = vst.msk [vmem:[#allocation4 + $0x1b] sm:$0x1] %vm241_vm3, %v245_v34 }
  0xc0   : > { %v261_v35 = vpop.permute.xlu1 %260  ;;  %v257_v36 = vpop.permute.xlu0 %256 }
  0xc1   : > { %263 = vst.msk [vmem:[#allocation4 + $0x1d] sm:$0x1] %vm241_vm3, %v261_v35  ;;  %259 = vst.msk [vmem:[#allocation4 + $0x5] sm:$0x1] %vm241_vm3, %v257_v36 }
  0xc4   : > { %v269_v37 = vpop.permute.xlu1 %268  ;;  %v265_v38 = vpop.permute.xlu0 %264 }
  0xc5   : > { %271 = vst.msk [vmem:[#allocation4 + $0x1e] sm:$0x1] %vm241_vm3, %v269_v37  ;;  %267 = vst.msk [vmem:[#allocation4 + $0x6] sm:$0x1] %vm241_vm3, %v265_v38  ;;  %v710_v37 = vstv %s2426_s7  ;;  %s2445_s7 = sld [smem:[#allocation5 + $0x56]] }
  0xc8   : > { %v277_v39 = vpop.permute.xlu1 %276  ;;  %v273_v40 = vpop.permute.xlu0 %272 }
  0xc9   : > { %279 = vst.msk [vmem:[#allocation4 + $0x1f] sm:$0x1] %vm241_vm3, %v277_v39  ;;  %275 = vst.msk [vmem:[#allocation4 + $0x7] sm:$0x1] %vm241_vm3, %v273_v40 }
  0xcc   : > { %v285_v41 = vpop.permute.xlu1 %284  ;;  %v281_v42 = vpop.permute.xlu0 %280 }
  0xcd   : > { %287 = vst.msk [vmem:[#allocation4 + $0x20] sm:$0x1] %vm241_vm3, %v285_v41  ;;  %283 = vst.msk [vmem:[#allocation4 + $0x8] sm:$0x1] %vm241_vm3, %v281_v42 }
  0xd0   : > { %v2870_v44 = vld [vmem:[#allocation4] sm:$0xff]  ;;  %v293_v45 = vpop.permute.xlu1 %292  ;;  %v289_v46 = vpop.permute.xlu0 %288  ;;  %v2877_v48 = vld [vmem:[#allocation4 + $0x18] sm:$0xff] }
  0xd1   : > { %295 = vst.msk [vmem:[#allocation4 + $0x21] sm:$0x1] %vm241_vm3, %v293_v45  ;;  %291 = vst.msk [vmem:[#allocation4 + $0x9] sm:$0x1] %vm241_vm3, %v289_v46  ;;  %v599_v47 = vmul.f32 %v598_v43, %v2870_v44  ;;  %v613_v52 = vmul.f32 %v612_v49, %v2877_v48  ;;  %v879_v56 = vmul.f32 %v878_v53, %v2870_v44 }
  0xd2   : > { %v893_v60 = vmul.f32 %v892_v57, %v2877_v48  ;;  %v627_v6 = vmul.f32 %v626_v5, %v2870_v44  ;;  %v648_v17 = vmul.f32 %v647_v11, %v2877_v48  ;;  %v669_v26 = vmul.f32 %v668_v20, %v2870_v44 }
  0xd3   : > { %603 = vrot.lane.b32.xlu0 %v599_v47, %s2726_s29  ;;  %v690_v33 = vmul.f32 %v689_v27, %v2877_v48  ;;  %v711_v46 = vmul.f32 %v710_v37, %v2870_v44  ;;  %v731_v47 = vstv %s2427_s8  ;;  %s2446_s8 = sld [smem:[#allocation5 + $0x2c]] }
  0xd4   : > { %v301_v50 = vpop.permute.xlu1 %300  ;;  %v297_v51 = vpop.permute.xlu0 %296  ;;  %v633_v15 = vrot.slane %v627_v6, 1  ;;  %v654_v25 = vrot.slane %v648_v17, 1  ;;  %v675_v32 = vrot.slane %v669_v26, 2 }
  0xd5   : > { %303 = vst.msk [vmem:[#allocation4 + $0x22] sm:$0x1] %vm241_vm3, %v301_v50  ;;  %299 = vst.msk [vmem:[#allocation4 + $0xa] sm:$0x1] %vm241_vm3, %v297_v51 }
  0xd7   : > { %617 = vrot.lane.b32.xlu0 %v613_v52, %s2726_s29 }
  0xd8   : > { %v311_v54 = vpop.permute.xlu1 %310  ;;  %v306_v55 = vpop.permute.xlu0 %305 }
  0xd9   : > { %313 = vst.msk [vmem:[#allocation4 + $0x23] sm:$0x1] %vm241_vm3, %v311_v54  ;;  %308 = vst.msk [vmem:[#allocation4 + $0xb] sm:$0x1] %vm241_vm3, %v306_v55  ;;  %v717_v55 = vrot.slane %v711_v46, 3 }
  0xdb   : > { %883 = vrot.lane.b32.xlu0 %v879_v56, %s4703_s30  ;;  %v732_v56 = vmul.f32 %v731_v47, %v2877_v48 }
  0xdc   : > { %v319_v58 = vpop.permute.xlu1 %318  ;;  %v315_v59 = vpop.permute.xlu0 %314 }
  0xdd   : > { %321 = vst.msk [vmem:[#allocation4 + $0x24] sm:$0x1] %vm241_vm3, %v319_v58  ;;  %317 = vst.msk [vmem:[#allocation4 + $0xc] sm:$0x1] %vm241_vm3, %v315_v59 }
  0xdf   : > { %897 = vrot.lane.b32.xlu0 %v893_v60, %s4703_s30 }
  0xe0   : > { %v327_v61 = vpop.permute.xlu1 %326  ;;  %v323_v62 = vpop.permute.xlu0 %322 }
  0xe1   : > { %329 = vst.msk [vmem:[#allocation4 + $0x25] sm:$0x1] %vm241_vm3, %v327_v61  ;;  %325 = vst.msk [vmem:[#allocation4 + $0xd] sm:$0x1] %vm241_vm3, %v323_v62 }
  0xe4   : > { %v335_v63 = vpop.permute.xlu1 %334  ;;  %v331_v0 = vpop.permute.xlu0 %330 }
  0xe5   : > { %337 = vst.msk [vmem:[#allocation4 + $0x26] sm:$0x1] %vm241_vm3, %v335_v63  ;;  %333 = vst.msk [vmem:[#allocation4 + $0xe] sm:$0x1] %vm241_vm3, %v331_v0  ;;  %v738_v0 = vrot.slane %v732_v56, 3 }
  0xe8   : > { %v343_v1 = vpop.permute.xlu1 %342  ;;  %v339_v2 = vpop.permute.xlu0 %338 }
  0xe9   : > { %345 = vst.msk [vmem:[#allocation4 + $0x27] sm:$0x1] %vm241_vm3, %v343_v1  ;;  %341 = vst.msk [vmem:[#allocation4 + $0xf] sm:$0x1] %vm241_vm3, %v339_v2  ;;  %v773_v2 = vstv %s2429_s16  ;;  %s3155_s16 = sld [smem:[#allocation5 + $0x3]] }
  0xec   : > { %v351_v3 = vpop.permute.xlu1 %350  ;;  %v347_v4 = vpop.permute.xlu0 %346 }
  0xed   : > { %353 = vst.msk [vmem:[#allocation4 + $0x28] sm:$0x1] %vm241_vm3, %v351_v3  ;;  %349 = vst.msk [vmem:[#allocation4 + $0x10] sm:$0x1] %vm241_vm3, %v347_v4 }
  0xf0   : > { %v2912_v7 = vld [vmem:[#allocation4 + $0x20] sm:$0xff]  ;;  %v2914_v8 = vld [vmem:[#allocation4 + $0x8] sm:$0xff]  ;;  %v359_v9 = vpop.permute.xlu1 %358  ;;  %v355_v10 = vpop.permute.xlu0 %354 }
  0xf1   : > { %361 = vst.msk [vmem:[#allocation4 + $0x29] sm:$0x1] %vm241_vm3, %v359_v9  ;;  %357 = vst.msk [vmem:[#allocation4 + $0x11] sm:$0x1] %vm241_vm3, %v355_v10  ;;  %v600_v12 = vmul.f32 %v598_v43, %v2914_v8  ;;  %v628_v13 = vmul.f32 %v626_v5, %v2914_v8  ;;  %v2923_v14 = vmul.f32 %v647_v11, %v2912_v7  ;;  %v696_v43 = vrot.slane %v690_v33, 2 }
  0xf2   : > { %v614_v22 = vmul.f32 %v612_v49, %v2912_v7  ;;  %v2935_v24 = vmul.f32 %v668_v20, %v2914_v8  ;;  %v880_v29 = vmul.f32 %v878_v53, %v2914_v8  ;;  %v2946_v31 = vmul.f32 %v689_v27, %v2912_v7 }
  0xf3   : > { %605 = vrot.lane.b32.xlu1 %v600_v12, %s2726_s29  ;;  %v634_v16 = vrot.slane %v628_v13, 1  ;;  %v655_v23 = vrot.slane %v2923_v14, 1  ;;  %v894_v36 = vmul.f32 %v892_v57, %v2912_v7  ;;  %v2962_v41 = vmul.f32 %v710_v37, %v2914_v8 }
  0xf4   : > { %v367_v18 = vpop.permute.xlu1 %366  ;;  %v363_v19 = vpop.permute.xlu0 %362  ;;  %v676_v30 = vrot.slane %v2935_v24, 2  ;;  %v697_v39 = vrot.slane %v2946_v31, 2  ;;  %v2972_v52 = vmul.f32 %v731_v47, %v2912_v7  ;;  %v752_v57 = vstv %s2428_s15  ;;  %s2447_s15 = sld [smem:[#allocation5 + $0x5d]] }
  0xf5   : > { %369 = vst.msk [vmem:[#allocation4 + $0x2a] sm:$0x1] %vm241_vm3, %v367_v18  ;;  %365 = vst.msk [vmem:[#allocation4 + $0x12] sm:$0x1] %vm241_vm3, %v363_v19  ;;  %v635_v21 = vsel %vm396_vm4, %v633_v15, %v634_v16  ;;  %v656_v28 = vsel %vm396_vm4, %v654_v25, %v655_v23  ;;  %v718_v51 = vrot.slane %v2962_v41, 3  ;;  %v2981_v60 = vmul.f32 %v752_v57, %v2914_v8 }
  0xf6   : > { %638 = vrot.lane.b32.xlu0 %v635_v21, %s2726_s29  ;;  %v677_v38 = vsel %vm431_vm5, %v675_v32, %v676_v30  ;;  %v698_v49 = vsel %vm431_vm5, %v696_v43, %v697_v39  ;;  %v739_v59 = vrot.slane %v2972_v52, 3  ;;  %v753_v1 = vmul.f32 %v752_v57, %v2870_v44 }
  0xf7   : > { %619 = vrot.lane.b32.xlu1 %v614_v22, %s2726_s29  ;;  %v719_v58 = vsel %vm466_vm6, %v717_v55, %v718_v51  ;;  %v760_v4 = vrot.slane %v2981_v60, 4  ;;  %v774_v12 = vmul.f32 %v773_v2, %v2877_v48  ;;  %v794_v13 = vstv %s2430_s18  ;;  %s3157_s18 = sld [smem:[#allocation5]] }
  0xf8   : > { %v740_v3 = vsel %vm466_vm6, %v738_v0, %v739_v59  ;;  %v795_v21 = vmul.f32 %v794_v13, %v2870_v44  ;;  %v815_v22 = vstv %s2431_s20  ;;  %v836_v31 = vstv %s2432_s23  ;;  %s3159_s20 = sld [smem:[#allocation5 + $0x31]]  ;;  %s3164_s23 = sld [smem:[#allocation5 + $0x7]] }
  0xf9   : > { %v3011_v25 = vmul.f32 %v815_v22, %v2912_v7  ;;  %v837_v41 = vmul.f32 %v836_v31, %v2870_v44 }
  0xfa   : > { %659 = vrot.lane.b32.xlu0 %v656_v28, %s2726_s29 }
  0xfb   : > { %885 = vrot.lane.b32.xlu1 %v880_v29, %s4703_s30  ;;  %v801_v29 = vrot.slane %v795_v21, 5  ;;  %v823_v33 = vrot.slane %v3011_v25, 5 }
  0xfc   : > { %v2951_v34 = vld [vmem:[#allocation4 + $0x28] sm:$0x3f]  ;;  %v2953_v35 = vld [vmem:[#allocation4 + $0x10] sm:$0x3f] }
  0xfd   : > { %v629_v40 = vmul.f32 %v626_v5, %v2953_v35  ;;  %v650_v42 = vmul.f32 %v647_v11, %v2951_v34  ;;  %v671_v54 = vmul.f32 %v668_v20, %v2953_v35  ;;  %v692_v63 = vmul.f32 %v689_v27, %v2951_v34 }
  0xfe   : > { %680 = vrot.lane.b32.xlu0 %v677_v38, %s2726_s29  ;;  %v2991_v5 = vmul.f32 %v773_v2, %v2912_v7  ;;  %v713_v10 = vmul.f32 %v710_v37, %v2953_v35  ;;  %v759_v11 = vrot.slane %v753_v1, 4  ;;  %v734_v19 = vmul.f32 %v731_v47, %v2951_v34 }
  0xff   : > { %899 = vrot.lane.b32.xlu1 %v894_v36, %s4703_s30  ;;  %v636_v45 = vrot.slane %v629_v40, 1  ;;  %v657_v53 = vrot.slane %v650_v42, 1  ;;  %v678_v62 = vrot.slane %v671_v54, 2  ;;  %v699_v9 = vrot.slane %v692_v63, 2 }
 0x100   : > { %v761_v14 = vsel %vm189_vm2, %v759_v11, %v760_v4  ;;  %v781_v15 = vrot.slane %v2991_v5, 4  ;;  %v720_v18 = vrot.slane %v713_v10, 3  ;;  %v780_v20 = vrot.slane %v774_v12, 4 }
 0x101   : > { %v637_v50 = vsel %vm396_vm4, %v634_v16, %v636_v45  ;;  %v658_v61 = vsel %vm396_vm4, %v655_v23, %v657_v53  ;;  %v679_v6 = vsel %vm431_vm5, %v676_v30, %v678_v62  ;;  %v3001_v16 = vmul.f32 %v794_v13, %v2914_v8 }
 0x102   : > { %701 = vrot.lane.b32.xlu0 %v698_v49, %s2726_s29  ;;  %v700_v17 = vsel %vm431_vm5, %v697_v39, %v699_v9  ;;  %v782_v23 = vsel %vm189_vm2, %v780_v20, %v781_v15  ;;  %v721_v26 = vsel %vm466_vm6, %v718_v51, %v720_v18  ;;  %v741_v27 = vrot.slane %v734_v19, 3 }
 0x103   : > { %640 = vrot.lane.b32.xlu1 %v637_v50, %s2726_s29  ;;  %v802_v24 = vrot.slane %v3001_v16, 5  ;;  %v755_v28 = vmul.f32 %v752_v57, %v2953_v35  ;;  %v816_v30 = vmul.f32 %v815_v22, %v2877_v48  ;;  %v3021_v36 = vmul.f32 %v836_v31, %v2914_v8 }
 0x104   : > { %v742_v37 = vsel %vm466_vm6, %v739_v59, %v741_v27  ;;  %v776_v39 = vmul.f32 %v773_v2, %v2951_v34  ;;  %v857_v42 = vstv %s2433_s24  ;;  %v797_v50 = vmul.f32 %v794_v13, %v2953_v35  ;;  %s3166_s24 = sld [smem:[#allocation5 + $0x38]] }
 0x105   : > { %v803_v32 = vsel %vm535_vm7, %v801_v29, %v802_v24  ;;  %v762_v38 = vrot.slane %v755_v28, 4  ;;  %v822_v40 = vrot.slane %v816_v30, 5  ;;  %v844_v45 = vrot.slane %v3021_v36, 6 }
 0x106   : > { %722 = vrot.lane.b32.xlu0 %v719_v58, %s2726_s29  ;;  %v3031_v46 = vmul.f32 %v857_v42, %v2912_v7  ;;  %v783_v49 = vrot.slane %v776_v39, 4  ;;  %v843_v51 = vrot.slane %v837_v41, 6  ;;  %v858_v52 = vmul.f32 %v857_v42, %v2877_v48 }
 0x107   : > { %661 = vrot.lane.b32.xlu1 %v658_v61, %s2726_s29  ;;  %v824_v43 = vsel %vm535_vm7, %v822_v40, %v823_v33  ;;  %v763_v47 = vsel %vm189_vm2, %v760_v4, %v762_v38  ;;  %v906_v53 = vstv %s2436_s25  ;;  %v804_v58 = vrot.slane %v797_v50, 5  ;;  %s3170_s25 = sld [smem:[#allocation5 + $0xe]] }
 0x108   : > { %v845_v54 = vsel %vm570_vm8, %v843_v51, %v844_v45  ;;  %v865_v55 = vrot.slane %v3031_v46, 6  ;;  %v3041_v56 = vmul.f32 %v906_v53, %v2914_v8  ;;  %v784_v57 = vsel %vm189_vm2, %v781_v15, %v783_v49 }
 0x109   : > { %v818_v59 = vmul.f32 %v815_v22, %v2951_v34  ;;  %v864_v60 = vrot.slane %v858_v52, 6  ;;  %v907_v61 = vmul.f32 %v906_v53, %v2870_v44  ;;  %v927_v62 = vstv %s2437_s26  ;;  %s3172_s26 = sld [smem:[#allocation5 + $0xa]] }
 0x10a   : > { %743 = vrot.lane.b32.xlu0 %v740_v3, %s2726_s29  ;;  %v914_v0 = vrot.slane %v3041_v56, 1  ;;  %v3051_v1 = vmul.f32 %v927_v62, %v2912_v7  ;;  %v805_v2 = vsel %vm535_vm7, %v802_v24, %v804_v58  ;;  %v839_v4 = vmul.f32 %v836_v31, %v2953_v35 }
 0x10b   : > { %682 = vrot.lane.b32.xlu1 %v679_v6, %s2726_s29  ;;  %v866_v63 = vsel %vm570_vm8, %v864_v60, %v865_v55  ;;  %v825_v3 = vrot.slane %v818_v59, 5  ;;  %v913_v5 = vrot.slane %v907_v61, 1  ;;  %v928_v6 = vmul.f32 %v927_v62, %v2877_v48 }
 0x10c   : > { %v948_v9 = vstv %s2438_s27  ;;  %v935_v11 = vrot.slane %v3051_v1, 1  ;;  %v860_v15 = vmul.f32 %v857_v42, %v2951_v34  ;;  %v969_v18 = vstv %s2439_s28  ;;  %s3174_s27 = sld [smem:[#allocation5 + $0x3f]]  ;;  %s3180_s28 = sld [smem:[#allocation5 + $0x34]] }
 0x10d   : > { %v915_v10 = vsel %vm396_vm4, %v913_v5, %v914_v0  ;;  %v3061_v12 = vmul.f32 %v948_v9, %v2914_v8  ;;  %v826_v13 = vsel %vm535_vm7, %v823_v33, %v825_v3  ;;  %v934_v16 = vrot.slane %v928_v6, 1 }
 0x10e   : > { %764 = vrot.lane.b32.xlu0 %v761_v14, %s2726_s29  ;;  %v846_v14 = vrot.slane %v839_v4, 6  ;;  %v3071_v21 = vmul.f32 %v969_v18, %v2912_v7  ;;  %v909_v24 = vmul.f32 %v906_v53, %v2953_v35  ;;  %v990_v27 = vstv %s2440_s3  ;;  %s3182_s3 = sld [smem:[#allocation5 + $0x15]] }
 0x10f   : > { %703 = vrot.lane.b32.xlu1 %v700_v17, %s2726_s29  ;;  %v949_v17 = vmul.f32 %v948_v9, %v2870_v44  ;;  %v936_v19 = vsel %vm396_vm4, %v934_v16, %v935_v11  ;;  %v956_v20 = vrot.slane %v3061_v12, 2  ;;  %v3081_v30 = vmul.f32 %v990_v27, %v2914_v8 }
 0x110   : > { %v847_v22 = vsel %vm570_vm8, %v844_v45, %v846_v14  ;;  %v977_v29 = vrot.slane %v3071_v21, 2  ;;  %v930_v33 = vmul.f32 %v927_v62, %v2951_v34  ;;  %v1011_v38 = vstv %s2441_s4  ;;  %s3184_s4 = sld [smem:[#allocation5 + $0x46]] }
 0x111   : > { %v955_v25 = vrot.slane %v949_v17, 2  ;;  %v998_v40 = vrot.slane %v3081_v30, 3  ;;  %v3091_v41 = vmul.f32 %v1011_v38, %v2912_v7  ;;  %v951_v45 = vmul.f32 %v948_v9, %v2953_v35 }
 0x112   : > { %785 = vrot.lane.b32.xlu0 %v782_v23, %s2726_s29  ;;  %v867_v23 = vrot.slane %v860_v15, 6  ;;  %v1032_v49 = vstv %s2442_s5  ;;  %v1053_v58 = vstv %s2443_s6  ;;  %v1095_v14 = vstv %s2445_s7  ;;  %s3189_s5 = sld [smem:[#allocation5 + $0x1c]]  ;;  %s3191_s6 = sld [smem:[#allocation5 + $0x4d]] }
 0x113   : > { %724 = vrot.lane.b32.xlu1 %v721_v26, %s2726_s29  ;;  %v970_v26 = vmul.f32 %v969_v18, %v2877_v48  ;;  %v957_v28 = vsel %vm431_vm5, %v955_v25, %v956_v20  ;;  %v1019_v51 = vrot.slane %v3091_v41, 3  ;;  %v3101_v52 = vmul.f32 %v1032_v49, %v2914_v8  ;;  %s3196_s7 = sld [smem:[#allocation5 + $0x3b]] }
 0x114   : > { %v868_v31 = vsel %vm570_vm8, %v865_v55, %v867_v23  ;;  %v972_v55 = vmul.f32 %v969_v18, %v2951_v34  ;;  %v3111_v61 = vmul.f32 %v1053_v58, %v2912_v7  ;;  %v3131_v17 = vmul.f32 %v1095_v14, %v2912_v7 }
 0x115   : > { %v976_v36 = vrot.slane %v970_v26, 2  ;;  %v1040_v60 = vrot.slane %v3101_v52, 4  ;;  %v1116_v23 = vstv %s2446_s8  ;;  %s3198_s8 = sld [smem:[#allocation5 + $0x54]]  ;;  %v1158_v52 = vstv %s3155_s16  ;;  %s3975_s16 = sld [smem:[#allocation5 + $0x27]] }
 0x116   : > { %806 = vrot.lane.b32.xlu0 %v803_v32, %s2726_s29  ;;  %v916_v32 = vrot.slane %v909_v24, 1  ;;  %v1061_v5 = vrot.slane %v3111_v61, 4  ;;  %v1103_v25 = vrot.slane %v3131_v17, 5  ;;  %v3141_v26 = vmul.f32 %v1116_v23, %v2914_v8 }
 0x117   : > { %745 = vrot.lane.b32.xlu1 %v742_v37, %s2726_s29  ;;  %v991_v37 = vmul.f32 %v990_v27, %v2870_v44  ;;  %v978_v39 = vsel %vm431_vm5, %v976_v36, %v977_v29  ;;  %v1172_v61 = vstv %s3180_s28  ;;  %s4059_s28 = sld [smem:[#allocation5 + $0x5f]] }
 0x118   : > { %v917_v42 = vsel %vm396_vm4, %v914_v0, %v916_v32  ;;  %v993_v0 = vmul.f32 %v990_v27, %v2953_v35  ;;  %v1137_v32 = vstv %s2447_s15  ;;  %v1124_v36 = vrot.slane %v3141_v26, 6  ;;  %s3200_s15 = sld [smem:[#allocation5 + $0x2a]] }
 0x119   : > { %v997_v46 = vrot.slane %v991_v37, 3  ;;  %v3153_v37 = vmul.f32 %v1137_v32, %v2912_v7  ;;  %v3316_v26 = vstv %s3213_s1  ;;  %s3675_s1 = sld [smem:[#allocation5 + $0x3c]] }
 0x11a   : > { %827 = vrot.lane.b32.xlu0 %v824_v43, %s2726_s29  ;;  %v937_v43 = vrot.slane %v930_v33, 1 }
 0x11b   : > { %766 = vrot.lane.b32.xlu1 %v763_v47, %s2726_s29  ;;  %v1012_v47 = vmul.f32 %v1011_v38, %v2877_v48  ;;  %v999_v50 = vsel %vm466_vm6, %v997_v46, %v998_v40 }
 0x11c   : > { %v938_v53 = vsel %vm396_vm4, %v935_v11, %v937_v43  ;;  %v1014_v11 = vmul.f32 %v1011_v38, %v2951_v34 }
 0x11d   : > { %v1018_v56 = vrot.slane %v1012_v47, 3 }
 0x11e   : > { %848 = vrot.lane.b32.xlu0 %v845_v54, %s2726_s29  ;;  %v958_v54 = vrot.slane %v951_v45, 2  ;;  %v1145_v45 = vrot.slane %v3153_v37, 6  ;;  %v1229_v37 = vmul.f32 %v3316_v26, %v2870_v44 }
 0x11f   : > { %787 = vrot.lane.b32.xlu1 %v784_v57, %s2726_s29  ;;  %v1033_v57 = vmul.f32 %v1032_v49, %v2870_v44  ;;  %v1020_v59 = vsel %vm466_vm6, %v1018_v56, %v1019_v51  ;;  %v1119_v56 = vmul.f32 %v1116_v23, %v2953_v35 }
 0x120   : > { %v959_v62 = vsel %vm431_vm5, %v956_v20, %v958_v54  ;;  %v1035_v20 = vmul.f32 %v1032_v49, %v2953_v35  ;;  %v1098_v49 = vmul.f32 %v1095_v14, %v2951_v34 }
 0x121   : > { %v1039_v1 = vrot.slane %v1033_v57, 4  ;;  %v1159_v57 = vmul.f32 %v1158_v52, %v2870_v44 }
 0x122   : > { %869 = vrot.lane.b32.xlu0 %v866_v63, %s2726_s29  ;;  %v979_v63 = vrot.slane %v972_v55, 2  ;;  %v1105_v55 = vrot.slane %v1098_v49, 5 }
 0x123   : > { %808 = vrot.lane.b32.xlu1 %v805_v2, %s2726_s29  ;;  %v1054_v2 = vmul.f32 %v1053_v58, %v2877_v48  ;;  %v1041_v4 = vsel %vm189_vm2, %v1039_v1, %v1040_v60  ;;  %v1126_v1 = vrot.slane %v1119_v56, 6 }
 0x124   : > { %v980_v9 = vsel %vm431_vm5, %v977_v29, %v979_v63  ;;  %v1056_v29 = vmul.f32 %v1053_v58, %v2951_v34  ;;  %v3222_v58 = vstv %s3172_s26  ;;  %v3238_v63 = vstv %s3164_s23  ;;  %s2728_s26 = smov 125   ;;  %s3275_s23 = sld [smem:[#allocation5 + $0x57]] }
 0x125   : > { %v1060_v12 = vrot.slane %v1054_v2, 4  ;;  %v1140_v2 = vmul.f32 %v1137_v32, %v2951_v34 }
 0x126   : > { %918 = vrot.lane.b32.xlu0 %v915_v10, %s4703_s30  ;;  %v1000_v10 = vrot.slane %v993_v0, 3  ;;  %v1106_v0 = vsel %vm535_vm7, %v1103_v25, %v1105_v55 }
 0x127   : > { %829 = vrot.lane.b32.xlu1 %v826_v13, %s2726_s29  ;;  %v1062_v15 = vsel %vm189_vm2, %v1060_v12, %v1061_v5  ;;  %v1173_v12 = vmul.f32 %v1172_v61, %v2877_v48 }
 0x128   : > { %v1001_v18 = vsel %vm466_vm6, %v998_v40, %v1000_v10  ;;  %v3265_v10 = vstv %s3184_s4  ;;  %s4117_s4 = sld [smem:[#allocation5 + $0x5]] }
 0x12a   : > { %939 = vrot.lane.b32.xlu0 %v936_v19, %s4703_s30  ;;  %v1021_v19 = vrot.slane %v1014_v11, 3  ;;  %v3370_v49 = vstv %s3275_s23  ;;  %s4229_s23 = sld [smem:[#allocation5 + $0x4b]] }
 0x12b   : > { %850 = vrot.lane.b32.xlu1 %v847_v22, %s2726_s29  ;;  %v1096_v22 = vmul.f32 %v1095_v14, %v2877_v48  ;;  %v3280_v14 = vstv %s3189_s5  ;;  %s2478_s5 = sld [smem:[#allocation5 + $0xc]] }
 0x12c   : > { %v1022_v27 = vsel %vm466_vm6, %v1019_v51, %v1021_v19  ;;  %v3296_v19 = vstv %s3198_s8  ;;  %s2730_s8 = smov 123  }
 0x12d   : > { %v1102_v30 = vrot.slane %v1096_v22, 5  ;;  %v3307_v22 = vstv %s3200_s15  ;;  %s2481_s15 = sld [smem:[#allocation5 + $0x44]] }
 0x12e   : > { %960 = vrot.lane.b32.xlu0 %v957_v28, %s4703_s30  ;;  %v1042_v28 = vrot.slane %v1035_v20, 4  ;;  %v1127_v20 = vsel %vm570_vm8, %v1124_v36, %v1126_v1 }
 0x12f   : > { %871 = vrot.lane.b32.xlu1 %v868_v31, %s2726_s29  ;;  %s2444_s29 = sld [smem:[#allocation5 + $0x25]]  ;;  %v1117_v31 = vmul.f32 %v1116_v23, %v2870_v44  ;;  %v1104_v33 = vsel %vm535_vm7, %v1102_v30, %v1103_v25 }
 0x130   : > { %v1043_v38 = vsel %vm189_vm2, %v1040_v60, %v1042_v28  ;;  %v4713_v60 = vstv %s3159_s20  ;;  %v3322_v28 = vstv %s3224_s13  ;;  %s2729_s13 = smov 124  }
 0x131   : > { %v1123_v41 = vrot.slane %v1117_v31, 6  ;;  %v1271_v1 = vmul.f32 %v3322_v28, %v2870_v44 }
 0x132   : > { %981 = vrot.lane.b32.xlu0 %v978_v39, %s4703_s30  ;;  %v1063_v39 = vrot.slane %v1056_v29, 4  ;;  %v3325_v29 = vstv %s3226_s22  ;;  %s3916_s22 = sld [smem:[#allocation5 + $0x20]] }
 0x133   : > { %920 = vrot.lane.b32.xlu1 %v917_v42, %s4703_s30  ;;  %v1138_v42 = vmul.f32 %v1137_v32, %v2877_v48  ;;  %v1125_v43 = vsel %vm570_vm8, %v1123_v41, %v1124_v36  ;;  %v3333_v32 = vmul.f32 %v3316_v26, %v2914_v8  ;;  %v3351_v41 = vstv %s3247_s9  ;;  %s3714_s9 = sld [smem:[#allocation5 + $0x12]] }
 0x134   : > { %v1064_v46 = vsel %vm189_vm2, %v1061_v5, %v1063_v39  ;;  %v3256_v5 = vstv %s3174_s27  ;;  %s3302_s27 = sld [smem:[#allocation5 + $0x4]] }
 0x135   : > { %v1074_v3 = vstv %s2444_s29  ;;  %s3194_s29 = sld [smem:[#allocation5 + $0x23]]  ;;  %v4710_v55 = vrot.slane %v3333_v32, 2 }
 0x136   : > { %1002 = vrot.lane.b32.xlu0 %v999_v50, %s4703_s30  ;;  %v3121_v6 = vmul.f32 %v1074_v3, %v2914_v8  ;;  %v1075_v13 = vmul.f32 %v1074_v3, %v2870_v44  ;;  %v1077_v40 = vmul.f32 %v1074_v3, %v2953_v35  ;;  %v1144_v50 = vrot.slane %v1138_v42, 6 }
 0x137   : > { %941 = vrot.lane.b32.xlu1 %v938_v53, %s4703_s30  ;;  %v3250_v3 = vstv %s3166_s24  ;;  %s3277_s24 = sld [smem:[#allocation5 + $0x2d]]  ;;  %v384_v42 = vmul.f32 %v4713_v60, %v2877_v48 }
 0x138   : > { %v1082_v16 = vrot.slane %v3121_v6, 5  ;;  %v1081_v21 = vrot.slane %v1075_v13, 5  ;;  %v1084_v47 = vrot.slane %v1077_v40, 5  ;;  %v1146_v51 = vsel %vm570_vm8, %v1144_v50, %v1145_v45 }
 0x139   : > { %v1187_v6 = vmul.f32 %v3222_v58, %v2870_v44  ;;  %v3273_v13 = vstv %s3196_s7  ;;  %v3348_v40 = vstv %s3245_s21  ;;  %s3883_s21 = sld [smem:[#allocation5 + $0x4a]]  ;;  %s4167_s7 = sld [smem:[#allocation5 + $0x13]] }
 0x13a   : > { %1023 = vrot.lane.b32.xlu0 %v1020_v59, %s4703_s30  ;;  %v1083_v24 = vsel %vm535_vm7, %v1081_v21, %v1082_v16  ;;  %v1085_v54 = vsel %vm535_vm7, %v1082_v16, %v1084_v47  ;;  %v4711_v59 = vstv %s3157_s18  ;;  %v3288_v17 = vmul.f32 %v3273_v13, %v2912_v7 }
 0x13b   : > { %962 = vrot.lane.b32.xlu1 %v959_v62, %s4703_s30  ;;  %v3233_v62 = vmul.f32 %v3222_v58, %v2914_v8  ;;  %v1147_v21 = vrot.slane %v1140_v2, 6  ;;  %v1208_v25 = vmul.f32 %v3273_v13, %v2877_v48  ;;  %v378_v36 = vmul.f32 %v4711_v59, %v2870_v44 }
 0x13c   : > { %v4714_v31 = vrot.slane %v3288_v17, 1  ;;  %v3367_v47 = vmul.f32 %v3250_v3, %v2877_v48 }
 0x13d   : > { %v1194_v16 = vrot.slane %v3233_v62, 1  ;;  %v1148_v39 = vsel %vm570_vm8, %v1145_v45, %v1147_v21  ;;  %v3363_v45 = vmul.f32 %v3238_v63, %v2914_v8  ;;  %v3373_v50 = vstv %s3277_s24  ;;  %s4254_s24 = sld [smem:[#allocation5 + $0x21]] }
 0x13e   : > { %1044 = vrot.lane.b32.xlu0 %v1041_v4, %s4703_s30  ;;  %v3253_v4 = vstv %s3170_s25  ;;  %s3290_s25 = sld [smem:[#allocation5 + $0x5e]]  ;;  %v3483_v62 = vmul.f32 %v3256_v5, %v2912_v7 }
 0x13f   : > { %983 = vrot.lane.b32.xlu1 %v980_v9, %s4703_s30  ;;  %v3262_v9 = vstv %s3182_s3  ;;  %s3304_s3 = sld [smem:[#allocation5 + $0x35]]  ;;  %v4712_v21 = vrot.slane %v3363_v45, 1 }
 0x142   : > { %1065 = vrot.lane.b32.xlu0 %v1062_v15, %s4703_s30  ;;  %v3283_v15 = vstv %s3191_s6  ;;  %s4137_s6 = sld [smem:[#allocation5 + $0x36]] }
 0x143   : > { %1004 = vrot.lane.b32.xlu1 %v1001_v18, %s4703_s30  ;;  %v3293_v18 = vstv %s3194_s29  ;;  %s2479_s29 = sld [smem:[#allocation5 + $0x3d]] }
 0x145   : > { %v3208_v53 = vpop.permute.xlu0 %603 }
 0x146   : > { %1086 = vrot.lane.b32.xlu0 %v1083_v24, %s4703_s30  ;;  %v1193_v24 = vrot.slane %v1187_v6, 1  ;;  %v386_v6 = vadd.f32 %v384_v42, %v378_v36  ;;  %v1174_v42 = vmul.f32 %v1172_v61, %v2912_v7  ;;  %v1210_v61 = vmul.f32 %v3273_v13, %v2951_v34 }
 0x147   : > { %1025 = vrot.lane.b32.xlu1 %v1022_v27, %s4703_s30  ;;  %v3319_v27 = vstv %s3216_s17  ;;  %v3447_v13 = vmul.f32 %v3253_v4, %v2914_v8  ;;  %s3840_s17 = sld [smem:[#allocation5 + $0x19]] }
 0x148   : > { %v1195_v30 = vsel %vm396_vm4, %v1193_v24, %v1194_v16  ;;  %v3384_v56 = vmul.f32 %v3319_v27, %v2912_v7  ;;  %v414_v24 = vrot.slane %v3367_v47, 1  ;;  %v3426_v47 = vmul.f32 %v3262_v9, %v2870_v44 }
 0x149   : > { %v3267_v11 = vpop.permute.xlu0 %617 }
 0x14a   : > { %1107 = vrot.lane.b32.xlu0 %v1104_v33, %s4703_s30  ;;  %v3336_v33 = vstv %s3235_s11  ;;  %s3801_s11 = sld [smem:[#allocation5 + $0x43]] }
 0x14b   : > { %1046 = vrot.lane.b32.xlu1 %v1043_v38, %s4703_s30 }
 0x14d   : > { %v3341_v38 = vpop.permute.xlu0 %883 }
 0x14e   : > { %1128 = vrot.lane.b32.xlu0 %v1125_v43, %s4703_s30  ;;  %4735 = vst [vmem:[#allocation17_spill] sm:$0xff] %v3341_v38  ;;  %v390_v43 = vmul.f32 %v3238_v63, %v2870_v44 }
 0x14f   : > { %1067 = vrot.lane.b32.xlu1 %v1064_v46, %s4703_s30  ;;  %s3206_s30 = sld [smem:[#allocation5 + $0x5b]]  ;;  %v1214_v46 = vrot.slane %v1208_v25, 1  ;;  %v3403_v25 = vmul.f32 %v3256_v5, %v2877_v48 }
 0x152   : > { %1149 = vrot.lane.b32.xlu0 %v1146_v51, %s4734_s0  ;;  %v1216_v51 = vsel %vm396_vm4, %v1214_v46, %v4714_v31  ;;  %v3418_v46 = vmul.f32 %v3322_v28, %v2914_v8  ;;  %v1217_v31 = vrot.slane %v1210_v61, 1  ;;  %v4747_v61 = vstv %s3157_s18  ;;  %s4005_s18 = sld [smem:[#allocation5 + $0x58]] }
 0x153   : > { %1088 = vrot.lane.b32.xlu1 %v1085_v54, %s4734_s0  ;;  %v1160_v54 = vmul.f32 %v1158_v52, %v2914_v8  ;;  %v1235_v52 = vrot.slane %v1229_v37, 2  ;;  %v3422_v37 = vmul.f32 %v3250_v3, %v2912_v7 }
 0x155   : > { %v3310_v23 = vstv %s3206_s30  ;;  %s3944_s30 = sld [smem:[#allocation5 + $0x51]] }
 0x156   : > { %1163 = vrot.lane.b32.xlu0 %v1159_v57, %s2728_s26  ;;  %v1189_v57 = vmul.f32 %v3222_v58, %v2953_v35  ;;  %v425_v58 = vmul.f32 %v3253_v4, %v2870_v44 }
 0x157   : > { %1109 = vrot.lane.b32.xlu1 %v1106_v0, %s4734_s0  ;;  %v3390_v0 = vstv %s3290_s25  ;;  %s4278_s25 = sld [smem:[#allocation5 + $0x52]] }
 0x15a   : > { %1177 = vrot.lane.b32.xlu0 %v1173_v12, %s2728_s26  ;;  %v397_v12 = vrot.slane %v390_v43, 1  ;;  %v4715_v43 = vrot.slane %v3384_v56, 2 }
 0x15b   : > { %1130 = vrot.lane.b32.xlu1 %v1127_v20, %s4734_s0  ;;  %v1250_v20 = vmul.f32 %v3319_v27, %v2877_v48 }
 0x15d   : > { %v1256_v2 = vrot.slane %v1250_v20, 2  ;;  %v3457_v20 = vmul.f32 %v3293_v18, %v2870_v44 }
 0x15e   : > { %1198 = vrot.lane.b32.xlu0 %v1195_v30, %s2728_s26  ;;  %v3405_v30 = vpop.permute.xlu0 %897 }
 0x15f   : > { %1151 = vrot.lane.b32.xlu1 %v1148_v39, %s4734_s0  ;;  %4736 = vst [vmem:[#allocation18_spill] sm:$0xff] %v3405_v30  ;;  %v1237_v39 = vsel %vm431_vm5, %v1235_v52, %v4710_v55  ;;  %v3437_v52 = vmul.f32 %v3280_v14, %v2870_v44  ;;  %v3451_v55 = vmul.f32 %v3283_v15, %v2877_v48  ;;  %s3673_s0 = sld [smem:[#allocation5 + $0xb]] }
 0x160   : > { %v1231_v30 = vmul.f32 %v3316_v26, %v2953_v35 }
 0x162   : > { %1219 = vrot.lane.b32.xlu0 %v1216_v51, %s2728_s26  ;;  %v1196_v51 = vrot.slane %v1189_v57, 1  ;;  %v399_v57 = vsel %vm396_vm4, %v397_v12, %v4712_v21  ;;  %v1258_v12 = vsel %vm431_vm5, %v1256_v2, %v4715_v43  ;;  %v449_v2 = vrot.slane %v3403_v25, 2 }
 0x163   : > { %1165 = vrot.lane.b32.xlu1 %v1160_v54, %s2728_s26  ;;  %v3433_v54 = vmul.f32 %v3265_v10, %v2877_v48  ;;  %v404_v38 = vadd.f32 %v399_v57, %v386_v6  ;;  %v1277_v43 = vrot.slane %v1271_v1, 3  ;;  %v1292_v21 = vmul.f32 %v3325_v29, %v2877_v48 }
 0x164   : > { %v1197_v44 = vsel %vm396_vm4, %v1194_v16, %v1196_v51  ;;  %v392_v6 = vmul.f32 %v3238_v63, %v2953_v35  ;;  %v4740_v1 = vrot.slane %v3418_v46, 3  ;;  %v3499_v57 = vmul.f32 %v3336_v33, %v2914_v8 }
 0x165   : > { %v3407_v36 = vpop.permute.xlu1 %605  ;;  %v4742_v63 = vrot.slane %v3288_v17, 1  ;;  %v1238_v16 = vrot.slane %v1231_v30, 2  ;;  %v1298_v60 = vrot.slane %v1292_v21, 3  ;;  %v4743_v17 = vrot.slane %v3447_v13, 2 }
 0x166   : > { %4737 = vst [vmem:[#allocation19_spill] sm:$0xff] %v3407_v36  ;;  %1240 = vrot.lane.b32.xlu0 %v1237_v39, %s2728_s26  ;;  %v432_v39 = vrot.slane %v425_v58, 2  ;;  %v3467_v58 = vmul.f32 %v3325_v29, %v2912_v7  ;;  %v1279_v48 = vsel %vm466_vm6, %v1277_v43, %v4740_v1  ;;  %v1252_v43 = vmul.f32 %v3319_v27, %v2951_v34  ;;  %v3551_v36 = vld [vmem:[#allocation4 + $0x18] sm:$0xff] }
 0x167   : > { %1179 = vrot.lane.b32.xlu1 %v1174_v42, %s2728_s26  ;;  %v1218_v51 = vsel %vm396_vm4, %v4742_v63, %v1217_v31  ;;  %v3522_v27 = vmul.f32 %v3262_v9, %v2914_v8  ;;  %v400_v21 = vrot.slane %v392_v6, 1  ;;  %v379_v30 = vmul.f32 %v4747_v61, %v2914_v8 }
 0x168   : > { %v3453_v59 = vpop.permute.xlu0 %638  ;;  %v434_v31 = vsel %vm431_vm5, %v432_v39, %v4743_v17  ;;  %v3537_v17 = vmul.f32 %v3348_v40, %v2912_v7  ;;  %v1334_v61 = vmul.f32 %v3551_v36, %v3348_v40 }
 0x169   : > { %v3459_v42 = vpop.permute.xlu1 %619 }
 0x16a   : > { %4738 = vst [vmem:[#allocation20_spill] sm:$0xff] %v3459_v42  ;;  %1261 = vrot.lane.b32.xlu0 %v1258_v12, %s2728_s26  ;;  %v4741_v12 = vrot.slane %v3422_v37, 1  ;;  %v1273_v42 = vmul.f32 %v3322_v28, %v2953_v35  ;;  %v3561_v28 = vmul.f32 %v3265_v10, %v2912_v7 }
 0x16b   : > { %1200 = vrot.lane.b32.xlu1 %v1197_v44, %s2728_s26 }
 0x16c   : > { %v3487_v26 = vpop.permute.xlu0 %659  ;;  %v416_v44 = vsel %vm396_vm4, %v414_v24, %v4741_v12 }
 0x16d   : > { %v3491_v25 = vpop.permute.xlu1 %885  ;;  %v421_v1 = vadd.f32 %v416_v44, %v404_v38  ;;  %v4744_v38 = vstv %s3159_s20  ;;  %v4746_v44 = vrot.slane %v3467_v58, 3  ;;  %s4033_s20 = sld [smem:[#allocation5 + $0x2e]] }
 0x16e   : > { %4739 = vst [vmem:[#allocation21_spill] sm:$0xff] %v3491_v25  ;;  %1282 = vrot.lane.b32.xlu0 %v1279_v48, %s2728_s26  ;;  %v3512_v25 = vld [vmem:[#allocation4] sm:$0xff]  ;;  %v385_v48 = vmul.f32 %v4744_v38, %v2912_v7  ;;  %v4748_v38 = vrot.slane %v3333_v32, 2  ;;  %v4749_v32 = vrot.slane %v3483_v62, 2  ;;  %v3578_v7 = vmul.f32 %v3351_v41, %v2914_v8 }
 0x16f   : > { %1221 = vrot.lane.b32.xlu1 %v1218_v51, %s2728_s26  ;;  %v1313_v24 = vmul.f32 %v3512_v25, %v3336_v33  ;;  %v1300_v63 = vsel %vm466_vm6, %v1298_v60, %v4746_v44  ;;  %v439_v60 = vadd.f32 %v434_v31, %v421_v1  ;;  %v410_v44 = vmul.f32 %v3250_v3, %v2951_v34 }
 0x170   : > { %v3527_v51 = vpop.permute.xlu0 %680  ;;  %v1239_v6 = vsel %vm431_vm5, %v4748_v38, %v1238_v16  ;;  %v451_v16 = vsel %vm431_vm5, %v449_v2, %v4749_v32  ;;  %v1355_v3 = vmul.f32 %v3512_v25, %v3351_v41  ;;  %v4753_v38 = vrot.slane %v3499_v57, 4 }
 0x171   : > { %v3529_v12 = vpop.permute.xlu1 %899  ;;  %v1319_v39 = vrot.slane %v1313_v24, 4  ;;  %v4751_v24 = vrot.slane %v3363_v45, 1  ;;  %v387_v32 = vadd.f32 %v385_v48, %v379_v30  ;;  %v3591_v30 = vmul.f32 %v3280_v14, %v2914_v8 }
 0x172   : > { %4745 = vst [vmem:[#allocation22_spill] sm:$0xff] %v3529_v12  ;;  %1303 = vrot.lane.b32.xlu0 %v1300_v63, %s2728_s26  ;;  %v1259_v12 = vrot.slane %v1252_v43, 2  ;;  %v4754_v43 = vrot.slane %v3384_v56, 2 }
 0x173   : > { %1242 = vrot.lane.b32.xlu1 %v1239_v6, %s2728_s26  ;;  %v401_v31 = vsel %vm396_vm4, %v4751_v24, %v400_v21  ;;  %v1321_v2 = vsel %vm189_vm2, %v1319_v39, %v4753_v38  ;;  %v4716_v6 = vrot.slane %v3537_v17, 4  ;;  %v1280_v21 = vrot.slane %v1273_v42, 3 }
 0x174   : > { %v3563_v1 = vpop.permute.xlu0 %701  ;;  %v1260_v45 = vsel %vm431_vm5, %v4754_v43, %v1259_v12  ;;  %v1294_v24 = vmul.f32 %v3325_v29, %v2951_v34  ;;  %v427_v39 = vmul.f32 %v3253_v4, %v2953_v35  ;;  %v1340_v38 = vrot.slane %v1334_v61, 4  ;;  %v3604_v61 = vld [vmem:[#allocation4 + $0x20] sm:$0xff] }
 0x175   : > { %4750 = vst [vmem:[#allocation23_spill] sm:$0xff] %v3563_v1  ;;  %v3570_v63 = vpop.permute.xlu1 %640  ;;  %v417_v1 = vrot.slane %v410_v44, 1  ;;  %v405_v48 = vadd.f32 %v401_v31, %v387_v32  ;;  %v1361_v12 = vrot.slane %v1355_v3, 5  ;;  %v1376_v42 = vmul.f32 %v3551_v36, %v3370_v49 }
 0x176   : > { %4752 = vst [vmem:[#allocation24_spill] sm:$0xff] %v3570_v63  ;;  %1324 = vrot.lane.b32.xlu0 %v1321_v2, %s2728_s26  ;;  %v456_v63 = vadd.f32 %v451_v16, %v439_v60  ;;  %v1342_v4 = vsel %vm189_vm2, %v1340_v38, %v4716_v6  ;;  %v3608_v8 = vmul.f32 %v3604_v61, %v3370_v49  ;;  %v4755_v16 = vrot.slane %v3522_v27, 3 }
 0x177   : > { %1263 = vrot.lane.b32.xlu1 %v1260_v45, %s2728_s26  ;;  %v4756_v43 = vrot.slane %v3426_v47, 3  ;;  %v4757_v31 = vrot.slane %v3418_v46, 3  ;;  %v1301_v32 = vrot.slane %v1294_v24, 3  ;;  %v1315_v45 = vmul.f32 %v3336_v33, %v2953_v35 }
 0x178   : > { %v3593_v56 = vpop.permute.xlu0 %722  ;;  %v4758_v6 = vrot.slane %v3422_v37, 1  ;;  %v445_v47 = vmul.f32 %v3256_v5, %v2951_v34  ;;  %v435_v44 = vrot.slane %v427_v39, 2  ;;  %v3629_v46 = vmul.f32 %v3604_v61, %v3283_v15  ;;  %v3642_v39 = vld [vmem:[#allocation4 + $0x8] sm:$0xff] }
 0x179   : > { %v3598_v60 = vpop.permute.xlu1 %661  ;;  %v469_v3 = vsel %vm466_vm6, %v4756_v43, %v4755_v16  ;;  %v1281_v2 = vsel %vm466_vm6, %v4757_v31, %v1280_v21  ;;  %v1397_v33 = vmul.f32 %v3512_v25, %v3373_v50  ;;  %v4759_v5 = vrot.slane %v3578_v7, 5 }
 0x17a   : > { %1345 = vrot.lane.b32.xlu0 %v1342_v4, %s2728_s26  ;;  %v474_v38 = vadd.f32 %v469_v3, %v456_v63  ;;  %v418_v29 = vsel %vm396_vm4, %v4758_v6, %v417_v1  ;;  %v1382_v4 = vrot.slane %v1376_v42, 5  ;;  %v4760_v42 = vrot.slane %v3561_v28, 3 }
 0x17b   : > { %1284 = vrot.lane.b32.xlu1 %v1281_v2, %s2728_s26  ;;  %v422_v21 = vadd.f32 %v418_v29, %v405_v48  ;;  %v1363_v63 = vsel %vm535_vm7, %v1361_v12, %v4759_v5  ;;  %v3646_v48 = vmul.f32 %v3642_v39, %v3373_v50  ;;  %v4761_v29 = vrot.slane %v3433_v54, 3 }
 0x17c   : > { %v3631_v24 = vpop.permute.xlu0 %743  ;;  %v4762_v43 = vrot.slane %v3467_v58, 3  ;;  %v1322_v3 = vrot.slane %v1315_v45, 4  ;;  %v1336_v31 = vmul.f32 %v3348_v40, %v2951_v34  ;;  %v452_v5 = vrot.slane %v445_v47, 2 }
 0x17d   : > { %v3636_v1 = vpop.permute.xlu1 %682  ;;  %v486_v16 = vsel %vm466_vm6, %v4761_v29, %v4760_v42  ;;  %v4763_v37 = vrot.slane %v3447_v13, 2  ;;  %v462_v54 = vmul.f32 %v3262_v9, %v2953_v35  ;;  %v3667_v58 = vmul.f32 %v3642_v39, %v3293_v18 }
 0x17e   : > { %1366 = vrot.lane.b32.xlu0 %v1363_v63, %s2728_s26  ;;  %v1302_v12 = vsel %vm466_vm6, %v4762_v43, %v1301_v32  ;;  %v491_v2 = vadd.f32 %v486_v16, %v474_v38  ;;  %v1403_v63 = vrot.slane %v1397_v33, 6  ;;  %v1418_v34 = vmul.f32 %v3551_v36, %v3390_v0 }
 0x17f   : > { %v436_v6 = vsel %vm431_vm5, %v4763_v37, %v435_v44  ;;  %1305 = vrot.lane.b32.xlu1 %v1302_v12, %s2728_s26  ;;  %v519_v40 = vrot.slane %v3629_v46, 4  ;;  %v4764_v9 = vrot.slane %v3608_v8, 5  ;;  %v1404_v44 = vrot.slane %v3646_v48, 6 }
 0x180   : > { %v440_v32 = vadd.f32 %v436_v6, %v422_v21  ;;  %v3669_v45 = vpop.permute.xlu0 %764  ;;  %v3686_v38 = vmul.f32 %v3604_v61, %v3390_v0  ;;  %v4765_v47 = vrot.slane %v3591_v30, 4  ;;  %v4766_v21 = vrot.slane %v3437_v52, 4  ;;  %v3704_v52 = vld [vmem:[#allocation4 + $0x28] sm:$0x3f] }
 0x181   : > { %v3678_v35 = vpop.permute.xlu1 %703  ;;  %v1384_v13 = vsel %vm535_vm7, %v1382_v4, %v4764_v9  ;;  %v4767_v37 = vrot.slane %v3499_v57, 4  ;;  %v1343_v42 = vrot.slane %v1336_v31, 4  ;;  %v3697_v4 = vld [vmem:[#allocation4 + $0x10] sm:$0x3f]  ;;  %v4768_v43 = vrot.slane %v3483_v62, 2 }
 0x182   : > { %v503_v33 = vsel %vm189_vm2, %v4766_v21, %v4765_v47  ;;  %1387 = vrot.lane.b32.xlu0 %v1384_v13, %s2728_s26  ;;  %v1357_v29 = vmul.f32 %v3697_v4, %v3351_v41  ;;  %v480_v9 = vmul.f32 %v3704_v52, %v3265_v10  ;;  %v470_v13 = vrot.slane %v462_v54, 3 }
 0x183   : > { %v1323_v6 = vsel %vm189_vm2, %v4767_v37, %v1322_v3  ;;  %v508_v16 = vadd.f32 %v503_v33, %v491_v2  ;;  %v453_v12 = vsel %vm431_vm5, %v4768_v43, %v452_v5  ;;  %v518_v57 = vrot.slane %v3451_v55, 4 }
 0x184   : > { %1326 = vrot.lane.b32.xlu1 %v1323_v6, %s2728_s26  ;;  %v547_v3 = vmul.f32 %v3551_v36, %v3296_v19  ;;  %v457_v31 = vadd.f32 %v453_v12, %v440_v32  ;;  %v3712_v41 = vpop.permute.xlu0 %785  ;;  %v1424_v2 = vrot.slane %v1418_v34, 6  ;;  %v4718_v62 = vrot.slane %v3667_v58, 5 }
 0x185   : > { %v3719_v5 = vmul.f32 %v3604_v61, %v3296_v19  ;;  %v3721_v10 = vpop.permute.xlu1 %724  ;;  %v1405_v55 = vsel %vm570_vm8, %v1403_v63, %v1404_v44  ;;  %v1425_v54 = vrot.slane %v3686_v38, 6  ;;  %v520_v32 = vsel %vm189_vm2, %v518_v57, %v519_v40 }
 0x186   : > { %1408 = vrot.lane.b32.xlu0 %v1405_v55, %s2728_s26  ;;  %v4769_v34 = vrot.slane %v3537_v17, 4  ;;  %v1364_v21 = vrot.slane %v1357_v29, 5  ;;  %v1378_v33 = vmul.f32 %v3704_v52, %v3370_v49  ;;  %v525_v37 = vadd.f32 %v520_v32, %v508_v16 }
 0x187   : > { %v487_v6 = vrot.slane %v480_v9, 3  ;;  %v4770_v63 = vrot.slane %v3522_v27, 3  ;;  %v497_v12 = vmul.f32 %v3697_v4, %v3280_v14  ;;  %v536_v57 = vrot.slane %v3457_v20, 5 }
 0x188   : > { %v1344_v47 = vsel %vm189_vm2, %v4769_v34, %v1343_v42  ;;  %v3743_v55 = vpop.permute.xlu0 %806  ;;  %v3746_v42 = vstv %s3673_s0  ;;  %v3749_v29 = vstv %s3675_s1  ;;  %v553_v49 = vrot.slane %v547_v3, 5  ;;  %s4353_s0 = sld [smem:[#allocation5 + $0x2f]]  ;;  %s4377_s1 = sld [smem:[#allocation5 + $0x60]] }
 0x189   : > { %v471_v43 = vsel %vm466_vm6, %v4770_v63, %v470_v13  ;;  %1347 = vrot.lane.b32.xlu1 %v1344_v47, %s2728_s26  ;;  %v4717_v16 = vrot.slane %v3719_v5, 5  ;;  %v3754_v27 = vmul.f32 %v3642_v39, %v3307_v22  ;;  %v3756_v14 = vpop.permute.xlu1 %745  ;;  %v1426_v20 = vsel %vm570_vm8, %v1424_v2, %v1425_v54 }
 0x18a   : > { %v475_v17 = vadd.f32 %v471_v43, %v457_v31  ;;  %v538_v9 = vsel %vm535_vm7, %v536_v57, %v4718_v62  ;;  %1429 = vrot.lane.b32.xlu0 %v1426_v20, %s2728_s26  ;;  %v4771_v13 = vrot.slane %v3578_v7, 5  ;;  %v1385_v31 = vrot.slane %v1378_v33, 5 }
 0x18b   : > { %v1399_v32 = vmul.f32 %v3697_v4, %v3373_v50  ;;  %v543_v34 = vadd.f32 %v538_v9, %v525_v37  ;;  %v4772_v47 = vrot.slane %v3561_v28, 3  ;;  %v514_v2 = vmul.f32 %v3704_v52, %v3283_v15 }
 0x18c   : > { %v1365_v3 = vsel %vm535_vm7, %v4771_v13, %v1364_v21  ;;  %v504_v43 = vrot.slane %v497_v12, 4  ;;  %v564_v7 = vmul.f32 %v3512_v25, %v3307_v22  ;;  %v3778_v21 = vpop.permute.xlu0 %827  ;;  %v4773_v33 = vstv %s3302_s27 }
 0x18d   : > { %v488_v63 = vsel %vm466_vm6, %v4772_v47, %v487_v6  ;;  %1368 = vrot.lane.b32.xlu1 %v1365_v3, %s2728_s26  ;;  %v1439_v50 = vmul.f32 %v3512_v25, %v4773_v33  ;;  %v3784_v37 = vstv %s3714_s9  ;;  %v555_v28 = vsel %vm535_vm7, %v553_v49, %v4717_v16  ;;  %v3793_v6 = vpop.permute.xlu1 %766  ;;  %s4422_s9 = sld [smem:[#allocation5 + $0x6]] }
 0x18e   : > { %v492_v57 = vadd.f32 %v488_v63, %v475_v17  ;;  %v3791_v15 = vmul.f32 %v3604_v61, %v3310_v23  ;;  %v1467_v12 = vmul.f32 %v3512_v25, %v3746_v42  ;;  %v3799_v17 = vmul.f32 %v3642_v39, %v3746_v42 }
 0x18f   : > { %v4719_v20 = vrot.slane %v3754_v27, 6  ;;  %1443 = vrot.lane.b32.xlu0 %v1439_v50, %s2729_s13  ;;  %v4774_v49 = vrot.slane %v3608_v8, 5  ;;  %v1406_v13 = vrot.slane %v1399_v32, 6  ;;  %v1420_v3 = vmul.f32 %v3704_v52, %v3390_v0 }
 0x190   : > { %v560_v47 = vadd.f32 %v555_v28, %v543_v34  ;;  %v521_v63 = vrot.slane %v514_v2, 4  ;;  %v4775_v33 = vrot.slane %v3591_v30, 4  ;;  %v531_v62 = vmul.f32 %v3697_v4, %v3293_v18  ;;  %v3818_v32 = vpop.permute.xlu0 %848 }
 0x191   : > { %v1386_v9 = vsel %vm535_vm7, %v4774_v49, %v1385_v31  ;;  %v571_v50 = vrot.slane %v564_v7, 6  ;;  %v582_v8 = vmul.f32 %v3551_v36, %v3310_v23  ;;  %v4776_v49 = vstv %s3304_s3  ;;  %v3823_v34 = vpop.permute.xlu1 %787 }
 0x192   : > { %v505_v16 = vsel %vm189_vm2, %v4775_v33, %v504_v43  ;;  %1389 = vrot.lane.b32.xlu1 %v1386_v9, %s2728_s26  ;;  %v1453_v0 = vmul.f32 %v3551_v36, %v4776_v49  ;;  %v1473_v30 = vrot.slane %v1467_v12, 1  ;;  %v1474_v2 = vrot.slane %v3799_v17, 1 }
 0x193   : > { %v509_v31 = vadd.f32 %v505_v16, %v492_v57  ;;  %v1488_v18 = vmul.f32 %v3551_v36, %v3749_v29  ;;  %v3830_v43 = vmul.f32 %v3604_v61, %v3749_v29  ;;  %v573_v16 = vsel %vm570_vm8, %v571_v50, %v4719_v20 }
 0x194   : > { %v589_v7 = vrot.slane %v3791_v15, 6  ;;  %1457 = vrot.lane.b32.xlu0 %v1453_v0, %s2729_s13  ;;  %v1407_v57 = vsel %vm570_vm8, %v1404_v44, %v1406_v13  ;;  %v1427_v28 = vrot.slane %v1420_v3, 6  ;;  %v578_v12 = vadd.f32 %v573_v16, %v560_v47  ;;  %v3848_v48 = vpop.permute.xlu0 %869 }
 0x195   : > { %v522_v9 = vsel %vm189_vm2, %v519_v40, %v521_v63  ;;  %v549_v33 = vmul.f32 %v3704_v52, %v3296_v19  ;;  %v539_v50 = vrot.slane %v531_v62, 5  ;;  %v588_v49 = vrot.slane %v582_v8, 6  ;;  %v3850_v20 = vpop.permute.xlu1 %808 }
 0x196   : > { %1410 = vrot.lane.b32.xlu1 %v1407_v57, %s2728_s26  ;;  %v526_v0 = vadd.f32 %v522_v9, %v509_v31  ;;  %v1475_v44 = vsel %vm396_vm4, %v1473_v30, %v1474_v2  ;;  %v1495_v46 = vrot.slane %v3830_v43, 1  ;;  %v3858_v40 = vmul.f32 %v3642_v39, %v3784_v37 }
 0x197   : > { %v3861_v19 = vstv %s3801_s11  ;;  %v590_v62 = vsel %vm570_vm8, %v588_v49, %v589_v7  ;;  %v1428_v13 = vsel %vm570_vm8, %v1425_v54, %v1427_v28  ;;  %v1494_v3 = vrot.slane %v1488_v18, 1  ;;  %s2492_s11 = sld [smem:[#allocation5 + $0xd]] }
 0x198   : > { %1478 = vrot.lane.b32.xlu0 %v1475_v44, %s2729_s13  ;;  %v1509_v47 = vmul.f32 %v3512_v25, %v3784_v37  ;;  %v595_v63 = vadd.f32 %v590_v62, %v578_v12  ;;  %v556_v8 = vrot.slane %v549_v33, 5  ;;  %v4777_v31 = vrot.slane %v3667_v58, 5  ;;  %v3878_v38 = vpop.permute.xlu0 %918 }
 0x199   : > { %v566_v16 = vmul.f32 %v3697_v4, %v3307_v22  ;;  %v4778_v54 = vstv %s3302_s27  ;;  %v3886_v12 = vpop.permute.xlu1 %829  ;;  %v1496_v58 = vsel %vm396_vm4, %v1494_v3, %v1495_v46  ;;  %v1516_v22 = vrot.slane %v3858_v40, 2  ;;  %s4305_s27 = sld [smem:[#allocation5 + $0x28]] }
 0x19a   : > { %v540_v30 = vsel %vm535_vm7, %v4777_v31, %v539_v50  ;;  %1431 = vrot.lane.b32.xlu1 %v1428_v13, %s2728_s26  ;;  %v1440_v18 = vmul.f32 %v3642_v39, %v4778_v54  ;;  %v609_v28 = vadd.f32 %v3208_v53, %v595_v63  ;;  %v3894_v9 = vmul.f32 %v3604_v61, %v3861_v19  ;;  %s4206_s26 = sld [smem:[#allocation5 + $0x1a]] }
 0x19b   : > { %v544_v57 = vadd.f32 %v540_v30, %v526_v0  ;;  %v1515_v33 = vrot.slane %v1509_v47, 2  ;;  %v1530_v50 = vmul.f32 %v3551_v36, %v3861_v19  ;;  %v1469_v53 = vmul.f32 %v3697_v4, %v3746_v42 }
 0x19c   : > { %1499 = vrot.lane.b32.xlu0 %v1496_v58, %s2729_s13  ;;  %v3902_v49 = vstv %s3840_s17  ;;  %v623_v0 = vadd.f32 %v3267_v11, %v609_v28  ;;  %v4779_v44 = vrot.slane %v3719_v5, 5  ;;  %v584_v13 = vmul.f32 %v3704_v52, %v3310_v23  ;;  %v3911_v63 = vpop.permute.xlu0 %939  ;;  %s4444_s17 = sld [smem:[#allocation5 + $0x3e]] }
 0x19d   : > { %v574_v3 = vrot.slane %v566_v16, 6  ;;  %v4780_v31 = vstv %s3304_s3  ;;  %v3919_v5 = vpop.permute.xlu1 %850  ;;  %v1517_v23 = vsel %vm431_vm5, %v1515_v33, %v1516_v22  ;;  %v3927_v30 = vmul.f32 %v3642_v39, %v3902_v49  ;;  %s4329_s3 = sld [smem:[#allocation5 + $0x59]] }
 0x19e   : > { %v557_v62 = vsel %vm535_vm7, %v4779_v44, %v556_v8  ;;  %1445 = vrot.lane.b32.xlu1 %v1440_v18, %s2729_s13  ;;  %v1454_v42 = vmul.f32 %v3604_v61, %v4780_v31  ;;  %v644_v11 = vadd.f32 %v3453_v59, %v623_v0  ;;  %v1537_v8 = vrot.slane %v3894_v9, 2  ;;  %v4782_v31 = vld [vmem:[#allocation23_spill] sm:$0xff] }
 0x19f   : > { %v561_v47 = vadd.f32 %v557_v62, %v544_v57  ;;  %v1476_v16 = vrot.slane %v1469_v53, 1  ;;  %v1551_v57 = vmul.f32 %v3512_v25, %v3902_v49  ;;  %v1490_v59 = vmul.f32 %v3704_v52, %v3749_v29 }
 0x1a0   : > { %1520 = vrot.lane.b32.xlu0 %v1517_v23, %s2729_s13  ;;  %v591_v54 = vrot.slane %v584_v13, 6  ;;  %v4781_v18 = vrot.slane %v3754_v27, 6  ;;  %v665_v58 = vadd.f32 %v3487_v26, %v644_v11  ;;  %v1536_v33 = vrot.slane %v1530_v50, 2  ;;  %v3939_v44 = vpop.permute.xlu0 %960 }
 0x1a1   : > { %v3942_v53 = vstv %s3883_s21  ;;  %v3947_v29 = vpop.permute.xlu1 %871  ;;  %v1558_v26 = vrot.slane %v3927_v30, 3  ;;  %v1477_v13 = vsel %vm396_vm4, %v1474_v2, %v1476_v16  ;;  %v1557_v11 = vrot.slane %v1551_v57, 3  ;;  %s4459_s21 = sld [smem:[#allocation5 + $0x14]] }
 0x1a2   : > { %v575_v28 = vsel %vm570_vm8, %v4781_v18, %v574_v3  ;;  %1459 = vrot.lane.b32.xlu1 %v1454_v42, %s2729_s13  ;;  %v686_v62 = vadd.f32 %v3527_v51, %v665_v58  ;;  %v1538_v27 = vsel %vm431_vm5, %v1536_v33, %v1537_v8  ;;  %v3955_v50 = vmul.f32 %v3604_v61, %v3942_v53 }
 0x1a3   : > { %v579_v0 = vadd.f32 %v575_v28, %v561_v47  ;;  %v1497_v51 = vrot.slane %v1490_v59, 1  ;;  %v1511_v3 = vmul.f32 %v3697_v4, %v3784_v37  ;;  %v592_v47 = vsel %vm570_vm8, %v589_v7, %v591_v54  ;;  %v4783_v59 = vld [vmem:[#allocation19_spill] sm:$0xff] }
 0x1a4   : > { %1541 = vrot.lane.b32.xlu0 %v1538_v27, %s2729_s13  ;;  %v707_v42 = vadd.f32 %v4782_v31, %v686_v62  ;;  %v1572_v23 = vmul.f32 %v3551_v36, %v3942_v53  ;;  %v3970_v17 = vpop.permute.xlu0 %981  ;;  %v3973_v2 = vstv %s3916_s22  ;;  %v1559_v7 = vsel %vm466_vm6, %v1557_v11, %v1558_v26  ;;  %v4784_v27 = vld [vmem:[#allocation20_spill] sm:$0xff]  ;;  %s2731_s22 = smov 122  }
 0x1a5   : > { %v596_v18 = vadd.f32 %v592_v47, %v579_v0  ;;  %v3978_v15 = vpop.permute.xlu1 %920  ;;  %v1579_v16 = vrot.slane %v3955_v50, 3  ;;  %v3986_v57 = vmul.f32 %v3642_v39, %v3973_v2  ;;  %v1518_v28 = vrot.slane %v1511_v3, 2  ;;  %v4785_v3 = vld [vmem:[#allocation24_spill] sm:$0xff] }
 0x1a6   : > { %1480 = vrot.lane.b32.xlu1 %v1477_v13, %s2729_s13  ;;  %v728_v37 = vadd.f32 %v3593_v56, %v707_v42  ;;  %v1498_v56 = vsel %vm396_vm4, %v1495_v46, %v1497_v51  ;;  %v1532_v58 = vmul.f32 %v3704_v52, %v3861_v19  ;;  %v1578_v0 = vrot.slane %v1572_v23, 3 }
 0x1a7   : > { %v610_v54 = vadd.f32 %v4783_v59, %v596_v18  ;;  %v1593_v62 = vmul.f32 %v3512_v25, %v3973_v2  ;;  %v4003_v31 = vstv %s3944_s30  ;;  %v1600_v19 = vrot.slane %v3986_v57, 4  ;;  %s2495_s30 = sld [smem:[#allocation5 + $0x45]] }
 0x1a8   : > { %1562 = vrot.lane.b32.xlu0 %v1559_v7, %s2729_s13  ;;  %v749_v33 = vadd.f32 %v3631_v24, %v728_v37  ;;  %v4000_v47 = vpop.permute.xlu0 %1002  ;;  %v1580_v24 = vsel %vm466_vm6, %v1578_v0, %v1579_v16  ;;  %v4016_v51 = vmul.f32 %v3604_v61, %v4003_v31  ;;  %v1539_v11 = vrot.slane %v1532_v58, 2 }
 0x1a9   : > { %v624_v13 = vadd.f32 %v4784_v27, %v610_v54  ;;  %v4008_v46 = vpop.permute.xlu1 %941  ;;  %v1553_v23 = vmul.f32 %v3697_v4, %v3902_v49  ;;  %v1599_v37 = vrot.slane %v1593_v62, 4  ;;  %v1614_v7 = vmul.f32 %v3551_v36, %v4003_v31 }
 0x1aa   : > { %1501 = vrot.lane.b32.xlu1 %v1498_v56, %s2729_s13  ;;  %v770_v43 = vadd.f32 %v3669_v45, %v749_v33  ;;  %v1519_v45 = vsel %vm431_vm5, %v1516_v22, %v1518_v28  ;;  %v1634_v56 = vstv %s3975_s16  ;;  %v1621_v49 = vrot.slane %v4016_v51, 4  ;;  %s2496_s16 = sld [smem:[#allocation5 + $0x1b]] }
 0x1ab   : > { %v645_v42 = vadd.f32 %v4785_v3, %v624_v13  ;;  %v4043_v28 = vmul.f32 %v3642_v39, %v1634_v56  ;;  %v1560_v58 = vrot.slane %v1553_v23, 3  ;;  %v1574_v33 = vmul.f32 %v3704_v52, %v3942_v53 }
 0x1ac   : > { %1583 = vrot.lane.b32.xlu0 %v1580_v24, %s2729_s13  ;;  %v791_v18 = vadd.f32 %v3712_v41, %v770_v43  ;;  %v4030_v54 = vpop.permute.xlu0 %1023  ;;  %v1601_v41 = vsel %vm189_vm2, %v1599_v37, %v1600_v19  ;;  %v1620_v62 = vrot.slane %v1614_v7, 4  ;;  %v1635_v27 = vmul.f32 %v3512_v25, %v1634_v56 }
 0x1ad   : > { %v666_v59 = vadd.f32 %v3598_v60, %v645_v42  ;;  %v4036_v22 = vpop.permute.xlu1 %962  ;;  %v1655_v43 = vstv %s4005_s18  ;;  %v1642_v53 = vrot.slane %v4043_v28, 5  ;;  %v1581_v3 = vrot.slane %v1574_v33, 3  ;;  %s2497_s18 = sld [smem:[#allocation5 + $0x4c]] }
 0x1ae   : > { %1522 = vrot.lane.b32.xlu1 %v1519_v45, %s2729_s13  ;;  %v812_v40 = vadd.f32 %v3743_v55, %v791_v18  ;;  %v1540_v55 = vsel %vm431_vm5, %v1537_v8, %v1539_v11  ;;  %v4069_v24 = vmul.f32 %v3604_v61, %v1655_v43  ;;  %v1595_v42 = vmul.f32 %v3697_v4, %v3973_v2 }
 0x1af   : > { %v687_v60 = vadd.f32 %v3636_v1, %v666_v59  ;;  %v1641_v11 = vrot.slane %v1635_v27, 5  ;;  %v1656_v23 = vmul.f32 %v3551_v36, %v1655_v43  ;;  %v1676_v37 = vstv %s4033_s20  ;;  %s2498_s20 = sld [smem:[#allocation5 + $0x22]] }
 0x1b0   : > { %1604 = vrot.lane.b32.xlu0 %v1601_v41, %s2729_s13  ;;  %v833_v0 = vadd.f32 %v3778_v21, %v812_v40  ;;  %v4056_v1 = vpop.permute.xlu0 %1044  ;;  %v1622_v21 = vsel %vm189_vm2, %v1620_v62, %v1621_v49  ;;  %v1663_v2 = vrot.slane %v4069_v24, 5  ;;  %v1602_v59 = vrot.slane %v1595_v42, 4  ;;  %v4786_v41 = vld [vmem:[#allocation17_spill] sm:$0xff] }
 0x1b1   : > { %v708_v13 = vadd.f32 %v3678_v35, %v687_v60  ;;  %v4062_v8 = vpop.permute.xlu1 %983  ;;  %v1616_v40 = vmul.f32 %v3704_v52, %v4003_v31 }
 0x1b2   : > { %1543 = vrot.lane.b32.xlu1 %v1540_v55, %s2729_s13  ;;  %v854_v9 = vadd.f32 %v3818_v32, %v833_v0  ;;  %v1561_v32 = vsel %vm466_vm6, %v1558_v26, %v1560_v58  ;;  %v1643_v26 = vsel %vm535_vm7, %v1641_v11, %v1642_v53  ;;  %v1662_v55 = vrot.slane %v1656_v23, 5 }
 0x1b3   : > { %v729_v35 = vadd.f32 %v3721_v10, %v708_v13  ;;  %v1677_v58 = vmul.f32 %v3512_v25, %v1676_v37  ;;  %v1697_v0 = vstv %s4059_s28  ;;  %v1623_v13 = vrot.slane %v1616_v40, 4  ;;  %v4788_v40 = vld [vmem:[#allocation21_spill] sm:$0xff]  ;;  %s4526_s28 = sld [smem:[#allocation5 + $0x53]] }
 0x1b4   : > { %1625 = vrot.lane.b32.xlu0 %v1622_v21, %s2729_s13  ;;  %v875_v45 = vadd.f32 %v3848_v48, %v854_v9  ;;  %v4082_v10 = vpop.permute.xlu0 %1065  ;;  %v4092_v48 = vmul.f32 %v3642_v39, %v1676_v37  ;;  %v1664_v50 = vsel %vm535_vm7, %v1662_v55, %v1663_v2  ;;  %v4115_v31 = vmul.f32 %v3604_v61, %v1697_v0  ;;  %v4787_v21 = vld [vmem:[#allocation18_spill] sm:$0xff] }
 0x1b5   : > { %v750_v18 = vadd.f32 %v3756_v14, %v729_v35  ;;  %v4085_v30 = vpop.permute.xlu1 %1004  ;;  %v1582_v14 = vsel %vm466_vm6, %v1579_v16, %v1581_v3  ;;  %v1637_v9 = vmul.f32 %v3697_v4, %v1634_v56  ;;  %v1698_v3 = vmul.f32 %v3551_v36, %v1697_v0 }
 0x1b6   : > { %1564 = vrot.lane.b32.xlu1 %v1561_v32, %s2729_s13  ;;  %v889_v60 = vadd.f32 %v4786_v41, %v875_v45  ;;  %v1684_v16 = vrot.slane %v4092_v48, 6  ;;  %v1683_v32 = vrot.slane %v1677_v58, 6  ;;  %v1658_v23 = vmul.f32 %v3704_v52, %v1655_v43 }
 0x1b7   : > { %v771_v7 = vadd.f32 %v3793_v6, %v750_v18  ;;  %v1644_v11 = vrot.slane %v1637_v9, 5  ;;  %v1746_v58 = vstv %s2478_s5  ;;  %s4559_s5 = sld [smem:[#allocation5 + $0x5a]] }
 0x1b8   : > { %1646 = vrot.lane.b32.xlu0 %v1643_v26, %s2729_s13  ;;  %v4105_v6 = vpop.permute.xlu0 %1086  ;;  %v903_v35 = vadd.f32 %v4787_v21, %v889_v60  ;;  %v1685_v57 = vsel %vm570_vm8, %v1683_v32, %v1684_v16  ;;  %v1704_v26 = vrot.slane %v1698_v3, 6  ;;  %v1665_v43 = vrot.slane %v1658_v23, 5 }
 0x1b9   : > { %v792_v33 = vadd.f32 %v3823_v34, %v771_v7  ;;  %v4108_v62 = vpop.permute.xlu1 %1025  ;;  %v1603_v34 = vsel %vm189_vm2, %v1600_v19, %v1602_v59  ;;  %v1705_v19 = vrot.slane %v4115_v31, 6  ;;  %v1767_v32 = vstv %s2479_s29  ;;  %s2503_s29 = sld [smem:[#allocation5 + $0x61]] }
 0x1ba   : > { %1585 = vrot.lane.b32.xlu1 %v1582_v14, %s2729_s13  ;;  %v924_v18 = vadd.f32 %v3878_v38, %v903_v35  ;;  %v1645_v38 = vsel %vm535_vm7, %v1642_v53, %v1644_v11  ;;  %v1732_v53 = vstv %s4137_s6  ;;  %v1788_v23 = vstv %s4167_s7  ;;  %s4576_s6 = sld [smem:[#allocation5 + $0x30]]  ;;  %s170_s7 = sand.u32 1, %s2698_s10  }
 0x1bb   : > { %v813_v27 = vadd.f32 %v3850_v20, %v792_v33  ;;  %v1706_v51 = vsel %vm570_vm8, %v1704_v26, %v1705_v19  ;;  %v1733_v35 = vmul.f32 %v3551_v36, %v1732_v53  ;;  %v4216_v26 = vmul.f32 %v3642_v39, %v1788_v23 }
 0x1bc   : > { %1667 = vrot.lane.b32.xlu0 %v1664_v50, %s2729_s13  ;;  %v4129_v45 = vpop.permute.xlu0 %1107  ;;  %v945_v59 = vadd.f32 %v3911_v63, %v924_v18  ;;  %v1666_v63 = vsel %vm535_vm7, %v1663_v2, %v1665_v43 }
 0x1bd   : > { %v834_v42 = vadd.f32 %v3886_v12, %v813_v27  ;;  %v4131_v20 = vpop.permute.xlu1 %1046  ;;  %v1624_v12 = vsel %vm189_vm2, %v1621_v49, %v1623_v13  ;;  %v1718_v49 = vstv %s4117_s4  ;;  %v1700_v27 = vmul.f32 %v3704_v52, %v1697_v0  ;;  %v4789_v13 = vld [vmem:[#allocation22_spill] sm:$0xff]  ;;  %s4542_s4 = sld [smem:[#allocation5 + $0x29]] }
 0x1be   : > { %1606 = vrot.lane.b32.xlu1 %v1603_v34, %s2729_s13  ;;  %v1719_v55 = vmul.f32 %v3512_v25, %v1718_v49  ;;  %v966_v28 = vadd.f32 %v3939_v44, %v945_v59  ;;  %v1747_v44 = vmul.f32 %v3512_v25, %v1746_v58  ;;  %v4227_v59 = vstv %s2481_s15 }
 0x1bf   : > { %v855_v56 = vadd.f32 %v3919_v5, %v834_v42  ;;  %v1707_v42 = vrot.slane %v1700_v27, 6  ;;  %v1734_v27 = vmul.f32 %v3604_v61, %v1732_v53 }
 0x1c0   : > { %1688 = vrot.lane.b32.xlu0 %v1685_v57, %s2729_s13  ;;  %v4148_v14 = vpop.permute.xlu0 %1128  ;;  %v987_v34 = vadd.f32 %v3970_v17, %v966_v28  ;;  %v4193_v17 = vmul.f32 %v3604_v61, %v1767_v32  ;;  %v1810_v28 = vmul.f32 %v3551_v36, %v4227_v59 }
 0x1c1   : > { %v876_v7 = vadd.f32 %v3947_v29, %v855_v56  ;;  %v4150_v5 = vpop.permute.xlu1 %1067  ;;  %v1679_v29 = vmul.f32 %v3697_v4, %v1676_v37  ;;  %v4174_v37 = vmul.f32 %v3642_v39, %v1746_v58  ;;  %v1753_v56 = vrot.slane %v1747_v44, 1 }
 0x1c2   : > { %1627 = vrot.lane.b32.xlu1 %v1624_v12, %s2729_s13  ;;  %v1008_v24 = vadd.f32 %v4000_v47, %v987_v34  ;;  %v1768_v47 = vmul.f32 %v3551_v36, %v1767_v32  ;;  %v4252_v34 = vstv %s4206_s26  ;;  %s2512_s26 = sshll.u32 %s2706_s12, 8  ;;  %s2732_s12 = smov [#allocation8]  }
 0x1c3   : > { %v890_v41 = vadd.f32 %v4788_v40, %v876_v7  ;;  %v1686_v50 = vrot.slane %v1679_v29, 6  ;;  %v1754_v0 = vrot.slane %v4174_v37, 1  ;;  %v1720_v29 = vmul.f32 %v3642_v39, %v1718_v49 }
 0x1c4   : > { %1709 = vrot.lane.b32.xlu0 %v1706_v51, %s2729_s13  ;;  %v4164_v60 = vpop.permute.xlu0 %1149  ;;  %v1029_v57 = vadd.f32 %v4030_v54, %v1008_v24  ;;  %v1789_v51 = vmul.f32 %v3512_v25, %v1788_v23  ;;  %v1796_v40 = vrot.slane %v4216_v26, 2  ;;  %v1831_v24 = vmul.f32 %v3512_v25, %v4252_v34 }
 0x1c5   : > { %v4170_v33 = vpop.permute.xlu1 %1088  ;;  %v904_v9 = vadd.f32 %v4789_v13, %v890_v41  ;;  %v1687_v3 = vsel %vm570_vm8, %v1684_v16, %v1686_v50  ;;  %v1755_v54 = vsel %vm396_vm4, %v1753_v56, %v1754_v0  ;;  %v1775_v16 = vrot.slane %v4193_v17, 1 }
 0x1c6   : > { %1648 = vrot.lane.b32.xlu1 %v1645_v38, %s2729_s13  ;;  %v1050_v18 = vadd.f32 %v4056_v1, %v1029_v57  ;;  %v1774_v1 = vrot.slane %v1768_v47, 1  ;;  %v1749_v41 = vmul.f32 %v3697_v4, %v1746_v58  ;;  %v4276_v57 = vstv %s4229_s23 }
 0x1c7   : > { %v925_v12 = vadd.f32 %v3978_v15, %v904_v9  ;;  %v1708_v15 = vsel %vm570_vm8, %v1705_v19, %v1707_v42  ;;  %v1770_v9 = vmul.f32 %v3704_v52, %v1767_v32  ;;  %v4289_v47 = vmul.f32 %v3604_v61, %v4276_v57 }
 0x1c8   : > { %1723 = vrot.lane.b32.xlu0 %v1719_v55, %s2730_s8  ;;  %v4185_v21 = vpop.permute.xlu0 %1163  ;;  %v1071_v7 = vadd.f32 %v4082_v10, %v1050_v18  ;;  %v1776_v10 = vsel %vm396_vm4, %v1774_v1, %v1775_v16  ;;  %v1795_v55 = vrot.slane %v1789_v51, 2  ;;  %v1756_v13 = vrot.slane %v1749_v41, 1 }
 0x1c9   : > { %v4189_v2 = vpop.permute.xlu1 %1109  ;;  %v946_v38 = vadd.f32 %v4008_v46, %v925_v12  ;;  %v4240_v46 = vmul.f32 %v3604_v61, %v4227_v59  ;;  %v1777_v12 = vrot.slane %v1770_v9, 1  ;;  %v1791_v18 = vmul.f32 %v3697_v4, %v1788_v23 }
 0x1ca   : > { %1669 = vrot.lane.b32.xlu1 %v1666_v63, %s2729_s13  ;;  %v1092_v31 = vadd.f32 %v4105_v6, %v1071_v7  ;;  %v1852_v7 = vmul.f32 %v3551_v36, %v4276_v57  ;;  %v4303_v51 = vstv %s4254_s24  ;;  %v1859_v23 = vrot.slane %v4289_v47, 3 }
 0x1cb   : > { %v967_v49 = vadd.f32 %v4036_v22, %v946_v38  ;;  %v1817_v44 = vrot.slane %v4240_v46, 2  ;;  %v4313_v38 = vmul.f32 %v3642_v39, %v4303_v51  ;;  %v1873_v41 = vmul.f32 %v3512_v25, %v4303_v51 }
 0x1cc   : > { %1737 = vrot.lane.b32.xlu0 %v1733_v35, %s2730_s8  ;;  %v4203_v11 = vpop.permute.xlu0 %1177  ;;  %v1113_v6 = vadd.f32 %v4129_v45, %v1092_v31  ;;  %v1797_v45 = vsel %vm431_vm5, %v1795_v55, %v1796_v40  ;;  %v1816_v35 = vrot.slane %v1810_v28, 2  ;;  %v1812_v31 = vmul.f32 %v3704_v52, %v4227_v59 }
 0x1cd   : > { %v4209_v48 = vpop.permute.xlu1 %1130  ;;  %v988_v63 = vadd.f32 %v4062_v8, %v967_v49  ;;  %v4265_v8 = vmul.f32 %v3642_v39, %v4252_v34  ;;  %v1858_v49 = vrot.slane %v1852_v7, 3  ;;  %v4327_v55 = vstv %s4278_s25 }
 0x1ce   : > { %1690 = vrot.lane.b32.xlu1 %v1687_v3, %s2729_s13  ;;  %v1134_v22 = vadd.f32 %v4148_v14, %v1113_v6  ;;  %v1880_v28 = vrot.slane %v4313_v38, 4  ;;  %v4351_v9 = vstv %s4305_s27  ;;  %s4650_s27 = scalar_lea.hbm %s4702_s2, %s2512_s26 }
 0x1cf   : > { %v1009_v53 = vadd.f32 %v4085_v30, %v988_v63  ;;  %v1838_v32 = vrot.slane %v4265_v8, 3  ;;  %v1860_v59 = vsel %vm466_vm6, %v1858_v49, %v1859_v23  ;;  %v4337_v63 = vmul.f32 %v3604_v61, %v4327_v55 }
 0x1d0   : > { %1758 = vrot.lane.b32.xlu0 %v1755_v54, %s2730_s8  ;;  %v1199_v43 = vpop.permute.xlu0 %1198  ;;  %v1155_v14 = vadd.f32 %v4164_v60, %v1134_v22  ;;  %v1818_v60 = vsel %vm431_vm5, %v1816_v35, %v1817_v44  ;;  %v4361_v35 = vmul.f32 %v3642_v39, %v4351_v9 }
 0x1d1   : > { %v4232_v19 = vpop.permute.xlu1 %1151  ;;  %v1030_v3 = vadd.f32 %v4108_v62, %v1009_v53  ;;  %v1894_v53 = vmul.f32 %v3551_v36, %v4327_v55 }
 0x1d2   : > { %1711 = vrot.lane.b32.xlu1 %v1708_v15, %s2729_s13  ;;  %v1169_v30 = vadd.f32 %v4185_v21, %v1155_v14  ;;  %v1757_v21 = vsel %vm396_vm4, %v1754_v0, %v1756_v13  ;;  %v1837_v15 = vrot.slane %v1831_v24, 3  ;;  %v1901_v14 = vrot.slane %v4337_v63, 4  ;;  %s4436_s13 = sld [smem:[#allocation5 + $0x37]] }
 0x1d3   : > { %v1051_v62 = vadd.f32 %v4131_v20, %v1030_v3  ;;  %v1854_v3 = vmul.f32 %v3704_v52, %v4276_v57 }
 0x1d4   : > { %1779 = vrot.lane.b32.xlu0 %v1776_v10, %s2730_s8  ;;  %v1220_v50 = vpop.permute.xlu0 %1219  ;;  %v1183_v54 = vadd.f32 %v4203_v11, %v1169_v30  ;;  %v1839_v11 = vsel %vm466_vm6, %v1837_v15, %v1838_v32  ;;  %v1900_v30 = vrot.slane %v1894_v53, 4 }
 0x1d5   : > { %v4257_v58 = vpop.permute.xlu1 %1165  ;;  %v1072_v1 = vadd.f32 %v4150_v5, %v1051_v62  ;;  %v1861_v7 = vrot.slane %v1854_v3, 3 }
 0x1d6   : > { %1725 = vrot.lane.b32.xlu1 %v1720_v29, %s2730_s8  ;;  %v1204_v37 = vadd.f32 %v1199_v43, %v1183_v54  ;;  %v1778_v43 = vsel %vm396_vm4, %v1775_v16, %v1777_v12  ;;  %v1798_v29 = vrot.slane %v1791_v18, 2  ;;  %v1935_v12 = vstv %s4329_s3  ;;  %s4654_s3 = scalar_lea.sflag [#allocation6], %s170_s7 }
 0x1d7   : > { %v1093_v5 = vadd.f32 %v4170_v33, %v1072_v1  ;;  %v1902_v57 = vsel %vm189_vm2, %v1900_v30, %v1901_v14  ;;  %v1922_v18 = vrot.slane %v4361_v35, 5  ;;  %v4384_v54 = vmul.f32 %v3604_v61, %v1935_v12  ;;  %v4462_v35 = vld [vmem:[#allocation4 + $0x8] sm:$0xff] }
 0x1d8   : > { %1800 = vrot.lane.b32.xlu0 %v1797_v45, %s2730_s8  ;;  %v1241_v42 = vpop.permute.xlu0 %1240  ;;  %v1225_v10 = vadd.f32 %v1220_v50, %v1204_v37  ;;  %v1819_v50 = vrot.slane %v1812_v31, 2  ;;  %v1879_v45 = vrot.slane %v1873_v41, 4  ;;  %v1875_v1 = vmul.f32 %v3697_v4, %v4303_v51  ;;  %v4393_v37 = vld [vmem:[#allocation4 + $0x18] sm:$0xff] }
 0x1d9   : > { %v4281_v56 = vpop.permute.xlu1 %1179  ;;  %v1114_v6 = vadd.f32 %v4189_v2, %v1093_v5  ;;  %v1799_v2 = vsel %vm431_vm5, %v1796_v40, %v1798_v29  ;;  %v1896_v41 = vmul.f32 %v3704_v52, %v4327_v55 }
 0x1da   : > { %1739 = vrot.lane.b32.xlu1 %v1734_v27, %s2730_s8  ;;  %v1246_v17 = vadd.f32 %v1241_v42, %v1225_v10  ;;  %v1833_v27 = vmul.f32 %v3697_v4, %v4252_v34  ;;  %v1881_v34 = vsel %vm189_vm2, %v1879_v45, %v1880_v28  ;;  %v1862_v10 = vsel %vm466_vm6, %v1859_v23, %v1861_v7 }
 0x1db   : > { %v1135_v25 = vadd.f32 %v4209_v48, %v1114_v6  ;;  %v1882_v49 = vrot.slane %v1875_v1, 4  ;;  %v1917_v45 = vmul.f32 %v3697_v4, %v4351_v9  ;;  %v2012_v7 = vstv %s4436_s13 }
 0x1dc   : > { %1821 = vrot.lane.b32.xlu0 %v1818_v60, %s2730_s8  ;;  %v1262_v20 = vpop.permute.xlu0 %1261  ;;  %v1840_v24 = vrot.slane %v1833_v27, 3  ;;  %v4371_v60 = vld [vmem:[#allocation4] sm:$0xff] }
 0x1dd   : > { %v1201_v0 = vpop.permute.xlu1 %1200  ;;  %v1267_v22 = vadd.f32 %v1262_v20, %v1246_v17  ;;  %v1156_v13 = vadd.f32 %v4232_v19, %v1135_v25  ;;  %v1820_v19 = vsel %vm431_vm5, %v1817_v44, %v1819_v50  ;;  %v1915_v62 = vmul.f32 %v4371_v60, %v4351_v9 }
 0x1de   : > { %1760 = vrot.lane.b32.xlu1 %v1757_v21, %s2730_s8  ;;  %v1883_v27 = vsel %vm189_vm2, %v1880_v28, %v1882_v49 }
 0x1df   : > { %v1170_v36 = vadd.f32 %v4257_v58, %v1156_v13  ;;  %v1921_v20 = vrot.slane %v1915_v62, 5 }
 0x1e0   : > { %1842 = vrot.lane.b32.xlu0 %v1839_v11, %s2730_s8  ;;  %v1283_v33 = vpop.permute.xlu0 %1282  ;;  %v1936_v11 = vmul.f32 %v4393_v37, %v1935_v12 }
 0x1e1   : > { %v1222_v16 = vpop.permute.xlu1 %1221  ;;  %v1288_v26 = vadd.f32 %v1283_v33, %v1267_v22  ;;  %v1184_v58 = vadd.f32 %v4281_v56, %v1170_v36  ;;  %v1841_v56 = vsel %vm466_vm6, %v1838_v32, %v1840_v24  ;;  %v1923_v8 = vsel %vm535_vm7, %v1921_v20, %v1922_v18 }
 0x1e2   : > { %1781 = vrot.lane.b32.xlu1 %v1778_v43, %s2730_s8  ;;  %v1943_v32 = vrot.slane %v4384_v54, 5  ;;  %v1942_v6 = vrot.slane %v1936_v11, 5  ;;  %v1903_v22 = vrot.slane %v1896_v41, 4  ;;  %v1924_v36 = vrot.slane %v1917_v45, 5 }
 0x1e3   : > { %v1205_v15 = vadd.f32 %v1201_v0, %v1184_v58  ;;  %v1956_v0 = vstv %s4353_s0  ;;  %v1998_v58 = vstv %s4422_s9 }
 0x1e4   : > { %1863 = vrot.lane.b32.xlu0 %v1860_v59, %s2730_s8  ;;  %v1304_v48 = vpop.permute.xlu0 %1303  ;;  %v4402_v51 = vmul.f32 %v3642_v39, %v1956_v0  ;;  %v1957_v33 = vmul.f32 %v4371_v60, %v1956_v0  ;;  %v1977_v39 = vstv %s4377_s1  ;;  %v1944_v47 = vsel %vm535_vm7, %v1942_v6, %v1943_v32  ;;  %s2636_s1 = sshll.u32 %s2732_s12, 4  ;;  %s2637_s1 = int_to_ptr.vmem [resolvable:$false] %s2636_s1 }
 0x1e5   : > { %v1243_v40 = vpop.permute.xlu1 %1242  ;;  %v1309_v42 = vadd.f32 %v1304_v48, %v1288_v26  ;;  %v1226_v61 = vadd.f32 %v1222_v16, %v1205_v15  ;;  %v1978_v13 = vmul.f32 %v4393_v37, %v1977_v39  ;;  %v1904_v9 = vsel %vm189_vm2, %v1901_v14, %v1903_v22  ;;  %s2638_s9 = scalar_lea.vmem %s2637_s1, 512 }
 0x1e6   : > { %1802 = vrot.lane.b32.xlu1 %v1799_v2, %s2730_s8  ;;  %v1964_v23 = vrot.slane %v4402_v51, 6  ;;  %v4417_v2 = vld [vmem:[#allocation4 + $0x20] sm:$0xff]  ;;  %v1963_v53 = vrot.slane %v1957_v33, 6 }
 0x1e7   : > { %v1247_v31 = vadd.f32 %v1243_v40, %v1226_v61  ;;  %v4420_v55 = vmul.f32 %v4417_v2, %v1977_v39  ;;  %v1984_v24 = vrot.slane %v1978_v13, 6  ;;  %v4471_v61 = vld [vmem:[#allocation4 + $0x28] sm:$0x3f]  ;;  %v2000_v13 = vmul.f32 %v4462_v35, %v1998_v58 }
 0x1e8   : > { %1884 = vrot.lane.b32.xlu0 %v1881_v34, %s2730_s8  ;;  %v1325_v21 = vpop.permute.xlu0 %1324  ;;  %v1965_v38 = vsel %vm570_vm8, %v1963_v53, %v1964_v23 }
 0x1e9   : > { %v1330_v46 = vadd.f32 %v1325_v21, %v1309_v42  ;;  %v1264_v44 = vpop.permute.xlu1 %1263  ;;  %v1985_v28 = vrot.slane %v4420_v55, 6  ;;  %v4454_v21 = vld [vmem:[#allocation4 + $0x10] sm:$0x3f] }
 0x1ea   : > { %1823 = vrot.lane.b32.xlu1 %v1820_v19, %s2730_s8  ;;  %v1268_v17 = vadd.f32 %v1264_v44, %v1247_v31  ;;  %v1938_v19 = vmul.f32 %v3704_v52, %v1935_v12  ;;  %v1925_v52 = vsel %vm535_vm7, %v1922_v18, %v1924_v36  ;;  %v1959_v12 = vmul.f32 %v4454_v21, %v1956_v0 }
 0x1eb   : > { %v1986_v62 = vsel %vm570_vm8, %v1984_v24, %v1985_v28  ;;  %v1999_v44 = vmul.f32 %v4371_v60, %v1998_v58  ;;  %v2014_v24 = vmul.f32 %v4417_v2, %v2012_v7 }
 0x1ec   : > { %1905 = vrot.lane.b32.xlu0 %v1902_v57, %s2730_s8  ;;  %v1346_v5 = vpop.permute.xlu0 %1345  ;;  %v1945_v14 = vrot.slane %v1938_v19, 5  ;;  %v2026_v57 = vstv %s2492_s11  ;;  %v1966_v11 = vrot.slane %v1959_v12, 6 }
 0x1ed   : > { %v1351_v43 = vadd.f32 %v1346_v5, %v1330_v46  ;;  %v1285_v29 = vpop.permute.xlu1 %1284  ;;  %v4465_v18 = vmul.f32 %v4462_v35, %v2026_v57  ;;  %v1980_v5 = vmul.f32 %v4471_v61, %v1977_v39  ;;  %v2027_v0 = vmul.f32 %v4371_v60, %v2026_v57 }
 0x1ee   : > { %1844 = vrot.lane.b32.xlu1 %v1841_v56, %s2730_s8  ;;  %v1289_v50 = vadd.f32 %v1285_v29, %v1268_v17  ;;  %v1946_v20 = vsel %vm535_vm7, %v1943_v32, %v1945_v14  ;;  %v2013_v29 = vmul.f32 %v4393_v37, %v2012_v7  ;;  %v1967_v41 = vsel %vm570_vm8, %v1964_v23, %v1966_v11 }
 0x1ef   : > { %v2034_v54 = vrot.slane %v4465_v18, 1  ;;  %v1987_v6 = vrot.slane %v1980_v5, 6  ;;  %v2033_v33 = vrot.slane %v2027_v0, 1  ;;  %v2068_v39 = vstv %s4459_s21 }
 0x1f0   : > { %1926 = vrot.lane.b32.xlu0 %v1923_v8, %s2730_s8  ;;  %v1367_v16 = vpop.permute.xlu0 %1366  ;;  %v2047_v8 = vstv %s4444_s17  ;;  %v4494_v51 = vmul.f32 %v4462_v35, %v2068_v39  ;;  %v2069_v45 = vmul.f32 %v4371_v60, %v2068_v39 }
 0x1f1   : > { %v1372_v59 = vadd.f32 %v1367_v16, %v1351_v43  ;;  %v1306_v25 = vpop.permute.xlu1 %1305  ;;  %v4480_v32 = vmul.f32 %v4417_v2, %v2047_v8  ;;  %v2048_v17 = vmul.f32 %v4393_v37, %v2047_v8  ;;  %v2050_v12 = vmul.f32 %v4471_v61, %v2047_v8 }
 0x1f2   : > { %1865 = vrot.lane.b32.xlu1 %v1862_v10, %s2730_s8  ;;  %v1310_v48 = vadd.f32 %v1306_v25, %v1289_v50  ;;  %v2076_v55 = vrot.slane %v4494_v51, 2 }
 0x1f3   : > { %v2055_v50 = vrot.slane %v4480_v32, 1  ;;  %v2054_v22 = vrot.slane %v2048_v17, 1 }
 0x1f4   : > { %1947 = vrot.lane.b32.xlu0 %v1944_v47, %s2730_s8  ;;  %v1388_v26 = vpop.permute.xlu0 %1387  ;;  %v2035_v47 = vsel %vm396_vm4, %v2033_v33, %v2034_v54 }
 0x1f5   : > { %v1393_v40 = vadd.f32 %v1388_v26, %v1372_v59 }
 0x1f6   : > { %1886 = vrot.lane.b32.xlu1 %v1883_v27, %s2730_s8  ;;  %v1327_v34 = vpop.permute.xlu1 %1326  ;;  %v1988_v27 = vsel %vm570_vm8, %v1985_v28, %v1987_v6 }
 0x1f7   : > { %v1331_v4 = vadd.f32 %v1327_v34, %v1310_v48  ;;  %v2089_v48 = vstv %s2495_s30  ;;  %v2056_v34 = vsel %vm396_vm4, %v2054_v22, %v2055_v50 }
 0x1f8   : > { %1968 = vrot.lane.b32.xlu0 %v1965_v38, %s2730_s8  ;;  %v1409_v3 = vpop.permute.xlu0 %1408  ;;  %v4508_v38 = vmul.f32 %v4417_v2, %v2089_v48  ;;  %v2090_v36 = vmul.f32 %v4393_v37, %v2089_v48 }
 0x1f9   : > { %v1414_v42 = vadd.f32 %v1409_v3, %v1393_v40  ;;  %v2110_v3 = vstv %s2496_s16 }
 0x1fa   : > { %1907 = vrot.lane.b32.xlu1 %v1904_v9, %s2730_s8  ;;  %v2075_v9 = vrot.slane %v2069_v45, 2  ;;  %v2097_v58 = vrot.slane %v4508_v38, 2 }
 0x1fb   : > { %v1348_v30 = vpop.permute.xlu1 %1347 }
 0x1fc   : > { %v1352_v63 = vadd.f32 %v1348_v30, %v1331_v4  ;;  %1989 = vrot.lane.b32.xlu0 %v1986_v62, %s2730_s8  ;;  %v1430_v46 = vpop.permute.xlu0 %1429  ;;  %v2029_v4 = vmul.f32 %v4454_v21, %v2026_v57  ;;  %v2077_v62 = vsel %vm431_vm5, %v2075_v9, %v2076_v55  ;;  %v2194_v9 = vstv %s4542_s4 }
 0x1fd   : > { %v1435_v15 = vadd.f32 %v1430_v46, %v1414_v42  ;;  %v2096_v46 = vrot.slane %v2090_v36, 2 }
 0x1fe   : > { %1928 = vrot.lane.b32.xlu1 %v1925_v52, %s2730_s8  ;;  %v2036_v14 = vrot.slane %v2029_v4, 1 }
 0x1ff   : > { %v1369_v56 = vpop.permute.xlu1 %1368 }
 0x200   : > { %v1373_v1 = vadd.f32 %v1369_v56, %v1352_v63  ;;  %2003 = vrot.lane.b32.xlu0 %v1999_v44, %s2731_s22  ;;  %v4520_v63 = vmul.f32 %v4462_v35, %v2110_v3  ;;  %v2111_v44 = vmul.f32 %v4371_v60, %v2110_v3  ;;  %v2037_v0 = vsel %vm396_vm4, %v2034_v54, %v2036_v14 }
 0x201   : > { %v1444_v43 = vpop.permute.xlu0 %1443  ;;  %v2195_v14 = vmul.f32 %v4371_v60, %v2194_v9 }
 0x202   : > { %1949 = vrot.lane.b32.xlu1 %v1946_v20, %s2730_s8  ;;  %v1449_v31 = vadd.f32 %v1444_v43, %v1435_v15  ;;  %v2131_v15 = vstv %s2497_s18  ;;  %v2118_v20 = vrot.slane %v4520_v63, 3  ;;  %v2057_v43 = vrot.slane %v2050_v12, 1 }
 0x203   : > { %v4533_v11 = vmul.f32 %v4417_v2, %v2131_v15  ;;  %v2117_v8 = vrot.slane %v2111_v44, 3 }
 0x204   : > { %v1390_v10 = vpop.permute.xlu1 %1389  ;;  %2017 = vrot.lane.b32.xlu0 %v2013_v29, %s2731_s22  ;;  %v2071_v29 = vmul.f32 %v4454_v21, %v2068_v39 }
 0x205   : > { %v1394_v49 = vadd.f32 %v1390_v10, %v1373_v1  ;;  %v2098_v1 = vsel %vm431_vm5, %v2096_v46, %v2097_v58  ;;  %v2119_v18 = vsel %vm466_vm6, %v2117_v8, %v2118_v20  ;;  %v2139_v54 = vrot.slane %v4533_v11, 3 }
 0x206   : > { %1970 = vrot.lane.b32.xlu1 %v1967_v41, %s2730_s8  ;;  %v1458_v16 = vpop.permute.xlu0 %1457  ;;  %v2078_v39 = vrot.slane %v2071_v29, 2  ;;  %v2215_v46 = vstv %s4559_s5  ;;  %v2236_v8 = vstv %s4576_s6 }
 0x207   : > { %v1463_v59 = vadd.f32 %v1458_v16, %v1449_v31  ;;  %v2132_v31 = vmul.f32 %v4393_v37, %v2131_v15  ;;  %v2058_v16 = vsel %vm396_vm4, %v2055_v50, %v2057_v43  ;;  %v2216_v43 = vmul.f32 %v4393_v37, %v2215_v46 }
 0x208   : > { %v1411_v25 = vpop.permute.xlu1 %1410  ;;  %2038 = vrot.lane.b32.xlu0 %v2035_v47, %s2731_s22  ;;  %v2238_v63 = vmul.f32 %v4462_v35, %v2236_v8 }
 0x209   : > { %v1415_v23 = vadd.f32 %v1411_v25, %v1394_v49  ;;  %v2152_v49 = vstv %s2498_s20  ;;  %v2138_v25 = vrot.slane %v2132_v31, 3 }
 0x20a   : > { %1991 = vrot.lane.b32.xlu1 %v1988_v27, %s2730_s8  ;;  %v1479_v53 = vpop.permute.xlu0 %1478  ;;  %v4549_v33 = vmul.f32 %v4462_v35, %v2152_v49  ;;  %v2153_v47 = vmul.f32 %v4371_v60, %v2152_v49  ;;  %v2173_v27 = vstv %s4526_s28  ;;  %s2404_s8 = sshll.u32 %s170_s7, 4 }
 0x20b   : > { %v1484_v26 = vadd.f32 %v1479_v53, %v1463_v59  ;;  %v2092_v59 = vmul.f32 %v4471_v61, %v2089_v48  ;;  %v2140_v32 = vsel %vm466_vm6, %v2138_v25, %v2139_v54  ;;  %v4566_v53 = vmul.f32 %v4417_v2, %v2173_v27  ;;  %s172_s15 = scalar_lea.vmem [#allocation8], %s2404_s8 }
 0x20c   : > { %v1432_v40 = vpop.permute.xlu1 %1431  ;;  %2059 = vrot.lane.b32.xlu0 %v2056_v34, %s2731_s22  ;;  %v2160_v50 = vrot.slane %v4549_v33, 4  ;;  %v2079_v48 = vsel %vm431_vm5, %v2076_v55, %v2078_v39  ;;  %v2159_v34 = vrot.slane %v2153_v47, 4  ;;  %v2237_v39 = vmul.f32 %v4371_v60, %v2236_v8  ;;  %s2306_s23 = sshll.u32 %s172_s15, 4  ;;  %s4652_s23 = int_to_ptr.vmem [resolvable:$true] %s2306_s23 }
 0x20d   : > { %v1436_v28 = vadd.f32 %v1432_v40, %v1415_v23  ;;  %v2113_v40 = vmul.f32 %v4454_v21, %v2110_v3  ;;  %v2181_v55 = vrot.slane %v4566_v53, 4  ;;  %v2257_v25 = vstv %s2503_s29  ;;  %s2632_s0 = scalar_lea.vmem %s4652_s23, 256  ;;  %p2639_p0 = scmp.lt.s32.totalorder %s4652_s23, %s2637_s1 }
 0x20e   : > { %2005 = vrot.lane.b32.xlu1 %v2000_v13, %s2731_s22  ;;  %v1500_v19 = vpop.permute.xlu0 %1499  ;;  %v2161_v51 = vsel %vm189_vm2, %v2159_v34, %v2160_v50  ;;  %v2243_v60 = vrot.slane %v2237_v39, 6  ;;  %p2633_p10 = scmp.ne.s32.totalorder %s4652_s23, %s2632_s0  ;;  %p2640_p1 = scmp.lt.s32.totalorder %s2638_s9, %s2632_s0 }
 0x20f   : > { %v1505_v42 = vadd.f32 %v1500_v19, %v1484_v26  ;;  %v2099_v26 = vrot.slane %v2092_v59, 2 }
 0x210   : > { %v1446_v30 = vpop.permute.xlu1 %1445  ;;  %2080 = vrot.lane.b32.xlu0 %v2077_v62, %s2731_s22  ;;  %v2134_v62 = vmul.f32 %v4471_v61, %v2131_v15  ;;  %p2634_p11 = pnand %p2633_p10, %p2790_p4  ;;  %p2641_p2 = por %p2640_p1, %p2639_p0 }
 0x211   : > { %v1450_v52 = vadd.f32 %v1446_v30, %v1436_v28  ;;  %v2174_v28 = vmul.f32 %v4393_v37, %v2173_v27  ;;  %v2120_v30 = vrot.slane %v2113_v40, 3 }
 0x212   : > { %2019 = vrot.lane.b32.xlu1 %v2014_v24, %s2731_s22  ;;  %v1521_v57 = vpop.permute.xlu0 %1520  ;;  %v4583_v24 = vmul.f32 %v4462_v35, %v2194_v9  ;;  %p2635_p13 = pneg %p2634_p11 }
 0x213   : > { %v1526_v56 = vadd.f32 %v1521_v57, %v1505_v42  ;;  %v2100_v42 = vsel %vm431_vm5, %v2097_v58, %v2099_v26  ;;  %v2217_v58 = vmul.f32 %v4417_v2, %v2215_v46  ;;  %v2121_v15 = vsel %vm466_vm6, %v2118_v20, %v2120_v30 }
 0x214   : > { %v1460_v7 = vpop.permute.xlu1 %1459  ;;  %2101 = vrot.lane.b32.xlu0 %v2098_v1, %s2731_s22  ;;  %v2202_v38 = vrot.slane %v4583_v24, 5  ;;  %v2141_v1 = vrot.slane %v2134_v62, 3  ;;  %v2260_v30 = vmul.f32 %v4471_v61, %v2257_v25  ;;  %p2642_p3 = pnand %p2641_p2, %p2635_p13 }
 0x215   : > { %v1464_v5 = vadd.f32 %v1460_v7, %v1450_v52  ;;  %v2180_v52 = vrot.slane %v2174_v28, 4 }
 0x216   : > { %2040 = vrot.lane.b32.xlu1 %v2037_v0, %s2731_s22  ;;  %v1542_v10 = vpop.permute.xlu0 %1541  ;;  %v2201_v0 = vrot.slane %v2195_v14, 5  ;;  %v2142_v20 = vsel %vm466_vm6, %v2139_v54, %v2141_v1 }
 0x217   : > { %v1547_v41 = vadd.f32 %v1542_v10, %v1526_v56  ;;  %v2182_v56 = vsel %vm189_vm2, %v2180_v52, %v2181_v55 }
 0x218   : > { %v1481_v6 = vpop.permute.xlu1 %1480  ;;  %2122 = vrot.lane.b32.xlu0 %v2119_v18, %s2731_s22 }
 0x219   : > { %v1485_v17 = vadd.f32 %v1481_v6, %v1464_v5  ;;  %v2155_v5 = vmul.f32 %v4454_v21, %v2152_v49  ;;  %v2223_v6 = vrot.slane %v2217_v58, 5 }
 0x21a   : > { %2061 = vrot.lane.b32.xlu1 %v2058_v16, %s2731_s22  ;;  %v1563_v23 = vpop.permute.xlu0 %1562  ;;  %v2222_v16 = vrot.slane %v2216_v43, 5 }
 0x21b   : > { %v1568_v22 = vadd.f32 %v1563_v23, %v1547_v41  ;;  %v2203_v41 = vsel %vm535_vm7, %v2201_v0, %v2202_v38  ;;  %v2162_v49 = vrot.slane %v2155_v5, 4  ;;  %v2244_v23 = vrot.slane %v2238_v63, 6 }
 0x21c   : > { %v1502_v45 = vpop.permute.xlu1 %1501  ;;  %2143 = vrot.lane.b32.xlu0 %v2140_v32, %s2731_s22  ;;  %v2224_v35 = vsel %vm535_vm7, %v2222_v16, %v2223_v6  ;;  %v2258_v32 = vmul.f32 %v4393_v37, %v2257_v25 }
 0x21d   : > { %v1506_v13 = vadd.f32 %v1502_v45, %v1485_v17  ;;  %v2176_v17 = vmul.f32 %v4471_v61, %v2173_v27  ;;  %v2163_v54 = vsel %vm189_vm2, %v2160_v50, %v2162_v49  ;;  %v2197_v45 = vmul.f32 %v4454_v21, %v2194_v9 }
 0x21e   : > { %2082 = vrot.lane.b32.xlu1 %v2079_v48, %s2731_s22  ;;  %v1584_v4 = vpop.permute.xlu0 %1583  ;;  %v2245_v48 = vsel %vm570_vm8, %v2243_v60, %v2244_v23  ;;  %v2218_v50 = vmul.f32 %v4471_v61, %v2215_v46  ;;  %v2264_v34 = vrot.slane %v2258_v32, 6 }
 0x21f   : > { %v1589_v36 = vadd.f32 %v1584_v4, %v1568_v22  ;;  %v2259_v22 = vmul.f32 %v4417_v2, %v2257_v25  ;;  %v2183_v27 = vrot.slane %v2176_v17, 4  ;;  %v2204_v40 = vrot.slane %v2197_v45, 5 }
 0x220   : > { %v1523_v19 = vpop.permute.xlu1 %1522  ;;  %2164 = vrot.lane.b32.xlu0 %v2161_v51, %s2731_s22  ;;  %v2239_v51 = vmul.f32 %v4454_v21, %v2236_v8 }
 0x221   : > { %v1527_v3 = vadd.f32 %v1523_v19, %v1506_v13  ;;  %v2265_v2 = vrot.slane %v2259_v22, 6  ;;  %v2184_v33 = vsel %vm189_vm2, %v2181_v55, %v2183_v27  ;;  %v2225_v19 = vrot.slane %v2218_v50, 5 }
 0x222   : > { %2103 = vrot.lane.b32.xlu1 %v2100_v42, %s2731_s22  ;;  %v1605_v12 = vpop.permute.xlu0 %1604  ;;  %v2246_v42 = vrot.slane %v2239_v51, 6 }
 0x223   : > { %v1610_v44 = vadd.f32 %v1605_v12, %v1589_v36  ;;  %v2266_v37 = vsel %vm570_vm8, %v2264_v34, %v2265_v2  ;;  %v2205_v36 = vsel %vm535_vm7, %v2202_v38, %v2204_v40  ;;  %v2267_v12 = vrot.slane %v2260_v30, 6 }
 0x224   : > { %v1544_v57 = vpop.permute.xlu1 %1543  ;;  %2185 = vrot.lane.b32.xlu0 %v2182_v56, %s2731_s22  ;;  %v2247_v14 = vsel %vm570_vm8, %v2244_v23, %v2246_v42 }
 0x225   : > { %v1548_v7 = vadd.f32 %v1544_v57, %v1527_v3  ;;  %v2226_v3 = vsel %vm535_vm7, %v2223_v6, %v2225_v19 }
 0x226   : > { %2124 = vrot.lane.b32.xlu1 %v2121_v15, %s2731_s22  ;;  %v1626_v29 = vpop.permute.xlu0 %1625 }
 0x227   : > { %v4604_v31 = vadd.f32 %v1626_v29, %v1610_v44  ;;  %v2268_v44 = vsel %vm570_vm8, %v2265_v2, %v2267_v12 }
 0x228   : > { %v1565_v10 = vpop.permute.xlu1 %1564  ;;  %2206 = vrot.lane.b32.xlu0 %v2203_v41, %s2731_s22 }
 0x229   : > { %v1569_v18 = vadd.f32 %v1565_v10, %v1548_v7 }
 0x22a   : > { %2145 = vrot.lane.b32.xlu1 %v2142_v20, %s2731_s22  ;;  %v4615_v59 = vpop.permute.xlu0 %1646 }
 0x22b   : > { %v1652_v17 = vadd.f32 %v4615_v59, %v4604_v31 }
 0x22c   : > { %v1586_v47 = vpop.permute.xlu1 %1585  ;;  %2227 = vrot.lane.b32.xlu0 %v2224_v35, %s2731_s22 }
 0x22d   : > { %v1590_v11 = vadd.f32 %v1586_v47, %v1569_v18 }
 0x22e   : > { %2166 = vrot.lane.b32.xlu1 %v2163_v54, %s2731_s22  ;;  %v1668_v53 = vpop.permute.xlu0 %1667 }
 0x22f   : > { %v1673_v39 = vadd.f32 %v1668_v53, %v1652_v17 }
 0x230   : > { %v1607_v13 = vpop.permute.xlu1 %1606  ;;  %2248 = vrot.lane.b32.xlu0 %v2245_v48, %s2731_s22 }
 0x231   : > { %v1611_v26 = vadd.f32 %v1607_v13, %v1590_v11 }
 0x232   : > { %2187 = vrot.lane.b32.xlu1 %v2184_v33, %s2731_s22  ;;  %v1689_v28 = vpop.permute.xlu0 %1688 }
 0x233   : > { %v1694_v47 = vadd.f32 %v1689_v28, %v1673_v39 }
 0x234   : > { %v1628_v4 = vpop.permute.xlu1 %1627  ;;  %2269 = vrot.lane.b32.xlu0 %v2266_v37, %s2731_s22 }
 0x235   : > { %v1632_v9 = vadd.f32 %v1628_v4, %v1611_v26 }
 0x236   : > { %2208 = vrot.lane.b32.xlu1 %v2205_v36, %s2731_s22  ;;  %v1710_v55 = vpop.permute.xlu0 %1709 }
 0x237   : > { %v1715_v23 = vadd.f32 %v1710_v55, %v1694_v47 }
 0x238   : > { %v1649_v24 = vpop.permute.xlu1 %1648 }
 0x239   : > { %v1653_v32 = vadd.f32 %v1649_v24, %v1632_v9 }
 0x23a   : > { %2229 = vrot.lane.b32.xlu1 %v2226_v3, %s2731_s22  ;;  %v1724_v62 = vpop.permute.xlu0 %1723 }
 0x23b   : > { %v1729_v11 = vadd.f32 %v1724_v62, %v1715_v23 }
 0x23c   : > { %v1670_v52 = vpop.permute.xlu1 %1669 }
 0x23d   : > { %v1674_v26 = vadd.f32 %v1670_v52, %v1653_v32 }
 0x23e   : > { %2250 = vrot.lane.b32.xlu1 %v2247_v14, %s2731_s22  ;;  %v1738_v46 = vpop.permute.xlu0 %1737 }
 0x23f   : > { %v1743_v27 = vadd.f32 %v1738_v46, %v1729_v11 }
 0x240   : > { %v1691_v21 = vpop.permute.xlu1 %1690 }
 0x241   : > { %v1695_v40 = vadd.f32 %v1691_v21, %v1674_v26 }
 0x242   : > { %2271 = vrot.lane.b32.xlu1 %v2268_v44, %s2731_s22  ;;  %v1759_v57 = vpop.permute.xlu0 %1758 }
 0x243   : > { %v1764_v60 = vadd.f32 %v1759_v57, %v1743_v27 }
 0x244   : > { %v1712_v56 = vpop.permute.xlu1 %1711 }
 0x245   : > { %v1716_v50 = vadd.f32 %v1712_v56, %v1695_v40 }
 0x246   : > { %v1780_v38 = vpop.permute.xlu0 %1779 }
 0x247   : > { %v1785_v48 = vadd.f32 %v1780_v38, %v1764_v60 }
 0x248   : > { %v1726_v58 = vpop.permute.xlu1 %1725 }
 0x249   : > { %v1730_v28 = vadd.f32 %v1726_v58, %v1716_v50 }
 0x24a   : > { %v1801_v61 = vpop.permute.xlu0 %1800 }
 0x24b   : > { %v1806_v33 = vadd.f32 %v1801_v61, %v1785_v48 }
 0x24c   : > { %v1740_v7 = vpop.permute.xlu1 %1739 }
 0x24d   : > { %v1744_v19 = vadd.f32 %v1740_v7, %v1730_v28 }
 0x24e   : > { %v1822_v15 = vpop.permute.xlu0 %1821 }
 0x24f   : > { %v1827_v59 = vadd.f32 %v1822_v15, %v1806_v33 }
 0x250   : > { %v1761_v1 = vpop.permute.xlu1 %1760 }
 0x251   : > { %v1765_v55 = vadd.f32 %v1761_v1, %v1744_v19 }
 0x252   : > { %v1843_v5 = vpop.permute.xlu0 %1842 }
 0x253   : > { %v1848_v34 = vadd.f32 %v1843_v5, %v1827_v59 }
 0x254   : > { %v1782_v0 = vpop.permute.xlu1 %1781 }
 0x255   : > { %v1786_v42 = vadd.f32 %v1782_v0, %v1765_v55 }
 0x256   : > { %v1864_v43 = vpop.permute.xlu0 %1863 }
 0x257   : > { %v1869_v37 = vadd.f32 %v1864_v43, %v1848_v34 }
 0x258   : > { %v1803_v29 = vpop.permute.xlu1 %1802 }
 0x259   : > { %v1807_v62 = vadd.f32 %v1803_v29, %v1786_v42 }
 0x25a   : > { %v1885_v8 = vpop.permute.xlu0 %1884 }
 0x25b   : > { %v1890_v51 = vadd.f32 %v1885_v8, %v1869_v37 }
 0x25c   : > { %v1824_v10 = vpop.permute.xlu1 %1823 }
 0x25d   : > { %v1828_v46 = vadd.f32 %v1824_v10, %v1807_v62 }
 0x25e   : > { %v1906_v41 = vpop.permute.xlu0 %1905 }
 0x25f   : > { %v1911_v9 = vadd.f32 %v1906_v41, %v1890_v51 }
 0x260   : > { %v1845_v6 = vpop.permute.xlu1 %1844 }
 0x261   : > { %v1849_v44 = vadd.f32 %v1845_v6, %v1828_v46 }
 0x262   : > { %v1927_v63 = vpop.permute.xlu0 %1926 }
 0x263   : > { %v1932_v30 = vadd.f32 %v1927_v63, %v1911_v9 }
 0x264   : > { %v1866_v18 = vpop.permute.xlu1 %1865 }
 0x265   : > { %v1870_v58 = vadd.f32 %v1866_v18, %v1849_v44 }
 0x266   : > { %v1948_v20 = vpop.permute.xlu0 %1947 }
 0x267   : > { %v1953_v14 = vadd.f32 %v1948_v20, %v1932_v30 }
 0x268   : > { %v1887_v49 = vpop.permute.xlu1 %1886 }
 0x269   : > { %v1891_v7 = vadd.f32 %v1887_v49, %v1870_v58 }
 0x26a   : > { %v1969_v16 = vpop.permute.xlu0 %1968 }
 0x26b   : > { %v1974_v21 = vadd.f32 %v1969_v16, %v1953_v14 }
 0x26c   : > { %v1908_v25 = vpop.permute.xlu1 %1907 }
 0x26d   : > { %v1912_v43 = vadd.f32 %v1908_v25, %v1891_v7 }
 0x26e   : > { %v1990_v35 = vpop.permute.xlu0 %1989 }
 0x26f   : > { %v1995_v56 = vadd.f32 %v1990_v35, %v1974_v21 }
 0x270   : > { %v1929_v22 = vpop.permute.xlu1 %1928 }
 0x271   : > { %v1933_v0 = vadd.f32 %v1929_v22, %v1912_v43 }
 0x272   : > { %v2004_v54 = vpop.permute.xlu0 %2003 }
 0x273   : > { %v2009_v61 = vadd.f32 %v2004_v54, %v1995_v56 }
 0x274   : > { %v1950_v45 = vpop.permute.xlu1 %1949 }
 0x275   : > { %v1954_v20 = vadd.f32 %v1950_v45, %v1933_v0 }
 0x276   : > { %v2018_v13 = vpop.permute.xlu0 %2017 }
 0x277   : > { %v2023_v1 = vadd.f32 %v2018_v13, %v2009_v61 }
 0x278   : > { %v1971_v2 = vpop.permute.xlu1 %1970 }
 0x279   : > { %v1975_v10 = vadd.f32 %v1971_v2, %v1954_v20 }
 0x27a   : > { %v2039_v31 = vpop.permute.xlu0 %2038 }
 0x27b   : > { %v2044_v8 = vadd.f32 %v2039_v31, %v2023_v1 }
 0x27c   : > { %v1992_v53 = vpop.permute.xlu1 %1991 }
 0x27d   : > { %v1996_v47 = vadd.f32 %v1992_v53, %v1975_v10 }
 0x27e   : > { %v2060_v4 = vpop.permute.xlu0 %2059 }
 0x27f   : > { %v2065_v29 = vadd.f32 %v2060_v4, %v2044_v8 }
 0x280   : > { %v2006_v36 = vpop.permute.xlu1 %2005 }
 0x281   : > { %v2010_v18 = vadd.f32 %v2006_v36, %v1996_v47 }
 0x282   : > { %v2081_v3 = vpop.permute.xlu0 %2080 }
 0x283   : > { %v2086_v17 = vadd.f32 %v2081_v3, %v2065_v29 }
 0x284   : > { %v2020_v24 = vpop.permute.xlu1 %2019 }
 0x285   : > { %v2024_v54 = vadd.f32 %v2020_v24, %v2010_v18 }
 0x286   : > { %v2102_v52 = vpop.permute.xlu0 %2101 }
 0x287   : > { %v2107_v6 = vadd.f32 %v2102_v52, %v2086_v17 }
 0x288   : > { %v2041_v12 = vpop.permute.xlu1 %2040 }
 0x289   : > { %v2045_v25 = vadd.f32 %v2041_v12, %v2024_v54 }
 0x28a   : > { %v2123_v57 = vpop.permute.xlu0 %2122 }
 0x28b   : > { %v2128_v35 = vadd.f32 %v2123_v57, %v2107_v6 }
 0x28c   : > { %v2062_v38 = vpop.permute.xlu1 %2061 }
 0x28d   : > { %v2066_v13 = vadd.f32 %v2062_v38, %v2045_v25 }
 0x28e   : > { %v2144_v15 = vpop.permute.xlu0 %2143 }
 0x28f   : > { %v2149_v49 = vadd.f32 %v2144_v15, %v2128_v35 }
 0x290   : > { %v2083_v5 = vpop.permute.xlu1 %2082 }
 0x291   : > { %v2087_v45 = vadd.f32 %v2083_v5, %v2066_v13 }
 0x292   : > { %v2165_v41 = vpop.permute.xlu0 %2164 }
 0x293   : > { %v2170_v27 = vadd.f32 %v2165_v41, %v2149_v49 }
 0x294   : > { %v2104_v63 = vpop.permute.xlu1 %2103 }
 0x295   : > { %v2108_v40 = vadd.f32 %v2104_v63, %v2087_v45 }
 0x296   : > { %v2186_v16 = vpop.permute.xlu0 %2185 }
 0x297   : > { %v2191_v22 = vadd.f32 %v2186_v16, %v2170_v27 }
 0x298   : > { %v2125_v39 = vpop.permute.xlu1 %2124 }
 0x299   : > { %v2129_v59 = vadd.f32 %v2125_v39, %v2108_v40 }
 0x29a   : > { %v2207_v23 = vpop.permute.xlu0 %2206 }
 0x29b   : > { %v2212_v48 = vadd.f32 %v2207_v23, %v2191_v22 }
 0x29c   : > { %v2146_v11 = vpop.permute.xlu1 %2145 }
 0x29d   : > { %v2150_v28 = vadd.f32 %v2146_v11, %v2129_v59 }
 0x29e   : > { %v2228_v60 = vpop.permute.xlu0 %2227 }
 0x29f   : > { %v2233_v2 = vadd.f32 %v2228_v60, %v2212_v48 }
 0x2a0   : > { %v2167_v32 = vpop.permute.xlu1 %2166 }
 0x2a1   : > { %v2171_v37 = vadd.f32 %v2167_v32, %v2150_v28 }
 0x2a2   : > { %v2249_v26 = vpop.permute.xlu0 %2248 }
 0x2a3   : > { %v2254_v31 = vadd.f32 %v2249_v26, %v2233_v2 }
 0x2a4   : > { %v2188_v33 = vpop.permute.xlu1 %2187 }
 0x2a5   : > { %v2192_v19 = vadd.f32 %v2188_v33, %v2171_v37 }
 0x2a6   : > { %v2270_v53 = vpop.permute.xlu0 %2269 }
 0x2a7   : > { %v2275_v50 = vadd.f32 %v2270_v53, %v2254_v31 }
 0x2a8   : > { %v2209_v34 = vpop.permute.xlu1 %2208 }
 0x2a9   : > { %v2504_v4 = vmul.f32 -1.442695, %v2275_v50  ;;  %v2213_v51 = vadd.f32 %v2209_v34, %v2192_v19 }
 0x2ab   : > { %2597 = vpow2.f32 %v2504_v4 }
 0x2ac   : > { %v2230_v36 = vpop.permute.xlu1 %2229 }
 0x2ad   : > { %v2234_v3 = vadd.f32 %v2230_v36, %v2213_v51 }
 0x2b0   : > { %v2251_v55 = vpop.permute.xlu1 %2250 }
 0x2b1   : > { %v2255_v9 = vadd.f32 %v2251_v55, %v2234_v3 }
 0x2b4   : > { %v2272_v24 = vpop.permute.xlu1 %2271 }
 0x2b5   : > { %v2276_v42 = vadd.f32 %v2272_v24, %v2255_v9  ;;  %v2598_v30 = vpop.eup %2597 }
 0x2b6   : > { %v2283_v62 = vadd.f32 1.0, %v2598_v30 }
 0x2b7   : > { %v2505_v52 = vmul.f32 -1.442695, %v2276_v42 }
 0x2b8   : > { %2599 = vrcp.f32 %v2283_v62 }
 0x2b9   : > { %2601 = vpow2.f32 %v2505_v52 }
 0x2c2   : > { %v2600_v14 = vpop.eup %2599 }
 0x2c3   : > { %v2602_v12 = vpop.eup %2601  ;;  %2290 = vst.msk [vmem:[%s172_s15] sm:$0xff] %vm2289_vm9, %v2600_v14 }
 0x2c4   : > { %v2284_v46 = vadd.f32 1.0, %v2602_v12 }
 0x2c6   : > { %2603 = vrcp.f32 %v2284_v46 }
 0x2d0   : > { %v2604_v21 = vpop.eup %2603 }
 0x2d1   : > { %2291 = vst.msk [vmem:[%s172_s15 + $0x8] sm:$0xff] %vm2289_vm9, %v2604_v21 }
 0x2d2   : > { %2645 = shalt.err (!%p2642_p3)
}
 0x2d3   : > { %s2646_s11 = scalar_lea.hbm %s4650_s27, 256  ;;  %s2650_s21 = scalar_lea.hbm %s4702_s2, 512 }
 0x2d4   : > { %p2647_p5 = scmp.ne.s32.totalorder %s4650_s27, %s2646_s11  ;;  %p2651_p9 = scmp.lt.u32.totalorder %s4650_s27, %s4702_s2 }
 0x2d5   : > { %p2652_p12 = scmp.lt.u32.totalorder %s2650_s21, %s2646_s11  ;;  %p2654_p11 = scmp.lt.u32.totalorder %s2646_s11, %s4650_s27 }
 0x2d6   : > { %p2648_p6 = pnand %p2647_p5, %p2790_p4 }
 0x2d7   : > { %p2653_p10 = por %p2652_p12, %p2651_p9 }
 0x2d8   : > { %p2649_p7 = pneg %p2648_p6 }
 0x2d9   : > { %p2655_p13 = por %p2654_p11, %p2653_p10 }
 0x2db   : > { %p2656_p0 = pnand %p2655_p13, %p2649_p7 }
 0x2dd   : > { %2659 = shalt.err (!%p2656_p0)
}
 0x2de   : > { %s2733_s16 = smov 128   ;;  %s2734_s18 = smov 8  }
 0x2df   : > { %2517 = dma.vmem_to_hbm [thread:$0]  (%p2790_p4), %s4652_s23, 256, %s4650_s27, %s4654_s3, %s2733_s16, %s2733_s16, %s2734_s18  }
 0x2e0 PF: > { %s4790_s20 = sld [smem:[#allocation11_spill]]  ;;  %p2529_p1 = scmp.ge.s32.totalorder %s2714_s14, 2 }
 0x2e2   : > { %p2524_p2 = pnand %p2529_p1, %p2797_p8 }
 0x2e6   : > { %s2321_s4 = sand.u32 1, %s4790_s20  }
 0x2e7   : > { %s2322_s5 = scalar_lea.sflag [#allocation6], %s2321_s4 }
 0x2e8   : > { %2689 = dma.done.wait (!%p2524_p2), %s2322_s5, 256  }
 0x2e9   : > { %2691 = vsyncadd (!%p2524_p2), %s2322_s5, 4294967040  ;;  %s16_s14 = sadd.s32 1, %s2714_s14   ;;  %s4792_s6 = sld [smem:[#allocation12_spill]] }
 0x2ea   : > { %p13_p3 = scmp.ge.s32.totalorder %s16_s14, 4   ;;  %s4793_s11 = sld [smem:[#allocation16_spill]] }
 0x2eb   : > { %s4794_s12 = sld [smem:[#allocation13_spill]]  ;;  %s4795_s13 = sld [smem:[#allocation14_spill]] }
 0x2ec   : > { %s4796_s9 = smov %s2698_s10  ;;  %15 = sbr.rel (!%p13_p3) target bundleno = 8 (0x8), region = 69 }
 0x2ef   : > { %s4797_s10 = smov %s4792_s6 }
 0x2f3   :  { %2327 = vsyncpa [#allocation6], 1 }
 0x2f4   :  { %2329 = vsyncpa [#allocation6 + $0x1], 1 }
 0x2f5   :  { %2330 = vsyncpa [#allocation7], 1 }
 0x2f6   :  { %2332 = vsyncpa [#allocation7 + $0x1], 1 }

</bundles_post_ra>
